<compile_context>
chip_gen: v7x
topology: tpu7x:2x2x1
jax: 0.10.0
libtpu: 0.0.40
codegen_flags: <defaults>
</compile_context>

<pallas_src>
import numpy as np

import jax
import jax.numpy as jnp
from jax.experimental import pallas as pl
from jax.experimental.pallas import tpu as pltpu

_BN_EPS = 1e-5


# ----------------------------- weight prep ----------------------------------

def _prep3x3(w_oihw, bn):
    """OIHW 3x3 conv weight -> (9, Cin, Cout) with BN scale folded, + (1,Cout) bias."""
    Cout, Cin, KH, KW = w_oihw.shape
    w = jnp.transpose(w_oihw, (2, 3, 1, 0)).reshape(KH * KW, Cin, Cout)
    g, b, m, v = bn
    scale = g / jnp.sqrt(v + _BN_EPS)
    bias = (b - m * scale).reshape(1, Cout)
    w = w * scale.reshape(1, 1, Cout)
    return w.astype(jnp.float32), bias.astype(jnp.float32)


def _prep1x1(w_oihw):
    Cout, Cin, _, _ = w_oihw.shape
    return jnp.transpose(w_oihw, (2, 3, 1, 0)).reshape(Cin, Cout).astype(jnp.float32)


# ------------------------------ fused forward --------------------------------

def net9_3_forward(x_nchw, p, n_tile=1):
    N, Cin, H, W = x_nchw.shape
    assert Cin == 1 and H % 2 == 0 and W % 2 == 0 and H >= 14 and W >= 14
    assert N % n_tile == 0
    Nt = n_tile
    num_tiles = N // Nt

    # ---- static per-tile geometry (everything unrolled at trace time) ------
    M1 = Nt * H * W                               # stage-1 flattened rows
    R1 = M1 + 2 * W + 8                           # tail pad >= 2W+2 (max tap)
    Hv1, Wv1 = H - 4, W - 4                       # valid spatial after conv1b
    Hp, Wp = Hv1 // 2, Wv1 // 2                   # after 2x2 max-pool
    H2, W2 = Hp + 2, Wp + 2                       # stage-2 grid (data at (1,1))
    M2 = Nt * H2 * W2
    HP2 = ((W2 + 1 + 7) // 8) * 8                 # head pad >= W2+1 (pad=1 conv)
    R2 = HP2 + M2 + 2 * W2 + 8                    # + tail pad >= 2*W2+2
    Hg, Wg = Hp - 4, Wp - 4                       # GAP window (conv2c valid size)
    assert Hg >= 1 and Wg >= 1

    # ---- host-side prep (layout plumbing only, no compute hoisted) ----------
    # conv1a input as 9-tap patches: column k = 3i+j holds input at (h+i, w+j).
    M1_all = N * H * W
    xf = jnp.transpose(x_nchw, (0, 2, 3, 1)).astype(jnp.float32).reshape(M1_all)
    xf = jnp.pad(xf, (0, 2 * W + 2))
    xp = jnp.stack([xf[i * W + j: i * W + j + M1_all]
                    for i in range(3) for j in range(3)], axis=1)      # (M1_all, 9)

    w1a, b1a = _prep3x3(p["c1a"], p["bn1a"])
    w1a = w1a.reshape(9, -1)                      # Cin == 1 -> (9, 8)
    w1b, b1b = _prep3x3(p["c1b"], p["bn1b"])
    wt1 = _prep1x1(p["t1"])
    w2a, b2a = _prep3x3(p["c2a"], p["bn2a"])
    w2b, b2b = _prep3x3(p["c2b"], p["bn2b"])
    w2c, b2c = _prep3x3(p["c2c"], p["bn2c"])
    wt2 = _prep1x1(p["t2"])

    C1a, C1b, Ct1 = w1a.shape[-1], w1b.shape[-1], wt1.shape[-1]
    C2a, C2b = w2a.shape[-1], w2b.shape[-1]
    Ct2 = wt2.shape[-1]

    # {0,1} mask over the stage-2 data rows: 1 inside conv2b's valid (Hg x Wg)
    # block (anchored at (1,1)); zeroing the ring IS conv2c's zero padding.
    pp = np.arange(M2)
    hh = (pp % (H2 * W2)) // W2
    ww = pp % W2
    valid = (hh >= 1) & (hh <= Hg) & (ww >= 1) & (ww <= Wg)
    mask2b = jnp.asarray(valid.astype(np.float32).reshape(M2, 1))

    # GAP selector: gvec[n, p] = 1/(Hg*Wg) iff data row p is a valid conv2c
    # output of (local) image n.  GAP then becomes one MXU dot.
    gmat = np.zeros((Nt, M2), np.float32)
    gmat[(pp // (H2 * W2))[valid], pp[valid]] = 1.0 / float(Hg * Wg)
    gvec = jnp.asarray(gmat)

    # ---- the fused kernel (one grid step = one batch tile of Nt images) ----
    def kernel(xp_ref, w1a_r, b1a_r, w1b_r, b1b_r, wt1_r,
               w2a_r, b2a_r, w2b_r, b2b_r, w2c_r, b2c_r, wt2_r,
               mask_r, gvec_r, o_ref,
               s1a, s1b, st1, s2i, s2a, s2b):
        f32 = jnp.float32

        # minimal zero-init: only rows read-but-never-written this step
        # (finiteness of garbage rows + the zero ring around the pooled data).
        s2i[pl.ds(HP2, R2 - HP2), :] = jnp.zeros((R2 - HP2, s2i.shape[1]), f32)
        s2a[pl.ds(HP2 + M2, R2 - HP2 - M2), :] = (
            jnp.zeros((R2 - HP2 - M2, s2a.shape[1]), f32))
        s2b[pl.ds(0, HP2), :] = jnp.zeros((HP2, s2b.shape[1]), f32)
        s2b[pl.ds(HP2 + M2, R2 - HP2 - M2), :] = (
            jnp.zeros((R2 - HP2 - M2, s2b.shape[1]), f32))

        def conv3x3(src, bases, rows, w_r):
            """3x3 conv in the flattened-rows layout: one block load per kernel
            row (3 loads, not 9), +0/+1/+2 column shifts taken in-register."""
            blk = rows + 8
            acc = None
            for i, base in enumerate(bases):
                block = src[pl.ds(base, blk), :]
                for j in range(3):
                    a = block[j:j + rows, :]
                    c = jnp.dot(a, w_r[3 * i + j], preferred_element_type=f32)
                    acc = c if acc is None else acc + c
            return acc

        # ---------------- stage 1: grid (H, W), valid data anchored at (0,0)
        y = jnp.dot(xp_ref[...], w1a_r[...], preferred_element_type=f32)   # conv1a
        s1a[pl.ds(0, M1), :] = jnp.maximum(y + b1a_r[...], 0.0)

        y = conv3x3(s1a, (0, W, 2 * W), M1, w1b_r)                         # conv1b
        s1b[pl.ds(0, M1), :] = jnp.maximum(y + b1b_r[...], 0.0)

        st1[pl.ds(0, M1), :] = jnp.dot(s1b[pl.ds(0, M1), :], wt1_r[...],
                                       preferred_element_type=f32)         # trans1

        # ---------------- 2x2 max-pool -> stage-2 grid, anchored at (1,1) ----
        for n in range(Nt):
            for ho in range(Hp):
                base = n * H * W + 2 * ho * W
                e00 = st1[pl.ds(base, Wp, stride=2), :]
                e01 = st1[pl.ds(base + 1, Wp, stride=2), :]
                e10 = st1[pl.ds(base + W, Wp, stride=2), :]
                e11 = st1[pl.ds(base + W + 1, Wp, stride=2), :]
                pooled = jnp.maximum(jnp.maximum(e00, e01),
                                     jnp.maximum(e10, e11))                # (Wp, 10)
                dst = HP2 + n * H2 * W2 + (ho + 1) * W2 + 1
                s2i[pl.ds(dst, Wp), :] = pooled

        # ---------------- stage 2: grid (H2, W2), valid data anchored at (1,1)
        bases2 = (HP2, HP2 + W2, HP2 + 2 * W2)
        y = conv3x3(s2i, bases2, M2, w2a_r)                                # conv2a
        s2a[pl.ds(HP2, M2), :] = jnp.maximum(y + b2a_r[...], 0.0)

        y = conv3x3(s2a, bases2, M2, w2b_r)                                # conv2b
        s2b[pl.ds(HP2, M2), :] = (jnp.maximum(y + b2b_r[...], 0.0)
                                  * mask_r[...])                           # zero ring

        bases2p = (HP2 - W2 - 1, HP2 - 1, HP2 + W2 - 1)
        y2c = conv3x3(s2b, bases2p, M2, w2c_r)                             # conv2c pad=1
        y2c = jnp.maximum(y2c + b2c_r[...], 0.0)                           # value, never stored

        # ---------------- GAP (selector matmul) -> trans2 -> log_softmax ----
        gap = jnp.dot(gvec_r[...], y2c, preferred_element_type=f32)        # (Nt, 31)
        logits = jnp.dot(gap, wt2_r[...], preferred_element_type=f32)      # (Nt, 10)
        z = logits - jnp.max(logits, axis=1, keepdims=True)
        lse = jnp.log(jnp.sum(jnp.exp(z), axis=1, keepdims=True))
        o_ref[...] = z - lse

    def _bcast(a):
        nd = a.ndim
        return pl.BlockSpec(a.shape, lambda t, _nd=nd: (0,) * _nd)

    out = pl.pallas_call(
        kernel,
        out_shape=jax.ShapeDtypeStruct((num_tiles, Nt, Ct2), jnp.float32),
        grid_spec=pltpu.PrefetchScalarGridSpec(
            num_scalar_prefetch=0,
            grid=(num_tiles,),
            in_specs=[
                pl.BlockSpec((M1, 9), lambda t: (t, 0)),          # per-tile patches
                _bcast(w1a), _bcast(b1a), _bcast(w1b), _bcast(b1b), _bcast(wt1),
                _bcast(w2a), _bcast(b2a), _bcast(w2b), _bcast(b2b),
                _bcast(w2c), _bcast(b2c), _bcast(wt2),
                _bcast(mask2b), _bcast(gvec),
            ],
            out_specs=pl.BlockSpec((None, Nt, Ct2), lambda t: (t, 0, 0)),
            scratch_shapes=[
                pltpu.VMEM((R1, C1a), jnp.float32),   # conv1a out
                pltpu.VMEM((R1, C1b), jnp.float32),   # conv1b out
                pltpu.VMEM((R1, Ct1), jnp.float32),   # trans1 out
                pltpu.VMEM((R2, Ct1), jnp.float32),   # pooled (stage-2 input)
                pltpu.VMEM((R2, C2a), jnp.float32),   # conv2a out
                pltpu.VMEM((R2, C2b), jnp.float32),   # conv2b out (masked)
            ]),
        compiler_params=pltpu.CompilerParams(
            dimension_semantics=("parallel",)),       # v7x: tiles split across TCs
    )(xp, w1a, b1a, w1b, b1b, wt1, w2a, b2a, w2b, b2b, w2c, b2c, wt2, mask2b, gvec)

    return out.reshape(N, Ct2)


# ------------------------------ params ---------------------------------------

def init_params(key):
    ks = jax.random.split(key, 12)

    def conv_w(k, cout, cin, kh, kw):
        fan_in = cin * kh * kw
        return jax.random.normal(k, (cout, cin, kh, kw), jnp.float32) * (2.0 / fan_in) ** 0.5

    def bn_p(k, c):
        k1, k2, k3, k4 = jax.random.split(k, 4)
        gamma = 1.0 + 0.1 * jax.random.normal(k1, (c,), jnp.float32)
        beta = 0.1 * jax.random.normal(k2, (c,), jnp.float32)
        mean = 0.05 * jax.random.normal(k3, (c,), jnp.float32)
        var = jax.random.uniform(k4, (c,), jnp.float32, minval=0.5, maxval=1.5)
        return (gamma, beta, mean, var)

    return {
        "c1a": conv_w(ks[0], 8, 1, 3, 3),   "bn1a": bn_p(ks[1], 8),
        "c1b": conv_w(ks[2], 11, 8, 3, 3),  "bn1b": bn_p(ks[3], 11),
        "t1":  conv_w(ks[4], 10, 11, 1, 1),
        "c2a": conv_w(ks[5], 12, 10, 3, 3), "bn2a": bn_p(ks[6], 12),
        "c2b": conv_w(ks[7], 14, 12, 3, 3), "bn2b": bn_p(ks[8], 14),
        "c2c": conv_w(ks[9], 31, 14, 3, 3), "bn2c": bn_p(ks[10], 31),
        "t2":  conv_w(ks[11], 10, 31, 1, 1),
    }


# ----------------------- pure-JAX reference (check) --------------------------

def _ref_forward(x_nchw, p):
    x = jnp.transpose(x_nchw, (0, 2, 3, 1)).astype(jnp.float32)

    def conv(h, w_oihw, pad=0):
        w = jnp.transpose(w_oihw, (2, 3, 1, 0))  # HWIO
        return jax.lax.conv_general_dilated(
            h, w, (1, 1), [(pad, pad), (pad, pad)],
            dimension_numbers=("NHWC", "HWIO", "NHWC"))

    def bn(h, bnp):
        g, b, m, v = bnp
        return g * (h - m) / jnp.sqrt(v + _BN_EPS) + b

    x = jax.nn.relu(bn(conv(x, p["c1a"]), p["bn1a"]))
    x = jax.nn.relu(bn(conv(x, p["c1b"]), p["bn1b"]))
    x = conv(x, p["t1"])
    N, H, W, C = x.shape
    x = x.reshape(N, H // 2, 2, W // 2, 2, C).max(axis=(2, 4))
    x = jax.nn.relu(bn(conv(x, p["c2a"]), p["bn2a"]))
    x = jax.nn.relu(bn(conv(x, p["c2b"]), p["bn2b"]))
    x = jax.nn.relu(bn(conv(x, p["c2c"], pad=1), p["bn2c"]))
    x = conv(x, p["t2"])
    x = jnp.mean(x, axis=(1, 2))
    return jax.nn.log_softmax(x, axis=-1)


if __name__ == "__main__":
    key = jax.random.PRNGKey(0)
    kp, kx = jax.random.split(key)
    params = init_params(kp)
    # small shape consistent with the module: 1 input channel, spatial 16x16
    x = jax.random.normal(kx, (2, 1, 16, 16), jnp.float32)        # NCHW

    fwd = jax.jit(lambda xx, pprm: net9_3_forward(xx, pprm, n_tile=1))
    out = jax.block_until_ready(fwd(x, params))

    assert out.shape == (2, 10), out.shape
    ref = _ref_forward(x, params)
    max_err = float(jnp.max(jnp.abs(out - ref)))
    assert max_err < 1e-4, f"mismatch vs JAX reference: max_err={max_err}"
    assert bool(jnp.allclose(jnp.sum(jnp.exp(out), axis=-1), 1.0, atol=1e-5))
    print("KERNEL_OK")
</pallas_src>

<mosaic_0001>
module attributes {stable_mosaic.version = 11 : i64} {
  func.func @kernel(%arg0: i32, %arg1: memref<256x9xf32, #tpu.memory_space<vmem>>, %arg2: memref<9x8xf32, #tpu.memory_space<vmem>>, %arg3: memref<1x8xf32, #tpu.memory_space<vmem>>, %arg4: memref<9x8x11xf32, #tpu.memory_space<vmem>>, %arg5: memref<1x11xf32, #tpu.memory_space<vmem>>, %arg6: memref<11x10xf32, #tpu.memory_space<vmem>>, %arg7: memref<9x10x12xf32, #tpu.memory_space<vmem>>, %arg8: memref<1x12xf32, #tpu.memory_space<vmem>>, %arg9: memref<9x12x14xf32, #tpu.memory_space<vmem>>, %arg10: memref<1x14xf32, #tpu.memory_space<vmem>>, %arg11: memref<9x14x31xf32, #tpu.memory_space<vmem>>, %arg12: memref<1x31xf32, #tpu.memory_space<vmem>>, %arg13: memref<31x10xf32, #tpu.memory_space<vmem>>, %arg14: memref<64x1xf32, #tpu.memory_space<vmem>>, %arg15: memref<1x64xf32, #tpu.memory_space<vmem>>, %arg16: memref<1x1x10xf32, #tpu.memory_space<vmem>>, %arg17: memref<296x8xf32, #tpu.memory_space<vmem>>, %arg18: memref<296x11xf32, #tpu.memory_space<vmem>>, %arg19: memref<296x10xf32, #tpu.memory_space<vmem>>, %arg20: memref<104x10xf32, #tpu.memory_space<vmem>>, %arg21: memref<104x12xf32, #tpu.memory_space<vmem>>, %arg22: memref<104x14xf32, #tpu.memory_space<vmem>>) attributes {dimension_semantics = [#tpu.dimension_semantics<parallel>], iteration_bounds = array<i64: 2>, scalar_prefetch = 0 : i64, scratch_operands = 6 : i64, tpu.core_type = #tpu.core_type<tc>, window_params = [{transform_indices = @transform_0, window_bounds = array<i64: 256, 9>}, {pipeline_mode = #tpu.pipeline_mode<synchronous>, transform_indices = @transform_1, window_bounds = array<i64: 9, 8>}, {pipeline_mode = #tpu.pipeline_mode<synchronous>, transform_indices = @transform_2, window_bounds = array<i64: 1, 8>}, {pipeline_mode = #tpu.pipeline_mode<synchronous>, transform_indices = @transform_3, window_bounds = array<i64: 9, 8, 11>}, {pipeline_mode = #tpu.pipeline_mode<synchronous>, transform_indices = @transform_4, window_bounds = array<i64: 1, 11>}, {pipeline_mode = #tpu.pipeline_mode<synchronous>, transform_indices = @transform_5, window_bounds = array<i64: 11, 10>}, {pipeline_mode = #tpu.pipeline_mode<synchronous>, transform_indices = @transform_6, window_bounds = array<i64: 9, 10, 12>}, {pipeline_mode = #tpu.pipeline_mode<synchronous>, transform_indices = @transform_7, window_bounds = array<i64: 1, 12>}, {pipeline_mode = #tpu.pipeline_mode<synchronous>, transform_indices = @transform_8, window_bounds = array<i64: 9, 12, 14>}, {pipeline_mode = #tpu.pipeline_mode<synchronous>, transform_indices = @transform_9, window_bounds = array<i64: 1, 14>}, {pipeline_mode = #tpu.pipeline_mode<synchronous>, transform_indices = @transform_10, window_bounds = array<i64: 9, 14, 31>}, {pipeline_mode = #tpu.pipeline_mode<synchronous>, transform_indices = @transform_11, window_bounds = array<i64: 1, 31>}, {pipeline_mode = #tpu.pipeline_mode<synchronous>, transform_indices = @transform_12, window_bounds = array<i64: 31, 10>}, {pipeline_mode = #tpu.pipeline_mode<synchronous>, transform_indices = @transform_13, window_bounds = array<i64: 64, 1>}, {pipeline_mode = #tpu.pipeline_mode<synchronous>, transform_indices = @transform_14, window_bounds = array<i64: 1, 64>}, {transform_indices = @transform_15, window_bounds = array<i64: 1, 1, 10>}]} {
    %cst = arith.constant 0.000000e+00 : f32
    %0 = vector.broadcast %cst : f32 to vector<88x10xf32>
    %c16 = arith.constant 16 : index
    %c0 = arith.constant 0 : index
    %1 = vector.load %arg20[%c16, %c0] : memref<104x10xf32, #tpu.memory_space<vmem>>, vector<88x10xf32>
    tpu.vector_store %arg20[%c16, %c0], %0 {strides = array<i32>} : memref<104x10xf32, #tpu.memory_space<vmem>>, vector<88x10xf32>,
    %cst_0 = arith.constant 0.000000e+00 : f32
    %2 = vector.broadcast %cst_0 : f32 to vector<24x12xf32>
    %c80 = arith.constant 80 : index
    %c0_1 = arith.constant 0 : index
    %3 = vector.load %arg21[%c80, %c0_1] : memref<104x12xf32, #tpu.memory_space<vmem>>, vector<24x12xf32>
    tpu.vector_store %arg21[%c80, %c0_1], %2 {strides = array<i32>} : memref<104x12xf32, #tpu.memory_space<vmem>>, vector<24x12xf32>,
    %cst_2 = arith.constant 0.000000e+00 : f32
    %4 = vector.broadcast %cst_2 : f32 to vector<16x14xf32>
    %c0_3 = arith.constant 0 : index
    %c0_4 = arith.constant 0 : index
    %5 = vector.load %arg22[%c0_3, %c0_4] : memref<104x14xf32, #tpu.memory_space<vmem>>, vector<16x14xf32>
    tpu.vector_store %arg22[%c0_3, %c0_4], %4 {strides = array<i32>} : memref<104x14xf32, #tpu.memory_space<vmem>>, vector<16x14xf32>,
    %cst_5 = arith.constant 0.000000e+00 : f32
    %6 = vector.broadcast %cst_5 : f32 to vector<24x14xf32>
    %c80_6 = arith.constant 80 : index
    %c0_7 = arith.constant 0 : index
    %7 = vector.load %arg22[%c80_6, %c0_7] : memref<104x14xf32, #tpu.memory_space<vmem>>, vector<24x14xf32>
    tpu.vector_store %arg22[%c80_6, %c0_7], %6 {strides = array<i32>} : memref<104x14xf32, #tpu.memory_space<vmem>>, vector<24x14xf32>,
    %c0_8 = arith.constant 0 : index
    %c0_9 = arith.constant 0 : index
    %8 = vector.load %arg1[%c0_8, %c0_9] : memref<256x9xf32, #tpu.memory_space<vmem>>, vector<256x9xf32>
    %c0_10 = arith.constant 0 : index
    %c0_11 = arith.constant 0 : index
    %9 = vector.load %arg2[%c0_10, %c0_11] : memref<9x8xf32, #tpu.memory_space<vmem>>, vector<9x8xf32>
    %cst_12 = arith.constant dense<0.000000e+00> : vector<256x8xf32>
    %10 = tpu.matmul %8, %9, %cst_12 {dimension_numbers = #tpu.dot_dimension_numbers<[1], [0], [0], [1], [0, 0, 1, 1], [], []>} : vector<256x9xf32>, vector<9x8xf32>, vector<256x8xf32> -> vector<256x8xf32>
    %c0_13 = arith.constant 0 : index
    %c0_14 = arith.constant 0 : index
    %11 = vector.load %arg3[%c0_13, %c0_14] : memref<1x8xf32, #tpu.memory_space<vmem>>, vector<1x8xf32>
    %12 = vector.broadcast %11 : vector<1x8xf32> to vector<256x8xf32>
    %13 = arith.addf %10, %12 : vector<256x8xf32>
    %cst_15 = arith.constant 0.000000e+00 : f32
    %14 = vector.broadcast %cst_15 : f32 to vector<256x8xf32>
    %15 = arith.maximumf %13, %14 : vector<256x8xf32>
    %c0_16 = arith.constant 0 : index
    %c0_17 = arith.constant 0 : index
    %16 = vector.load %arg17[%c0_16, %c0_17] : memref<296x8xf32, #tpu.memory_space<vmem>>, vector<256x8xf32>
    tpu.vector_store %arg17[%c0_16, %c0_17], %15 {strides = array<i32>} : memref<296x8xf32, #tpu.memory_space<vmem>>, vector<256x8xf32>,
    %c0_18 = arith.constant 0 : index
    %c0_19 = arith.constant 0 : index
    %17 = vector.load %arg17[%c0_18, %c0_19] : memref<296x8xf32, #tpu.memory_space<vmem>>, vector<264x8xf32>
    %18 = vector.extract_strided_slice %17 {offsets = [0, 0], sizes = [256, 8], strides = [1, 1]} : vector<264x8xf32> to vector<256x8xf32>
    %c0_20 = arith.constant 0 : index
    %c0_21 = arith.constant 0 : index
    %c0_22 = arith.constant 0 : index
    %19 = vector.load %arg4[%c0_20, %c0_21, %c0_22] : memref<9x8x11xf32, #tpu.memory_space<vmem>>, vector<1x8x11xf32>
    %20 = vector.shape_cast %19 : vector<1x8x11xf32> to vector<8x11xf32>
    %cst_23 = arith.constant dense<0.000000e+00> : vector<256x11xf32>
    %21 = tpu.matmul %18, %20, %cst_23 {dimension_numbers = #tpu.dot_dimension_numbers<[1], [0], [0], [1], [0, 0, 1, 1], [], []>} : vector<256x8xf32>, vector<8x11xf32>, vector<256x11xf32> -> vector<256x11xf32>
    %22 = vector.extract_strided_slice %17 {offsets = [1, 0], sizes = [256, 8], strides = [1, 1]} : vector<264x8xf32> to vector<256x8xf32>
    %c1 = arith.constant 1 : index
    %c0_24 = arith.constant 0 : index
    %c0_25 = arith.constant 0 : index
    %23 = vector.load %arg4[%c1, %c0_24, %c0_25] : memref<9x8x11xf32, #tpu.memory_space<vmem>>, vector<1x8x11xf32>
    %24 = vector.shape_cast %23 : vector<1x8x11xf32> to vector<8x11xf32>
    %cst_26 = arith.constant dense<0.000000e+00> : vector<256x11xf32>
    %25 = tpu.matmul %22, %24, %cst_26 {dimension_numbers = #tpu.dot_dimension_numbers<[1], [0], [0], [1], [0, 0, 1, 1], [], []>} : vector<256x8xf32>, vector<8x11xf32>, vector<256x11xf32> -> vector<256x11xf32>
    %26 = arith.addf %21, %25 : vector<256x11xf32>
    %27 = vector.extract_strided_slice %17 {offsets = [2, 0], sizes = [256, 8], strides = [1, 1]} : vector<264x8xf32> to vector<256x8xf32>
    %c2 = arith.constant 2 : index
    %c0_27 = arith.constant 0 : index
    %c0_28 = arith.constant 0 : index
    %28 = vector.load %arg4[%c2, %c0_27, %c0_28] : memref<9x8x11xf32, #tpu.memory_space<vmem>>, vector<1x8x11xf32>
    %29 = vector.shape_cast %28 : vector<1x8x11xf32> to vector<8x11xf32>
    %cst_29 = arith.constant dense<0.000000e+00> : vector<256x11xf32>
    %30 = tpu.matmul %27, %29, %cst_29 {dimension_numbers = #tpu.dot_dimension_numbers<[1], [0], [0], [1], [0, 0, 1, 1], [], []>} : vector<256x8xf32>, vector<8x11xf32>, vector<256x11xf32> -> vector<256x11xf32>
    %31 = arith.addf %26, %30 : vector<256x11xf32>
    %c16_30 = arith.constant 16 : index
    %c0_31 = arith.constant 0 : index
    %32 = vector.load %arg17[%c16_30, %c0_31] : memref<296x8xf32, #tpu.memory_space<vmem>>, vector<264x8xf32>
    %33 = vector.extract_strided_slice %32 {offsets = [0, 0], sizes = [256, 8], strides = [1, 1]} : vector<264x8xf32> to vector<256x8xf32>
    %c3 = arith.constant 3 : index
    %c0_32 = arith.constant 0 : index
    %c0_33 = arith.constant 0 : index
    %34 = vector.load %arg4[%c3, %c0_32, %c0_33] : memref<9x8x11xf32, #tpu.memory_space<vmem>>, vector<1x8x11xf32>
    %35 = vector.shape_cast %34 : vector<1x8x11xf32> to vector<8x11xf32>
    %cst_34 = arith.constant dense<0.000000e+00> : vector<256x11xf32>
    %36 = tpu.matmul %33, %35, %cst_34 {dimension_numbers = #tpu.dot_dimension_numbers<[1], [0], [0], [1], [0, 0, 1, 1], [], []>} : vector<256x8xf32>, vector<8x11xf32>, vector<256x11xf32> -> vector<256x11xf32>
    %37 = arith.addf %31, %36 : vector<256x11xf32>
    %38 = vector.extract_strided_slice %32 {offsets = [1, 0], sizes = [256, 8], strides = [1, 1]} : vector<264x8xf32> to vector<256x8xf32>
    %c4 = arith.constant 4 : index
    %c0_35 = arith.constant 0 : index
    %c0_36 = arith.constant 0 : index
    %39 = vector.load %arg4[%c4, %c0_35, %c0_36] : memref<9x8x11xf32, #tpu.memory_space<vmem>>, vector<1x8x11xf32>
    %40 = vector.shape_cast %39 : vector<1x8x11xf32> to vector<8x11xf32>
    %cst_37 = arith.constant dense<0.000000e+00> : vector<256x11xf32>
    %41 = tpu.matmul %38, %40, %cst_37 {dimension_numbers = #tpu.dot_dimension_numbers<[1], [0], [0], [1], [0, 0, 1, 1], [], []>} : vector<256x8xf32>, vector<8x11xf32>, vector<256x11xf32> -> vector<256x11xf32>
    %42 = arith.addf %37, %41 : vector<256x11xf32>
    %43 = vector.extract_strided_slice %32 {offsets = [2, 0], sizes = [256, 8], strides = [1, 1]} : vector<264x8xf32> to vector<256x8xf32>
    %c5 = arith.constant 5 : index
    %c0_38 = arith.constant 0 : index
    %c0_39 = arith.constant 0 : index
    %44 = vector.load %arg4[%c5, %c0_38, %c0_39] : memref<9x8x11xf32, #tpu.memory_space<vmem>>, vector<1x8x11xf32>
    %45 = vector.shape_cast %44 : vector<1x8x11xf32> to vector<8x11xf32>
    %cst_40 = arith.constant dense<0.000000e+00> : vector<256x11xf32>
    %46 = tpu.matmul %43, %45, %cst_40 {dimension_numbers = #tpu.dot_dimension_numbers<[1], [0], [0], [1], [0, 0, 1, 1], [], []>} : vector<256x8xf32>, vector<8x11xf32>, vector<256x11xf32> -> vector<256x11xf32>
    %47 = arith.addf %42, %46 : vector<256x11xf32>
    %c32 = arith.constant 32 : index
    %c0_41 = arith.constant 0 : index
    %48 = vector.load %arg17[%c32, %c0_41] : memref<296x8xf32, #tpu.memory_space<vmem>>, vector<264x8xf32>
    %49 = vector.extract_strided_slice %48 {offsets = [0, 0], sizes = [256, 8], strides = [1, 1]} : vector<264x8xf32> to vector<256x8xf32>
    %c6 = arith.constant 6 : index
    %c0_42 = arith.constant 0 : index
    %c0_43 = arith.constant 0 : index
    %50 = vector.load %arg4[%c6, %c0_42, %c0_43] : memref<9x8x11xf32, #tpu.memory_space<vmem>>, vector<1x8x11xf32>
    %51 = vector.shape_cast %50 : vector<1x8x11xf32> to vector<8x11xf32>
    %cst_44 = arith.constant dense<0.000000e+00> : vector<256x11xf32>
    %52 = tpu.matmul %49, %51, %cst_44 {dimension_numbers = #tpu.dot_dimension_numbers<[1], [0], [0], [1], [0, 0, 1, 1], [], []>} : vector<256x8xf32>, vector<8x11xf32>, vector<256x11xf32> -> vector<256x11xf32>
    %53 = arith.addf %47, %52 : vector<256x11xf32>
    %54 = vector.extract_strided_slice %48 {offsets = [1, 0], sizes = [256, 8], strides = [1, 1]} : vector<264x8xf32> to vector<256x8xf32>
    %c7 = arith.constant 7 : index
    %c0_45 = arith.constant 0 : index
    %c0_46 = arith.constant 0 : index
    %55 = vector.load %arg4[%c7, %c0_45, %c0_46] : memref<9x8x11xf32, #tpu.memory_space<vmem>>, vector<1x8x11xf32>
    %56 = vector.shape_cast %55 : vector<1x8x11xf32> to vector<8x11xf32>
    %cst_47 = arith.constant dense<0.000000e+00> : vector<256x11xf32>
    %57 = tpu.matmul %54, %56, %cst_47 {dimension_numbers = #tpu.dot_dimension_numbers<[1], [0], [0], [1], [0, 0, 1, 1], [], []>} : vector<256x8xf32>, vector<8x11xf32>, vector<256x11xf32> -> vector<256x11xf32>
    %58 = arith.addf %53, %57 : vector<256x11xf32>
    %59 = vector.extract_strided_slice %48 {offsets = [2, 0], sizes = [256, 8], strides = [1, 1]} : vector<264x8xf32> to vector<256x8xf32>
    %c8 = arith.constant 8 : index
    %c0_48 = arith.constant 0 : index
    %c0_49 = arith.constant 0 : index
    %60 = vector.load %arg4[%c8, %c0_48, %c0_49] : memref<9x8x11xf32, #tpu.memory_space<vmem>>, vector<1x8x11xf32>
    %61 = vector.shape_cast %60 : vector<1x8x11xf32> to vector<8x11xf32>
    %cst_50 = arith.constant dense<0.000000e+00> : vector<256x11xf32>
    %62 = tpu.matmul %59, %61, %cst_50 {dimension_numbers = #tpu.dot_dimension_numbers<[1], [0], [0], [1], [0, 0, 1, 1], [], []>} : vector<256x8xf32>, vector<8x11xf32>, vector<256x11xf32> -> vector<256x11xf32>
    %63 = arith.addf %58, %62 : vector<256x11xf32>
    %c0_51 = arith.constant 0 : index
    %c0_52 = arith.constant 0 : index
    %64 = vector.load %arg5[%c0_51, %c0_52] : memref<1x11xf32, #tpu.memory_space<vmem>>, vector<1x11xf32>
    %65 = vector.broadcast %64 : vector<1x11xf32> to vector<256x11xf32>
    %66 = arith.addf %63, %65 : vector<256x11xf32>
    %cst_53 = arith.constant 0.000000e+00 : f32
    %67 = vector.broadcast %cst_53 : f32 to vector<256x11xf32>
    %68 = arith.maximumf %66, %67 : vector<256x11xf32>
    %c0_54 = arith.constant 0 : index
    %c0_55 = arith.constant 0 : index
    %69 = vector.load %arg18[%c0_54, %c0_55] : memref<296x11xf32, #tpu.memory_space<vmem>>, vector<256x11xf32>
    tpu.vector_store %arg18[%c0_54, %c0_55], %68 {strides = array<i32>} : memref<296x11xf32, #tpu.memory_space<vmem>>, vector<256x11xf32>,
    %c0_56 = arith.constant 0 : index
    %c0_57 = arith.constant 0 : index
    %70 = vector.load %arg18[%c0_56, %c0_57] : memref<296x11xf32, #tpu.memory_space<vmem>>, vector<256x11xf32>
    %c0_58 = arith.constant 0 : index
    %c0_59 = arith.constant 0 : index
    %71 = vector.load %arg6[%c0_58, %c0_59] : memref<11x10xf32, #tpu.memory_space<vmem>>, vector<11x10xf32>
    %cst_60 = arith.constant dense<0.000000e+00> : vector<256x10xf32>
    %72 = tpu.matmul %70, %71, %cst_60 {dimension_numbers = #tpu.dot_dimension_numbers<[1], [0], [0], [1], [0, 0, 1, 1], [], []>} : vector<256x11xf32>, vector<11x10xf32>, vector<256x10xf32> -> vector<256x10xf32>
    %c0_61 = arith.constant 0 : index
    %c0_62 = arith.constant 0 : index
    %73 = vector.load %arg19[%c0_61, %c0_62] : memref<296x10xf32, #tpu.memory_space<vmem>>, vector<256x10xf32>
    tpu.vector_store %arg19[%c0_61, %c0_62], %72 {strides = array<i32>} : memref<296x10xf32, #tpu.memory_space<vmem>>, vector<256x10xf32>,
    %c0_63 = arith.constant 0 : index
    %c0_64 = arith.constant 0 : index
    %74 = tpu.strided_load %arg19[%c0_63, %c0_64] {strides = array<i32: 2, 1>} : memref<296x10xf32, #tpu.memory_space<vmem>>, vector<6x10xf32>
    %c1_65 = arith.constant 1 : index
    %c0_66 = arith.constant 0 : index
    %75 = tpu.strided_load %arg19[%c1_65, %c0_66] {strides = array<i32: 2, 1>} : memref<296x10xf32, #tpu.memory_space<vmem>>, vector<6x10xf32>
    %c16_67 = arith.constant 16 : index
    %c0_68 = arith.constant 0 : index
    %76 = tpu.strided_load %arg19[%c16_67, %c0_68] {strides = array<i32: 2, 1>} : memref<296x10xf32, #tpu.memory_space<vmem>>, vector<6x10xf32>
    %c17 = arith.constant 17 : index
    %c0_69 = arith.constant 0 : index
    %77 = tpu.strided_load %arg19[%c17, %c0_69] {strides = array<i32: 2, 1>} : memref<296x10xf32, #tpu.memory_space<vmem>>, vector<6x10xf32>
    %78 = arith.maximumf %74, %75 : vector<6x10xf32>
    %79 = arith.maximumf %76, %77 : vector<6x10xf32>
    %80 = arith.maximumf %78, %79 : vector<6x10xf32>
    %c25 = arith.constant 25 : index
    %c0_70 = arith.constant 0 : index
    %81 = vector.load %arg20[%c25, %c0_70] : memref<104x10xf32, #tpu.memory_space<vmem>>, vector<6x10xf32>
    tpu.vector_store %arg20[%c25, %c0_70], %80 {strides = array<i32>} : memref<104x10xf32, #tpu.memory_space<vmem>>, vector<6x10xf32>,
    %c32_71 = arith.constant 32 : index
    %c0_72 = arith.constant 0 : index
    %82 = tpu.strided_load %arg19[%c32_71, %c0_72] {strides = array<i32: 2, 1>} : memref<296x10xf32, #tpu.memory_space<vmem>>, vector<6x10xf32>
    %c33 = arith.constant 33 : index
    %c0_73 = arith.constant 0 : index
    %83 = tpu.strided_load %arg19[%c33, %c0_73] {strides = array<i32: 2, 1>} : memref<296x10xf32, #tpu.memory_space<vmem>>, vector<6x10xf32>
    %c48 = arith.constant 48 : index
    %c0_74 = arith.constant 0 : index
    %84 = tpu.strided_load %arg19[%c48, %c0_74] {strides = array<i32: 2, 1>} : memref<296x10xf32, #tpu.memory_space<vmem>>, vector<6x10xf32>
    %c49 = arith.constant 49 : index
    %c0_75 = arith.constant 0 : index
    %85 = tpu.strided_load %arg19[%c49, %c0_75] {strides = array<i32: 2, 1>} : memref<296x10xf32, #tpu.memory_space<vmem>>, vector<6x10xf32>
    %86 = arith.maximumf %82, %83 : vector<6x10xf32>
    %87 = arith.maximumf %84, %85 : vector<6x10xf32>
    %88 = arith.maximumf %86, %87 : vector<6x10xf32>
    %c33_76 = arith.constant 33 : index
    %c0_77 = arith.constant 0 : index
    %89 = vector.load %arg20[%c33_76, %c0_77] : memref<104x10xf32, #tpu.memory_space<vmem>>, vector<6x10xf32>
    tpu.vector_store %arg20[%c33_76, %c0_77], %88 {strides = array<i32>} : memref<104x10xf32, #tpu.memory_space<vmem>>, vector<6x10xf32>,
    %c64 = arith.constant 64 : index
    %c0_78 = arith.constant 0 : index
    %90 = tpu.strided_load %arg19[%c64, %c0_78] {strides = array<i32: 2, 1>} : memref<296x10xf32, #tpu.memory_space<vmem>>, vector<6x10xf32>
    %c65 = arith.constant 65 : index
    %c0_79 = arith.constant 0 : index
    %91 = tpu.strided_load %arg19[%c65, %c0_79] {strides = array<i32: 2, 1>} : memref<296x10xf32, #tpu.memory_space<vmem>>, vector<6x10xf32>
    %c80_80 = arith.constant 80 : index
    %c0_81 = arith.constant 0 : index
    %92 = tpu.strided_load %arg19[%c80_80, %c0_81] {strides = array<i32: 2, 1>} : memref<296x10xf32, #tpu.memory_space<vmem>>, vector<6x10xf32>
    %c81 = arith.constant 81 : index
    %c0_82 = arith.constant 0 : index
    %93 = tpu.strided_load %arg19[%c81, %c0_82] {strides = array<i32: 2, 1>} : memref<296x10xf32, #tpu.memory_space<vmem>>, vector<6x10xf32>
    %94 = arith.maximumf %90, %91 : vector<6x10xf32>
    %95 = arith.maximumf %92, %93 : vector<6x10xf32>
    %96 = arith.maximumf %94, %95 : vector<6x10xf32>
    %c41 = arith.constant 41 : index
    %c0_83 = arith.constant 0 : index
    %97 = vector.load %arg20[%c41, %c0_83] : memref<104x10xf32, #tpu.memory_space<vmem>>, vector<6x10xf32>
    tpu.vector_store %arg20[%c41, %c0_83], %96 {strides = array<i32>} : memref<104x10xf32, #tpu.memory_space<vmem>>, vector<6x10xf32>,
    %c96 = arith.constant 96 : index
    %c0_84 = arith.constant 0 : index
    %98 = tpu.strided_load %arg19[%c96, %c0_84] {strides = array<i32: 2, 1>} : memref<296x10xf32, #tpu.memory_space<vmem>>, vector<6x10xf32>
    %c97 = arith.constant 97 : index
    %c0_85 = arith.constant 0 : index
    %99 = tpu.strided_load %arg19[%c97, %c0_85] {strides = array<i32: 2, 1>} : memref<296x10xf32, #tpu.memory_space<vmem>>, vector<6x10xf32>
    %c112 = arith.constant 112 : index
    %c0_86 = arith.constant 0 : index
    %100 = tpu.strided_load %arg19[%c112, %c0_86] {strides = array<i32: 2, 1>} : memref<296x10xf32, #tpu.memory_space<vmem>>, vector<6x10xf32>
    %c113 = arith.constant 113 : index
    %c0_87 = arith.constant 0 : index
    %101 = tpu.strided_load %arg19[%c113, %c0_87] {strides = array<i32: 2, 1>} : memref<296x10xf32, #tpu.memory_space<vmem>>, vector<6x10xf32>
    %102 = arith.maximumf %98, %99 : vector<6x10xf32>
    %103 = arith.maximumf %100, %101 : vector<6x10xf32>
    %104 = arith.maximumf %102, %103 : vector<6x10xf32>
    %c49_88 = arith.constant 49 : index
    %c0_89 = arith.constant 0 : index
    %105 = vector.load %arg20[%c49_88, %c0_89] : memref<104x10xf32, #tpu.memory_space<vmem>>, vector<6x10xf32>
    tpu.vector_store %arg20[%c49_88, %c0_89], %104 {strides = array<i32>} : memref<104x10xf32, #tpu.memory_space<vmem>>, vector<6x10xf32>,
    %c128 = arith.constant 128 : index
    %c0_90 = arith.constant 0 : index
    %106 = tpu.strided_load %arg19[%c128, %c0_90] {strides = array<i32: 2, 1>} : memref<296x10xf32, #tpu.memory_space<vmem>>, vector<6x10xf32>
    %c129 = arith.constant 129 : index
    %c0_91 = arith.constant 0 : index
    %107 = tpu.strided_load %arg19[%c129, %c0_91] {strides = array<i32: 2, 1>} : memref<296x10xf32, #tpu.memory_space<vmem>>, vector<6x10xf32>
    %c144 = arith.constant 144 : index
    %c0_92 = arith.constant 0 : index
    %108 = tpu.strided_load %arg19[%c144, %c0_92] {strides = array<i32: 2, 1>} : memref<296x10xf32, #tpu.memory_space<vmem>>, vector<6x10xf32>
    %c145 = arith.constant 145 : index
    %c0_93 = arith.constant 0 : index
    %109 = tpu.strided_load %arg19[%c145, %c0_93] {strides = array<i32: 2, 1>} : memref<296x10xf32, #tpu.memory_space<vmem>>, vector<6x10xf32>
    %110 = arith.maximumf %106, %107 : vector<6x10xf32>
    %111 = arith.maximumf %108, %109 : vector<6x10xf32>
    %112 = arith.maximumf %110, %111 : vector<6x10xf32>
    %c57 = arith.constant 57 : index
    %c0_94 = arith.constant 0 : index
    %113 = vector.load %arg20[%c57, %c0_94] : memref<104x10xf32, #tpu.memory_space<vmem>>, vector<6x10xf32>
    tpu.vector_store %arg20[%c57, %c0_94], %112 {strides = array<i32>} : memref<104x10xf32, #tpu.memory_space<vmem>>, vector<6x10xf32>,
    %c160 = arith.constant 160 : index
    %c0_95 = arith.constant 0 : index
    %114 = tpu.strided_load %arg19[%c160, %c0_95] {strides = array<i32: 2, 1>} : memref<296x10xf32, #tpu.memory_space<vmem>>, vector<6x10xf32>
    %c161 = arith.constant 161 : index
    %c0_96 = arith.constant 0 : index
    %115 = tpu.strided_load %arg19[%c161, %c0_96] {strides = array<i32: 2, 1>} : memref<296x10xf32, #tpu.memory_space<vmem>>, vector<6x10xf32>
    %c176 = arith.constant 176 : index
    %c0_97 = arith.constant 0 : index
    %116 = tpu.strided_load %arg19[%c176, %c0_97] {strides = array<i32: 2, 1>} : memref<296x10xf32, #tpu.memory_space<vmem>>, vector<6x10xf32>
    %c177 = arith.constant 177 : index
    %c0_98 = arith.constant 0 : index
    %117 = tpu.strided_load %arg19[%c177, %c0_98] {strides = array<i32: 2, 1>} : memref<296x10xf32, #tpu.memory_space<vmem>>, vector<6x10xf32>
    %118 = arith.maximumf %114, %115 : vector<6x10xf32>
    %119 = arith.maximumf %116, %117 : vector<6x10xf32>
    %120 = arith.maximumf %118, %119 : vector<6x10xf32>
    %c65_99 = arith.constant 65 : index
    %c0_100 = arith.constant 0 : index
    %121 = vector.load %arg20[%c65_99, %c0_100] : memref<104x10xf32, #tpu.memory_space<vmem>>, vector<6x10xf32>
    tpu.vector_store %arg20[%c65_99, %c0_100], %120 {strides = array<i32>} : memref<104x10xf32, #tpu.memory_space<vmem>>, vector<6x10xf32>,
    %c16_101 = arith.constant 16 : index
    %c0_102 = arith.constant 0 : index
    %122 = vector.load %arg20[%c16_101, %c0_102] : memref<104x10xf32, #tpu.memory_space<vmem>>, vector<72x10xf32>
    %123 = vector.extract_strided_slice %122 {offsets = [0, 0], sizes = [64, 10], strides = [1, 1]} : vector<72x10xf32> to vector<64x10xf32>
    %c0_103 = arith.constant 0 : index
    %c0_104 = arith.constant 0 : index
    %c0_105 = arith.constant 0 : index
    %124 = vector.load %arg7[%c0_103, %c0_104, %c0_105] : memref<9x10x12xf32, #tpu.memory_space<vmem>>, vector<1x10x12xf32>
    %125 = vector.shape_cast %124 : vector<1x10x12xf32> to vector<10x12xf32>
    %cst_106 = arith.constant dense<0.000000e+00> : vector<64x12xf32>
    %126 = tpu.matmul %123, %125, %cst_106 {dimension_numbers = #tpu.dot_dimension_numbers<[1], [0], [0], [1], [0, 0, 1, 1], [], []>} : vector<64x10xf32>, vector<10x12xf32>, vector<64x12xf32> -> vector<64x12xf32>
    %127 = vector.extract_strided_slice %122 {offsets = [1, 0], sizes = [64, 10], strides = [1, 1]} : vector<72x10xf32> to vector<64x10xf32>
    %c1_107 = arith.constant 1 : index
    %c0_108 = arith.constant 0 : index
    %c0_109 = arith.constant 0 : index
    %128 = vector.load %arg7[%c1_107, %c0_108, %c0_109] : memref<9x10x12xf32, #tpu.memory_space<vmem>>, vector<1x10x12xf32>
    %129 = vector.shape_cast %128 : vector<1x10x12xf32> to vector<10x12xf32>
    %cst_110 = arith.constant dense<0.000000e+00> : vector<64x12xf32>
    %130 = tpu.matmul %127, %129, %cst_110 {dimension_numbers = #tpu.dot_dimension_numbers<[1], [0], [0], [1], [0, 0, 1, 1], [], []>} : vector<64x10xf32>, vector<10x12xf32>, vector<64x12xf32> -> vector<64x12xf32>
    %131 = arith.addf %126, %130 : vector<64x12xf32>
    %132 = vector.extract_strided_slice %122 {offsets = [2, 0], sizes = [64, 10], strides = [1, 1]} : vector<72x10xf32> to vector<64x10xf32>
    %c2_111 = arith.constant 2 : index
    %c0_112 = arith.constant 0 : index
    %c0_113 = arith.constant 0 : index
    %133 = vector.load %arg7[%c2_111, %c0_112, %c0_113] : memref<9x10x12xf32, #tpu.memory_space<vmem>>, vector<1x10x12xf32>
    %134 = vector.shape_cast %133 : vector<1x10x12xf32> to vector<10x12xf32>
    %cst_114 = arith.constant dense<0.000000e+00> : vector<64x12xf32>
    %135 = tpu.matmul %132, %134, %cst_114 {dimension_numbers = #tpu.dot_dimension_numbers<[1], [0], [0], [1], [0, 0, 1, 1], [], []>} : vector<64x10xf32>, vector<10x12xf32>, vector<64x12xf32> -> vector<64x12xf32>
    %136 = arith.addf %131, %135 : vector<64x12xf32>
    %c24 = arith.constant 24 : index
    %c0_115 = arith.constant 0 : index
    %137 = vector.load %arg20[%c24, %c0_115] : memref<104x10xf32, #tpu.memory_space<vmem>>, vector<72x10xf32>
    %138 = vector.extract_strided_slice %137 {offsets = [0, 0], sizes = [64, 10], strides = [1, 1]} : vector<72x10xf32> to vector<64x10xf32>
    %c3_116 = arith.constant 3 : index
    %c0_117 = arith.constant 0 : index
    %c0_118 = arith.constant 0 : index
    %139 = vector.load %arg7[%c3_116, %c0_117, %c0_118] : memref<9x10x12xf32, #tpu.memory_space<vmem>>, vector<1x10x12xf32>
    %140 = vector.shape_cast %139 : vector<1x10x12xf32> to vector<10x12xf32>
    %cst_119 = arith.constant dense<0.000000e+00> : vector<64x12xf32>
    %141 = tpu.matmul %138, %140, %cst_119 {dimension_numbers = #tpu.dot_dimension_numbers<[1], [0], [0], [1], [0, 0, 1, 1], [], []>} : vector<64x10xf32>, vector<10x12xf32>, vector<64x12xf32> -> vector<64x12xf32>
    %142 = arith.addf %136, %141 : vector<64x12xf32>
    %143 = vector.extract_strided_slice %137 {offsets = [1, 0], sizes = [64, 10], strides = [1, 1]} : vector<72x10xf32> to vector<64x10xf32>
    %c4_120 = arith.constant 4 : index
    %c0_121 = arith.constant 0 : index
    %c0_122 = arith.constant 0 : index
    %144 = vector.load %arg7[%c4_120, %c0_121, %c0_122] : memref<9x10x12xf32, #tpu.memory_space<vmem>>, vector<1x10x12xf32>
    %145 = vector.shape_cast %144 : vector<1x10x12xf32> to vector<10x12xf32>
    %cst_123 = arith.constant dense<0.000000e+00> : vector<64x12xf32>
    %146 = tpu.matmul %143, %145, %cst_123 {dimension_numbers = #tpu.dot_dimension_numbers<[1], [0], [0], [1], [0, 0, 1, 1], [], []>} : vector<64x10xf32>, vector<10x12xf32>, vector<64x12xf32> -> vector<64x12xf32>
    %147 = arith.addf %142, %146 : vector<64x12xf32>
    %148 = vector.extract_strided_slice %137 {offsets = [2, 0], sizes = [64, 10], strides = [1, 1]} : vector<72x10xf32> to vector<64x10xf32>
    %c5_124 = arith.constant 5 : index
    %c0_125 = arith.constant 0 : index
    %c0_126 = arith.constant 0 : index
    %149 = vector.load %arg7[%c5_124, %c0_125, %c0_126] : memref<9x10x12xf32, #tpu.memory_space<vmem>>, vector<1x10x12xf32>
    %150 = vector.shape_cast %149 : vector<1x10x12xf32> to vector<10x12xf32>
    %cst_127 = arith.constant dense<0.000000e+00> : vector<64x12xf32>
    %151 = tpu.matmul %148, %150, %cst_127 {dimension_numbers = #tpu.dot_dimension_numbers<[1], [0], [0], [1], [0, 0, 1, 1], [], []>} : vector<64x10xf32>, vector<10x12xf32>, vector<64x12xf32> -> vector<64x12xf32>
    %152 = arith.addf %147, %151 : vector<64x12xf32>
    %c32_128 = arith.constant 32 : index
    %c0_129 = arith.constant 0 : index
    %153 = vector.load %arg20[%c32_128, %c0_129] : memref<104x10xf32, #tpu.memory_space<vmem>>, vector<72x10xf32>
    %154 = vector.extract_strided_slice %153 {offsets = [0, 0], sizes = [64, 10], strides = [1, 1]} : vector<72x10xf32> to vector<64x10xf32>
    %c6_130 = arith.constant 6 : index
    %c0_131 = arith.constant 0 : index
    %c0_132 = arith.constant 0 : index
    %155 = vector.load %arg7[%c6_130, %c0_131, %c0_132] : memref<9x10x12xf32, #tpu.memory_space<vmem>>, vector<1x10x12xf32>
    %156 = vector.shape_cast %155 : vector<1x10x12xf32> to vector<10x12xf32>
    %cst_133 = arith.constant dense<0.000000e+00> : vector<64x12xf32>
    %157 = tpu.matmul %154, %156, %cst_133 {dimension_numbers = #tpu.dot_dimension_numbers<[1], [0], [0], [1], [0, 0, 1, 1], [], []>} : vector<64x10xf32>, vector<10x12xf32>, vector<64x12xf32> -> vector<64x12xf32>
    %158 = arith.addf %152, %157 : vector<64x12xf32>
    %159 = vector.extract_strided_slice %153 {offsets = [1, 0], sizes = [64, 10], strides = [1, 1]} : vector<72x10xf32> to vector<64x10xf32>
    %c7_134 = arith.constant 7 : index
    %c0_135 = arith.constant 0 : index
    %c0_136 = arith.constant 0 : index
    %160 = vector.load %arg7[%c7_134, %c0_135, %c0_136] : memref<9x10x12xf32, #tpu.memory_space<vmem>>, vector<1x10x12xf32>
    %161 = vector.shape_cast %160 : vector<1x10x12xf32> to vector<10x12xf32>
    %cst_137 = arith.constant dense<0.000000e+00> : vector<64x12xf32>
    %162 = tpu.matmul %159, %161, %cst_137 {dimension_numbers = #tpu.dot_dimension_numbers<[1], [0], [0], [1], [0, 0, 1, 1], [], []>} : vector<64x10xf32>, vector<10x12xf32>, vector<64x12xf32> -> vector<64x12xf32>
    %163 = arith.addf %158, %162 : vector<64x12xf32>
    %164 = vector.extract_strided_slice %153 {offsets = [2, 0], sizes = [64, 10], strides = [1, 1]} : vector<72x10xf32> to vector<64x10xf32>
    %c8_138 = arith.constant 8 : index
    %c0_139 = arith.constant 0 : index
    %c0_140 = arith.constant 0 : index
    %165 = vector.load %arg7[%c8_138, %c0_139, %c0_140] : memref<9x10x12xf32, #tpu.memory_space<vmem>>, vector<1x10x12xf32>
    %166 = vector.shape_cast %165 : vector<1x10x12xf32> to vector<10x12xf32>
    %cst_141 = arith.constant dense<0.000000e+00> : vector<64x12xf32>
    %167 = tpu.matmul %164, %166, %cst_141 {dimension_numbers = #tpu.dot_dimension_numbers<[1], [0], [0], [1], [0, 0, 1, 1], [], []>} : vector<64x10xf32>, vector<10x12xf32>, vector<64x12xf32> -> vector<64x12xf32>
    %168 = arith.addf %163, %167 : vector<64x12xf32>
    %c0_142 = arith.constant 0 : index
    %c0_143 = arith.constant 0 : index
    %169 = vector.load %arg8[%c0_142, %c0_143] : memref<1x12xf32, #tpu.memory_space<vmem>>, vector<1x12xf32>
    %170 = vector.broadcast %169 : vector<1x12xf32> to vector<64x12xf32>
    %171 = arith.addf %168, %170 : vector<64x12xf32>
    %cst_144 = arith.constant 0.000000e+00 : f32
    %172 = vector.broadcast %cst_144 : f32 to vector<64x12xf32>
    %173 = arith.maximumf %171, %172 : vector<64x12xf32>
    %c16_145 = arith.constant 16 : index
    %c0_146 = arith.constant 0 : index
    %174 = vector.load %arg21[%c16_145, %c0_146] : memref<104x12xf32, #tpu.memory_space<vmem>>, vector<64x12xf32>
    tpu.vector_store %arg21[%c16_145, %c0_146], %173 {strides = array<i32>} : memref<104x12xf32, #tpu.memory_space<vmem>>, vector<64x12xf32>,
    %c16_147 = arith.constant 16 : index
    %c0_148 = arith.constant 0 : index
    %175 = vector.load %arg21[%c16_147, %c0_148] : memref<104x12xf32, #tpu.memory_space<vmem>>, vector<72x12xf32>
    %176 = vector.extract_strided_slice %175 {offsets = [0, 0], sizes = [64, 12], strides = [1, 1]} : vector<72x12xf32> to vector<64x12xf32>
    %c0_149 = arith.constant 0 : index
    %c0_150 = arith.constant 0 : index
    %c0_151 = arith.constant 0 : index
    %177 = vector.load %arg9[%c0_149, %c0_150, %c0_151] : memref<9x12x14xf32, #tpu.memory_space<vmem>>, vector<1x12x14xf32>
    %178 = vector.shape_cast %177 : vector<1x12x14xf32> to vector<12x14xf32>
    %cst_152 = arith.constant dense<0.000000e+00> : vector<64x14xf32>
    %179 = tpu.matmul %176, %178, %cst_152 {dimension_numbers = #tpu.dot_dimension_numbers<[1], [0], [0], [1], [0, 0, 1, 1], [], []>} : vector<64x12xf32>, vector<12x14xf32>, vector<64x14xf32> -> vector<64x14xf32>
    %180 = vector.extract_strided_slice %175 {offsets = [1, 0], sizes = [64, 12], strides = [1, 1]} : vector<72x12xf32> to vector<64x12xf32>
    %c1_153 = arith.constant 1 : index
    %c0_154 = arith.constant 0 : index
    %c0_155 = arith.constant 0 : index
    %181 = vector.load %arg9[%c1_153, %c0_154, %c0_155] : memref<9x12x14xf32, #tpu.memory_space<vmem>>, vector<1x12x14xf32>
    %182 = vector.shape_cast %181 : vector<1x12x14xf32> to vector<12x14xf32>
    %cst_156 = arith.constant dense<0.000000e+00> : vector<64x14xf32>
    %183 = tpu.matmul %180, %182, %cst_156 {dimension_numbers = #tpu.dot_dimension_numbers<[1], [0], [0], [1], [0, 0, 1, 1], [], []>} : vector<64x12xf32>, vector<12x14xf32>, vector<64x14xf32> -> vector<64x14xf32>
    %184 = arith.addf %179, %183 : vector<64x14xf32>
    %185 = vector.extract_strided_slice %175 {offsets = [2, 0], sizes = [64, 12], strides = [1, 1]} : vector<72x12xf32> to vector<64x12xf32>
    %c2_157 = arith.constant 2 : index
    %c0_158 = arith.constant 0 : index
    %c0_159 = arith.constant 0 : index
    %186 = vector.load %arg9[%c2_157, %c0_158, %c0_159] : memref<9x12x14xf32, #tpu.memory_space<vmem>>, vector<1x12x14xf32>
    %187 = vector.shape_cast %186 : vector<1x12x14xf32> to vector<12x14xf32>
    %cst_160 = arith.constant dense<0.000000e+00> : vector<64x14xf32>
    %188 = tpu.matmul %185, %187, %cst_160 {dimension_numbers = #tpu.dot_dimension_numbers<[1], [0], [0], [1], [0, 0, 1, 1], [], []>} : vector<64x12xf32>, vector<12x14xf32>, vector<64x14xf32> -> vector<64x14xf32>
    %189 = arith.addf %184, %188 : vector<64x14xf32>
    %c24_161 = arith.constant 24 : index
    %c0_162 = arith.constant 0 : index
    %190 = vector.load %arg21[%c24_161, %c0_162] : memref<104x12xf32, #tpu.memory_space<vmem>>, vector<72x12xf32>
    %191 = vector.extract_strided_slice %190 {offsets = [0, 0], sizes = [64, 12], strides = [1, 1]} : vector<72x12xf32> to vector<64x12xf32>
    %c3_163 = arith.constant 3 : index
    %c0_164 = arith.constant 0 : index
    %c0_165 = arith.constant 0 : index
    %192 = vector.load %arg9[%c3_163, %c0_164, %c0_165] : memref<9x12x14xf32, #tpu.memory_space<vmem>>, vector<1x12x14xf32>
    %193 = vector.shape_cast %192 : vector<1x12x14xf32> to vector<12x14xf32>
    %cst_166 = arith.constant dense<0.000000e+00> : vector<64x14xf32>
    %194 = tpu.matmul %191, %193, %cst_166 {dimension_numbers = #tpu.dot_dimension_numbers<[1], [0], [0], [1], [0, 0, 1, 1], [], []>} : vector<64x12xf32>, vector<12x14xf32>, vector<64x14xf32> -> vector<64x14xf32>
    %195 = arith.addf %189, %194 : vector<64x14xf32>
    %196 = vector.extract_strided_slice %190 {offsets = [1, 0], sizes = [64, 12], strides = [1, 1]} : vector<72x12xf32> to vector<64x12xf32>
    %c4_167 = arith.constant 4 : index
    %c0_168 = arith.constant 0 : index
    %c0_169 = arith.constant 0 : index
    %197 = vector.load %arg9[%c4_167, %c0_168, %c0_169] : memref<9x12x14xf32, #tpu.memory_space<vmem>>, vector<1x12x14xf32>
    %198 = vector.shape_cast %197 : vector<1x12x14xf32> to vector<12x14xf32>
    %cst_170 = arith.constant dense<0.000000e+00> : vector<64x14xf32>
    %199 = tpu.matmul %196, %198, %cst_170 {dimension_numbers = #tpu.dot_dimension_numbers<[1], [0], [0], [1], [0, 0, 1, 1], [], []>} : vector<64x12xf32>, vector<12x14xf32>, vector<64x14xf32> -> vector<64x14xf32>
    %200 = arith.addf %195, %199 : vector<64x14xf32>
    %201 = vector.extract_strided_slice %190 {offsets = [2, 0], sizes = [64, 12], strides = [1, 1]} : vector<72x12xf32> to vector<64x12xf32>
    %c5_171 = arith.constant 5 : index
    %c0_172 = arith.constant 0 : index
    %c0_173 = arith.constant 0 : index
    %202 = vector.load %arg9[%c5_171, %c0_172, %c0_173] : memref<9x12x14xf32, #tpu.memory_space<vmem>>, vector<1x12x14xf32>
    %203 = vector.shape_cast %202 : vector<1x12x14xf32> to vector<12x14xf32>
    %cst_174 = arith.constant dense<0.000000e+00> : vector<64x14xf32>
    %204 = tpu.matmul %201, %203, %cst_174 {dimension_numbers = #tpu.dot_dimension_numbers<[1], [0], [0], [1], [0, 0, 1, 1], [], []>} : vector<64x12xf32>, vector<12x14xf32>, vector<64x14xf32> -> vector<64x14xf32>
    %205 = arith.addf %200, %204 : vector<64x14xf32>
    %c32_175 = arith.constant 32 : index
    %c0_176 = arith.constant 0 : index
    %206 = vector.load %arg21[%c32_175, %c0_176] : memref<104x12xf32, #tpu.memory_space<vmem>>, vector<72x12xf32>
    %207 = vector.extract_strided_slice %206 {offsets = [0, 0], sizes = [64, 12], strides = [1, 1]} : vector<72x12xf32> to vector<64x12xf32>
    %c6_177 = arith.constant 6 : index
    %c0_178 = arith.constant 0 : index
    %c0_179 = arith.constant 0 : index
    %208 = vector.load %arg9[%c6_177, %c0_178, %c0_179] : memref<9x12x14xf32, #tpu.memory_space<vmem>>, vector<1x12x14xf32>
    %209 = vector.shape_cast %208 : vector<1x12x14xf32> to vector<12x14xf32>
    %cst_180 = arith.constant dense<0.000000e+00> : vector<64x14xf32>
    %210 = tpu.matmul %207, %209, %cst_180 {dimension_numbers = #tpu.dot_dimension_numbers<[1], [0], [0], [1], [0, 0, 1, 1], [], []>} : vector<64x12xf32>, vector<12x14xf32>, vector<64x14xf32> -> vector<64x14xf32>
    %211 = arith.addf %205, %210 : vector<64x14xf32>
    %212 = vector.extract_strided_slice %206 {offsets = [1, 0], sizes = [64, 12], strides = [1, 1]} : vector<72x12xf32> to vector<64x12xf32>
    %c7_181 = arith.constant 7 : index
    %c0_182 = arith.constant 0 : index
    %c0_183 = arith.constant 0 : index
    %213 = vector.load %arg9[%c7_181, %c0_182, %c0_183] : memref<9x12x14xf32, #tpu.memory_space<vmem>>, vector<1x12x14xf32>
    %214 = vector.shape_cast %213 : vector<1x12x14xf32> to vector<12x14xf32>
    %cst_184 = arith.constant dense<0.000000e+00> : vector<64x14xf32>
    %215 = tpu.matmul %212, %214, %cst_184 {dimension_numbers = #tpu.dot_dimension_numbers<[1], [0], [0], [1], [0, 0, 1, 1], [], []>} : vector<64x12xf32>, vector<12x14xf32>, vector<64x14xf32> -> vector<64x14xf32>
    %216 = arith.addf %211, %215 : vector<64x14xf32>
    %217 = vector.extract_strided_slice %206 {offsets = [2, 0], sizes = [64, 12], strides = [1, 1]} : vector<72x12xf32> to vector<64x12xf32>
    %c8_185 = arith.constant 8 : index
    %c0_186 = arith.constant 0 : index
    %c0_187 = arith.constant 0 : index
    %218 = vector.load %arg9[%c8_185, %c0_186, %c0_187] : memref<9x12x14xf32, #tpu.memory_space<vmem>>, vector<1x12x14xf32>
    %219 = vector.shape_cast %218 : vector<1x12x14xf32> to vector<12x14xf32>
    %cst_188 = arith.constant dense<0.000000e+00> : vector<64x14xf32>
    %220 = tpu.matmul %217, %219, %cst_188 {dimension_numbers = #tpu.dot_dimension_numbers<[1], [0], [0], [1], [0, 0, 1, 1], [], []>} : vector<64x12xf32>, vector<12x14xf32>, vector<64x14xf32> -> vector<64x14xf32>
    %221 = arith.addf %216, %220 : vector<64x14xf32>
    %c0_189 = arith.constant 0 : index
    %c0_190 = arith.constant 0 : index
    %222 = vector.load %arg10[%c0_189, %c0_190] : memref<1x14xf32, #tpu.memory_space<vmem>>, vector<1x14xf32>
    %223 = vector.broadcast %222 : vector<1x14xf32> to vector<64x14xf32>
    %224 = arith.addf %221, %223 : vector<64x14xf32>
    %cst_191 = arith.constant 0.000000e+00 : f32
    %225 = vector.broadcast %cst_191 : f32 to vector<64x14xf32>
    %226 = arith.maximumf %224, %225 : vector<64x14xf32>
    %c0_192 = arith.constant 0 : index
    %c0_193 = arith.constant 0 : index
    %227 = vector.load %arg14[%c0_192, %c0_193] : memref<64x1xf32, #tpu.memory_space<vmem>>, vector<64x1xf32>
    %228 = vector.broadcast %227 : vector<64x1xf32> to vector<64x14xf32>
    %229 = arith.mulf %226, %228 : vector<64x14xf32>
    %c16_194 = arith.constant 16 : index
    %c0_195 = arith.constant 0 : index
    %230 = vector.load %arg22[%c16_194, %c0_195] : memref<104x14xf32, #tpu.memory_space<vmem>>, vector<64x14xf32>
    tpu.vector_store %arg22[%c16_194, %c0_195], %229 {strides = array<i32>} : memref<104x14xf32, #tpu.memory_space<vmem>>, vector<64x14xf32>,
    %c7_196 = arith.constant 7 : index
    %c0_197 = arith.constant 0 : index
    %231 = vector.load %arg22[%c7_196, %c0_197] : memref<104x14xf32, #tpu.memory_space<vmem>>, vector<72x14xf32>
    %232 = vector.extract_strided_slice %231 {offsets = [0, 0], sizes = [64, 14], strides = [1, 1]} : vector<72x14xf32> to vector<64x14xf32>
    %c0_198 = arith.constant 0 : index
    %c0_199 = arith.constant 0 : index
    %c0_200 = arith.constant 0 : index
    %233 = vector.load %arg11[%c0_198, %c0_199, %c0_200] : memref<9x14x31xf32, #tpu.memory_space<vmem>>, vector<1x14x31xf32>
    %234 = vector.shape_cast %233 : vector<1x14x31xf32> to vector<14x31xf32>
    %cst_201 = arith.constant dense<0.000000e+00> : vector<64x31xf32>
    %235 = tpu.matmul %232, %234, %cst_201 {dimension_numbers = #tpu.dot_dimension_numbers<[1], [0], [0], [1], [0, 0, 1, 1], [], []>} : vector<64x14xf32>, vector<14x31xf32>, vector<64x31xf32> -> vector<64x31xf32>
    %236 = vector.extract_strided_slice %231 {offsets = [1, 0], sizes = [64, 14], strides = [1, 1]} : vector<72x14xf32> to vector<64x14xf32>
    %c1_202 = arith.constant 1 : index
    %c0_203 = arith.constant 0 : index
    %c0_204 = arith.constant 0 : index
    %237 = vector.load %arg11[%c1_202, %c0_203, %c0_204] : memref<9x14x31xf32, #tpu.memory_space<vmem>>, vector<1x14x31xf32>
    %238 = vector.shape_cast %237 : vector<1x14x31xf32> to vector<14x31xf32>
    %cst_205 = arith.constant dense<0.000000e+00> : vector<64x31xf32>
    %239 = tpu.matmul %236, %238, %cst_205 {dimension_numbers = #tpu.dot_dimension_numbers<[1], [0], [0], [1], [0, 0, 1, 1], [], []>} : vector<64x14xf32>, vector<14x31xf32>, vector<64x31xf32> -> vector<64x31xf32>
    %240 = arith.addf %235, %239 : vector<64x31xf32>
    %241 = vector.extract_strided_slice %231 {offsets = [2, 0], sizes = [64, 14], strides = [1, 1]} : vector<72x14xf32> to vector<64x14xf32>
    %c2_206 = arith.constant 2 : index
    %c0_207 = arith.constant 0 : index
    %c0_208 = arith.constant 0 : index
    %242 = vector.load %arg11[%c2_206, %c0_207, %c0_208] : memref<9x14x31xf32, #tpu.memory_space<vmem>>, vector<1x14x31xf32>
    %243 = vector.shape_cast %242 : vector<1x14x31xf32> to vector<14x31xf32>
    %cst_209 = arith.constant dense<0.000000e+00> : vector<64x31xf32>
    %244 = tpu.matmul %241, %243, %cst_209 {dimension_numbers = #tpu.dot_dimension_numbers<[1], [0], [0], [1], [0, 0, 1, 1], [], []>} : vector<64x14xf32>, vector<14x31xf32>, vector<64x31xf32> -> vector<64x31xf32>
    %245 = arith.addf %240, %244 : vector<64x31xf32>
    %c15 = arith.constant 15 : index
    %c0_210 = arith.constant 0 : index
    %246 = vector.load %arg22[%c15, %c0_210] : memref<104x14xf32, #tpu.memory_space<vmem>>, vector<72x14xf32>
    %247 = vector.extract_strided_slice %246 {offsets = [0, 0], sizes = [64, 14], strides = [1, 1]} : vector<72x14xf32> to vector<64x14xf32>
    %c3_211 = arith.constant 3 : index
    %c0_212 = arith.constant 0 : index
    %c0_213 = arith.constant 0 : index
    %248 = vector.load %arg11[%c3_211, %c0_212, %c0_213] : memref<9x14x31xf32, #tpu.memory_space<vmem>>, vector<1x14x31xf32>
    %249 = vector.shape_cast %248 : vector<1x14x31xf32> to vector<14x31xf32>
    %cst_214 = arith.constant dense<0.000000e+00> : vector<64x31xf32>
    %250 = tpu.matmul %247, %249, %cst_214 {dimension_numbers = #tpu.dot_dimension_numbers<[1], [0], [0], [1], [0, 0, 1, 1], [], []>} : vector<64x14xf32>, vector<14x31xf32>, vector<64x31xf32> -> vector<64x31xf32>
    %251 = arith.addf %245, %250 : vector<64x31xf32>
    %252 = vector.extract_strided_slice %246 {offsets = [1, 0], sizes = [64, 14], strides = [1, 1]} : vector<72x14xf32> to vector<64x14xf32>
    %c4_215 = arith.constant 4 : index
    %c0_216 = arith.constant 0 : index
    %c0_217 = arith.constant 0 : index
    %253 = vector.load %arg11[%c4_215, %c0_216, %c0_217] : memref<9x14x31xf32, #tpu.memory_space<vmem>>, vector<1x14x31xf32>
    %254 = vector.shape_cast %253 : vector<1x14x31xf32> to vector<14x31xf32>
    %cst_218 = arith.constant dense<0.000000e+00> : vector<64x31xf32>
    %255 = tpu.matmul %252, %254, %cst_218 {dimension_numbers = #tpu.dot_dimension_numbers<[1], [0], [0], [1], [0, 0, 1, 1], [], []>} : vector<64x14xf32>, vector<14x31xf32>, vector<64x31xf32> -> vector<64x31xf32>
    %256 = arith.addf %251, %255 : vector<64x31xf32>
    %257 = vector.extract_strided_slice %246 {offsets = [2, 0], sizes = [64, 14], strides = [1, 1]} : vector<72x14xf32> to vector<64x14xf32>
    %c5_219 = arith.constant 5 : index
    %c0_220 = arith.constant 0 : index
    %c0_221 = arith.constant 0 : index
    %258 = vector.load %arg11[%c5_219, %c0_220, %c0_221] : memref<9x14x31xf32, #tpu.memory_space<vmem>>, vector<1x14x31xf32>
    %259 = vector.shape_cast %258 : vector<1x14x31xf32> to vector<14x31xf32>
    %cst_222 = arith.constant dense<0.000000e+00> : vector<64x31xf32>
    %260 = tpu.matmul %257, %259, %cst_222 {dimension_numbers = #tpu.dot_dimension_numbers<[1], [0], [0], [1], [0, 0, 1, 1], [], []>} : vector<64x14xf32>, vector<14x31xf32>, vector<64x31xf32> -> vector<64x31xf32>
    %261 = arith.addf %256, %260 : vector<64x31xf32>
    %c23 = arith.constant 23 : index
    %c0_223 = arith.constant 0 : index
    %262 = vector.load %arg22[%c23, %c0_223] : memref<104x14xf32, #tpu.memory_space<vmem>>, vector<72x14xf32>
    %263 = vector.extract_strided_slice %262 {offsets = [0, 0], sizes = [64, 14], strides = [1, 1]} : vector<72x14xf32> to vector<64x14xf32>
    %c6_224 = arith.constant 6 : index
    %c0_225 = arith.constant 0 : index
    %c0_226 = arith.constant 0 : index
    %264 = vector.load %arg11[%c6_224, %c0_225, %c0_226] : memref<9x14x31xf32, #tpu.memory_space<vmem>>, vector<1x14x31xf32>
    %265 = vector.shape_cast %264 : vector<1x14x31xf32> to vector<14x31xf32>
    %cst_227 = arith.constant dense<0.000000e+00> : vector<64x31xf32>
    %266 = tpu.matmul %263, %265, %cst_227 {dimension_numbers = #tpu.dot_dimension_numbers<[1], [0], [0], [1], [0, 0, 1, 1], [], []>} : vector<64x14xf32>, vector<14x31xf32>, vector<64x31xf32> -> vector<64x31xf32>
    %267 = arith.addf %261, %266 : vector<64x31xf32>
    %268 = vector.extract_strided_slice %262 {offsets = [1, 0], sizes = [64, 14], strides = [1, 1]} : vector<72x14xf32> to vector<64x14xf32>
    %c7_228 = arith.constant 7 : index
    %c0_229 = arith.constant 0 : index
    %c0_230 = arith.constant 0 : index
    %269 = vector.load %arg11[%c7_228, %c0_229, %c0_230] : memref<9x14x31xf32, #tpu.memory_space<vmem>>, vector<1x14x31xf32>
    %270 = vector.shape_cast %269 : vector<1x14x31xf32> to vector<14x31xf32>
    %cst_231 = arith.constant dense<0.000000e+00> : vector<64x31xf32>
    %271 = tpu.matmul %268, %270, %cst_231 {dimension_numbers = #tpu.dot_dimension_numbers<[1], [0], [0], [1], [0, 0, 1, 1], [], []>} : vector<64x14xf32>, vector<14x31xf32>, vector<64x31xf32> -> vector<64x31xf32>
    %272 = arith.addf %267, %271 : vector<64x31xf32>
    %273 = vector.extract_strided_slice %262 {offsets = [2, 0], sizes = [64, 14], strides = [1, 1]} : vector<72x14xf32> to vector<64x14xf32>
    %c8_232 = arith.constant 8 : index
    %c0_233 = arith.constant 0 : index
    %c0_234 = arith.constant 0 : index
    %274 = vector.load %arg11[%c8_232, %c0_233, %c0_234] : memref<9x14x31xf32, #tpu.memory_space<vmem>>, vector<1x14x31xf32>
    %275 = vector.shape_cast %274 : vector<1x14x31xf32> to vector<14x31xf32>
    %cst_235 = arith.constant dense<0.000000e+00> : vector<64x31xf32>
    %276 = tpu.matmul %273, %275, %cst_235 {dimension_numbers = #tpu.dot_dimension_numbers<[1], [0], [0], [1], [0, 0, 1, 1], [], []>} : vector<64x14xf32>, vector<14x31xf32>, vector<64x31xf32> -> vector<64x31xf32>
    %277 = arith.addf %272, %276 : vector<64x31xf32>
    %c0_236 = arith.constant 0 : index
    %c0_237 = arith.constant 0 : index
    %278 = vector.load %arg12[%c0_236, %c0_237] : memref<1x31xf32, #tpu.memory_space<vmem>>, vector<1x31xf32>
    %279 = vector.broadcast %278 : vector<1x31xf32> to vector<64x31xf32>
    %280 = arith.addf %277, %279 : vector<64x31xf32>
    %cst_238 = arith.constant 0.000000e+00 : f32
    %281 = vector.broadcast %cst_238 : f32 to vector<64x31xf32>
    %282 = arith.maximumf %280, %281 : vector<64x31xf32>
    %c0_239 = arith.constant 0 : index
    %c0_240 = arith.constant 0 : index
    %283 = vector.load %arg15[%c0_239, %c0_240] : memref<1x64xf32, #tpu.memory_space<vmem>>, vector<1x64xf32>
    %cst_241 = arith.constant dense<0.000000e+00> : vector<1x31xf32>
    %284 = tpu.matmul %283, %282, %cst_241 {dimension_numbers = #tpu.dot_dimension_numbers<[1], [0], [0], [1], [0, 0, 1, 1], [], []>} : vector<1x64xf32>, vector<64x31xf32>, vector<1x31xf32> -> vector<1x31xf32>
    %c0_242 = arith.constant 0 : index
    %c0_243 = arith.constant 0 : index
    %285 = vector.load %arg13[%c0_242, %c0_243] : memref<31x10xf32, #tpu.memory_space<vmem>>, vector<31x10xf32>
    %cst_244 = arith.constant dense<0.000000e+00> : vector<1x10xf32>
    %286 = tpu.matmul %284, %285, %cst_244 {dimension_numbers = #tpu.dot_dimension_numbers<[1], [0], [0], [1], [0, 0, 1, 1], [], []>} : vector<1x31xf32>, vector<31x10xf32>, vector<1x10xf32> -> vector<1x10xf32>
    %cst_245 = arith.constant dense<0xFF800000> : vector<1xf32>
    %287 = vector.multi_reduction <maximumf>, %286, %cst_245 [1] : vector<1x10xf32> to vector<1xf32>
    %288 = vector.shape_cast %287 : vector<1xf32> to vector<1x1xf32>
    %289 = vector.broadcast %288 : vector<1x1xf32> to vector<1x10xf32>
    %290 = arith.subf %286, %289 : vector<1x10xf32>
    %291 = math.exp %290 : vector<1x10xf32>
    %cst_246 = arith.constant dense<0.000000e+00> : vector<1xf32>
    %292 = vector.multi_reduction <add>, %291, %cst_246 [1] : vector<1x10xf32> to vector<1xf32>
    %293 = vector.shape_cast %292 : vector<1xf32> to vector<1x1xf32>
    %294 = math.log %293 : vector<1x1xf32>
    %295 = vector.broadcast %294 : vector<1x1xf32> to vector<1x10xf32>
    %296 = arith.subf %290, %295 : vector<1x10xf32>
    %c0_247 = arith.constant 0 : index
    %c0_248 = arith.constant 0 : index
    %c0_249 = arith.constant 0 : index
    %297 = vector.load %arg16[%c0_247, %c0_248, %c0_249] : memref<1x1x10xf32, #tpu.memory_space<vmem>>, vector<1x1x10xf32>
    %298 = vector.shape_cast %297 : vector<1x1x10xf32> to vector<1x10xf32>
    %299 = vector.shape_cast %296 : vector<1x10xf32> to vector<1x1x10xf32>
    tpu.vector_store %arg16[%c0_247, %c0_248, %c0_249], %299 {strides = array<i32>} : memref<1x1x10xf32, #tpu.memory_space<vmem>>, vector<1x1x10xf32>,
    return
  }
  func.func @transform_0(%arg0: i32) -> (i32, i32) {
    %c0_i32 = arith.constant 0 : i32
    %c0_i32_0 = arith.constant 0 : i32
    return %arg0, %c0_i32 : i32, i32
  }
  func.func @transform_1(%arg0: i32) -> (i32, i32) {
    %c0_i32 = arith.constant 0 : i32
    %c0_i32_0 = arith.constant 0 : i32
    %c0_i32_1 = arith.constant 0 : i32
    return %c0_i32, %c0_i32_0 : i32, i32
  }
  func.func @transform_2(%arg0: i32) -> (i32, i32) {
    %c0_i32 = arith.constant 0 : i32
    %c0_i32_0 = arith.constant 0 : i32
    %c0_i32_1 = arith.constant 0 : i32
    return %c0_i32, %c0_i32_0 : i32, i32
  }
  func.func @transform_3(%arg0: i32) -> (i32, i32, i32) {
    %c0_i32 = arith.constant 0 : i32
    %c0_i32_0 = arith.constant 0 : i32
    %c0_i32_1 = arith.constant 0 : i32
    %c0_i32_2 = arith.constant 0 : i32
    return %c0_i32, %c0_i32_0, %c0_i32_1 : i32, i32, i32
  }
  func.func @transform_4(%arg0: i32) -> (i32, i32) {
    %c0_i32 = arith.constant 0 : i32
    %c0_i32_0 = arith.constant 0 : i32
    %c0_i32_1 = arith.constant 0 : i32
    return %c0_i32, %c0_i32_0 : i32, i32
  }
  func.func @transform_5(%arg0: i32) -> (i32, i32) {
    %c0_i32 = arith.constant 0 : i32
    %c0_i32_0 = arith.constant 0 : i32
    %c0_i32_1 = arith.constant 0 : i32
    return %c0_i32, %c0_i32_0 : i32, i32
  }
  func.func @transform_6(%arg0: i32) -> (i32, i32, i32) {
    %c0_i32 = arith.constant 0 : i32
    %c0_i32_0 = arith.constant 0 : i32
    %c0_i32_1 = arith.constant 0 : i32
    %c0_i32_2 = arith.constant 0 : i32
    return %c0_i32, %c0_i32_0, %c0_i32_1 : i32, i32, i32
  }
  func.func @transform_7(%arg0: i32) -> (i32, i32) {
    %c0_i32 = arith.constant 0 : i32
    %c0_i32_0 = arith.constant 0 : i32
    %c0_i32_1 = arith.constant 0 : i32
    return %c0_i32, %c0_i32_0 : i32, i32
  }
  func.func @transform_8(%arg0: i32) -> (i32, i32, i32) {
    %c0_i32 = arith.constant 0 : i32
    %c0_i32_0 = arith.constant 0 : i32
    %c0_i32_1 = arith.constant 0 : i32
    %c0_i32_2 = arith.constant 0 : i32
    return %c0_i32, %c0_i32_0, %c0_i32_1 : i32, i32, i32
  }
  func.func @transform_9(%arg0: i32) -> (i32, i32) {
    %c0_i32 = arith.constant 0 : i32
    %c0_i32_0 = arith.constant 0 : i32
    %c0_i32_1 = arith.constant 0 : i32
    return %c0_i32, %c0_i32_0 : i32, i32
  }
  func.func @transform_10(%arg0: i32) -> (i32, i32, i32) {
    %c0_i32 = arith.constant 0 : i32
    %c0_i32_0 = arith.constant 0 : i32
    %c0_i32_1 = arith.constant 0 : i32
    %c0_i32_2 = arith.constant 0 : i32
    return %c0_i32, %c0_i32_0, %c0_i32_1 : i32, i32, i32
  }
  func.func @transform_11(%arg0: i32) -> (i32, i32) {
    %c0_i32 = arith.constant 0 : i32
    %c0_i32_0 = arith.constant 0 : i32
    %c0_i32_1 = arith.constant 0 : i32
    return %c0_i32, %c0_i32_0 : i32, i32
  }
  func.func @transform_12(%arg0: i32) -> (i32, i32) {
    %c0_i32 = arith.constant 0 : i32
    %c0_i32_0 = arith.constant 0 : i32
    %c0_i32_1 = arith.constant 0 : i32
    return %c0_i32, %c0_i32_0 : i32, i32
  }
  func.func @transform_13(%arg0: i32) -> (i32, i32) {
    %c0_i32 = arith.constant 0 : i32
    %c0_i32_0 = arith.constant 0 : i32
    %c0_i32_1 = arith.constant 0 : i32
    return %c0_i32, %c0_i32_0 : i32, i32
  }
  func.func @transform_14(%arg0: i32) -> (i32, i32) {
    %c0_i32 = arith.constant 0 : i32
    %c0_i32_0 = arith.constant 0 : i32
    %c0_i32_1 = arith.constant 0 : i32
    return %c0_i32, %c0_i32_0 : i32, i32
  }
  func.func @transform_15(%arg0: i32) -> (i32, i32, i32) {
    %c0_i32 = arith.constant 0 : i32
    %c0_i32_0 = arith.constant 0 : i32
    %c0_i32_1 = arith.constant 0 : i32
    return %arg0, %c0_i32, %c0_i32_0 : i32, i32, i32
  }
}

</mosaic_0001>

<bundles_post_ra>
// kernel: _lambda_.1
= control target key start
LH: loop header
LB: loop body
LE: loop exit
PB: predicated region body
PF: predicated region fallthrough
CT: control target
= control target key end

     0   :  { %s15104_s0 = inlined_call_operand.vmem [shape: f32[512,9], index: 0, kind: input, shape index: {}]   ;;  %s15105_s1 = inlined_call_operand.vmem [shape: f32[9,8], index: 1, kind: input, shape index: {}]   ;;  %s15106_s2 = inlined_call_operand.vmem [shape: f32[1,8], index: 2, kind: input, shape index: {}]   ;;  %s15107_s3 = inlined_call_operand.vmem [shape: f32[9,8,11], index: 3, kind: input, shape index: {}]   ;;  %s15108_s4 = inlined_call_operand.vmem [shape: f32[1,11], index: 4, kind: input, shape index: {}]   ;;  %s15109_s5 = inlined_call_operand.vmem [shape: f32[11,10], index: 5, kind: input, shape index: {}]   ;;  %s15110_s6 = inlined_call_operand.vmem [shape: f32[9,10,12], index: 6, kind: input, shape index: {}]   ;;  %s15111_s7 = inlined_call_operand.vmem [shape: f32[1,12], index: 7, kind: input, shape index: {}]   ;;  %s15112_s8 = inlined_call_operand.vmem [shape: f32[9,12,14], index: 8, kind: input, shape index: {}]   ;;  %s15113_s9 = inlined_call_operand.vmem [shape: f32[1,14], index: 9, kind: input, shape index: {}]   ;;  %s15114_s10 = inlined_call_operand.vmem [shape: f32[9,14,31], index: 10, kind: input, shape index: {}]   ;;  %s15115_s11 = inlined_call_operand.vmem [shape: f32[1,31], index: 11, kind: input, shape index: {}]   ;;  %s15116_s12 = inlined_call_operand.vmem [shape: f32[31,10], index: 12, kind: input, shape index: {}]   ;;  %s15117_s13 = inlined_call_operand.vmem [shape: f32[64,1], index: 13, kind: input, shape index: {}]   ;;  %s15118_s14 = inlined_call_operand.vmem [shape: f32[1,64], index: 14, kind: input, shape index: {}]   ;;  %s15119_s15 = inlined_call_operand.hbm [shape: f32[2,1,10], index: 15, kind: output, shape index: {}]  }
   0x1   :  { %15153 = sst [smem:[#allocation44_spill]] %s15104_s0 }
   0x2   :  { %15154 = sst [smem:[#allocation45_spill]] %s15105_s1 }
   0x3   :  { %15155 = sst [smem:[#allocation46_spill]] %s15106_s2 }
   0x4   :  { %15156 = sst [smem:[#allocation47_spill]] %s15107_s3 }
   0x5   :  { %20 = vsyncpa [#allocation9], 0 }
   0x6   :  { %22 = vsyncpa [#allocation9 + $0x1], 0  ;;  %s12566_s18 = smov 0   ;;  %s12568_s19 = smov 0  }
   0x7   :  { %s12570_s20 = smov 0   ;;  %s12572_s21 = smov 0  }
   0x8 LB: > { %s12587_s22 = sadd.s32 4294967295, %s12478_s21   ;;  %s9390_s23 = sadd.s32 4294967294, %s12478_s21   ;;  %s12478_s21 = sphi %s12572_s21, %s15239_s21   ;;  %s12474_s20 = sphi %s12570_s20, %s15238_s20   ;;  %s12470_s19 = sphi %s12568_s19, %s15237_s19   ;;  %s12466_s18 = sphi %s12566_s18, %s15236_s18  }
   0x9   : > { %s12591_s24 = sadd.s32 1, %s12478_s21   ;;  %s355_s25 = sadd.s32 1, %s12474_s20 }
   0xa   : > { %s352_s26 = ssub.s32 %s12478_s21, %s12591_s24  ;;  %p365_p0 = scmp.ne.s32.totalorder %s12474_s20, %s12470_s19 }
   0xb   : > { %p353_p1 = scmp.eq.s32.totalorder %s352_s26, 0  ;;  %p366_p2 = scmp.eq.s32.totalorder %s12587_s22, 1 }
   0xc   : > { %p371_p3 = scmp.ne.s32.totalorder %s12470_s19, %s12466_s18  ;;  %p372_p4 = scmp.eq.s32.totalorder %s9390_s23, 1 }
   0xd   : > { %s12602_s27 = scalar_select %p353_p1, %s12474_s20, %s355_s25  }
   0xe   : > { %p12604_p5 = por %p366_p2, %p365_p0  ;;  %p12608_p6 = por %p372_p4, %p371_p3 }
   0xf   : > { %15157 = sst [smem:[#allocation11_spill]] %s12602_s27  ;;  %p9393_p7 = scmp.ge.s32.totalorder %s12478_s21, 1 }
  0x10   : > { %p441_p8 = scmp.lt.s32.totalorder %s12478_s21, 3 }
  0x12   : > { %p442_p9 = pnand %p9393_p7, %p441_p8 }
  0x14   : > { %445 = sbr.rel (%p442_p9) target bundleno = 3118 (0xc2e), region = 80 }
  0x1b   : > { %s15160_s1 = sld [smem:[#allocation45_spill]]  ;;  %vm654_vm0 = vcmask 1040384   ;;  %vm12480_vm1 = vmmov 1   ;;  %s9394_s25 = sshll.u32 %s12587_s22, 5  ;;  %vm557_vm3 = vcmask 72704   ;;  %vm915_vm4 = vcmask 64512  }
  0x1c   : > { %vm11726_vm2 = vmpackc.low %vm654_vm0, %vm12480_vm1  ;;  %p489_p10 = scmp.lt.s32.totalorder %s9394_s25, 63  ;;  %s15161_s0 = sld [smem:[#allocation44_spill]]  ;;  %vm1017_vm5 = vcmask 1046528   ;;  %vm1663_vm6 = vcmask 1045504   ;;  %vm4614_vm7 = vcmask 1042432   ;;  %vm5003_vm9 = vcmask 1041408  }
  0x1d   : > { %s15162_s3 = sld [smem:[#allocation47_spill]]  ;;  %s15163_s2 = sld [smem:[#allocation46_spill]]  ;;  %vm11732_vm8 = vmpackc.low %vm4614_vm7, %vm12480_vm1  ;;  %vm4451_vm11 = vcmask 89088   ;;  %vm494_vm12 = vcmask 80896   ;;  %vm510_vm13 = vcmask 113664   ;;  %vm4885_vm14 = vcmask 78848  }
  0x1e   : > { %s15241_s25 = smov (!%p489_p10, %s9394_s25), 63  ;;  %vm13863_vm10 = vmpackc.low %vm5003_vm9, %vm12480_vm1  ;;  %vm506_vm15 = vcmask 97280   ;;  %vm6389_vm0 = vcmask 1043456   ;;  %vm9308_vm9 = vcmask 73728   ;;  %s10057_s30 = sshll.u32 %s12587_s22, 4 }
  0x1f   : > { %s9395_s26 = sshll.u32 %s15241_s25, 3  ;;  %vm11916_vm7 = vmpackc.low %vm1017_vm5, %vm12480_vm1  ;;  %s15061_s23 = scalar_lea.hbm %s15119_s15, %s10057_s30 }
  0x20   : > { %s12485_s22 = smov [#allocation8]  }
  0x21   : > { %v548_v0 = vld [vmem:[%s15160_s1] sm:$0xff]  ;;  %v549_v1 = vld [vmem:[%s15160_s1 + $0x8] sm:$0x1]  ;;  %s486_s1 = sand.u32 1, %s12470_s19  }
  0x22   : > { %v11725_v2 = vpack.c.bf16 %v549_v1, %v548_v0  ;;  %s12625_s16 = scalar_lea.vmem %s15161_s0, %s9395_s26  ;;  %s9323_s25 = scalar_lea.sflag [#allocation9], %s486_s1 }
  0x23   : > { %v516_v3 = vld [vmem:[%s12625_s16] sm:$0xff]  ;;  %v517_v4 = vld [vmem:[%s12625_s16 + $0x8] sm:$0xff]  ;;  %v518_v5 = vld [vmem:[%s12625_s16 + $0x10] sm:$0xff] }
  0x24   : > { %11727 = vmatprep.subr.msk.bf16.mxu0 %vm11726_vm2, %v11725_v2  ;;  %10713 = vmatprep.mubr.msk.f32.mxu0 %vm557_vm3, %v516_v3  ;;  %v519_v6 = vld [vmem:[%s12625_s16 + $0x18] sm:$0xff]  ;;  %v520_v7 = vld [vmem:[%s12625_s16 + $0x20] sm:$0xff]  ;;  %v521_v8 = vld [vmem:[%s12625_s16 + $0x28] sm:$0xff] }
  0x25   : > { %11730 = vmatpush3.bf16.msk.msra.mxu0 %vm11726_vm2, %v11725_v2  ;;  %v522_v9 = vld [vmem:[%s12625_s16 + $0x30] sm:$0xff]  ;;  %v523_v10 = vld [vmem:[%s12625_s16 + $0x38] sm:$0xff]  ;;  %v524_v11 = vld [vmem:[%s12625_s16 + $0x40] sm:$0xff] }
  0x26   : > { %v525_v12 = vld [vmem:[%s12625_s16 + $0x48] sm:$0xff]  ;;  %v526_v13 = vld [vmem:[%s12625_s16 + $0x50] sm:$0xff]  ;;  %v527_v14 = vld [vmem:[%s12625_s16 + $0x58] sm:$0xff] }
  0x27   : > { %v528_v15 = vld [vmem:[%s12625_s16 + $0x60] sm:$0xff]  ;;  %v529_v16 = vld [vmem:[%s12625_s16 + $0x68] sm:$0xff]  ;;  %v530_v17 = vld [vmem:[%s12625_s16 + $0x70] sm:$0xff] }
  0x28   : > { %10714 = vmatmul.mubr.msk.f32.vlgmr.msra.gmra.mrb[0].mxu0 %vm557_vm3, %v517_v4  ;;  %v531_v18 = vld [vmem:[%s12625_s16 + $0x78] sm:$0xff]  ;;  %v532_v19 = vld [vmem:[%s12625_s16 + $0x80] sm:$0xff]  ;;  %v533_v20 = vld [vmem:[%s12625_s16 + $0x88] sm:$0xff] }
  0x29   : > { %10716 = vmatprep.mubr.msk.f32.mxu0 %vm557_vm3, %v518_v5  ;;  %v534_v21 = vld [vmem:[%s12625_s16 + $0x90] sm:$0xff]  ;;  %v535_v22 = vld [vmem:[%s12625_s16 + $0x98] sm:$0xff]  ;;  %v536_v23 = vld [vmem:[%s12625_s16 + $0xa0] sm:$0xff] }
  0x2a   : > { %v537_v24 = vld [vmem:[%s12625_s16 + $0xa8] sm:$0xff]  ;;  %v538_v25 = vld [vmem:[%s12625_s16 + $0xb0] sm:$0xff]  ;;  %v539_v26 = vld [vmem:[%s12625_s16 + $0xb8] sm:$0xff] }
  0x2b   : > { %v540_v27 = vld [vmem:[%s12625_s16 + $0xc0] sm:$0xff]  ;;  %v541_v28 = vld [vmem:[%s12625_s16 + $0xc8] sm:$0xff]  ;;  %v542_v29 = vld [vmem:[%s12625_s16 + $0xd0] sm:$0xff] }
  0x2c   : > { %10717 = vmatmul.mubr.msk.f32.gmra.mrb[2].mxu0 %vm557_vm3, %v519_v6  ;;  %v543_v30 = vld [vmem:[%s12625_s16 + $0xd8] sm:$0xff]  ;;  %v544_v31 = vld [vmem:[%s12625_s16 + $0xe0] sm:$0xff]  ;;  %v545_v32 = vld [vmem:[%s12625_s16 + $0xe8] sm:$0xff] }
  0x2d   : > { %10719 = vmatprep.mubr.msk.f32.mxu0 %vm557_vm3, %v520_v7  ;;  %v546_v33 = vld [vmem:[%s12625_s16 + $0xf0] sm:$0xff]  ;;  %v547_v34 = vld [vmem:[%s12625_s16 + $0xf8] sm:$0xff]  ;;  %v9430_v35 = vld [vmem:[%s15162_s3 + $0x8] sm:$0xff]  ;;  %s487_s16 = scalar_lea.vmem [#allocation8], %s486_s1 }
  0x2e   : > { %10761 = vmatprep.subr.mxu1 %v9430_v35  ;;  %v12697_v36 = vld [vmem:[%s15162_s3] sm:$0xff]  ;;  %vm14352_vm2 = vmpackc.low %vm6389_vm0, %vm12480_vm1  ;;  %s9335_s27 = sshll.u32 %s487_s16, 4  ;;  %s15063_s27 = int_to_ptr.vmem [resolvable:$true] %s9335_s27 }
  0x2f   : > { %10762 = vmatpush3.msra.mxu1 %v9430_v35  ;;  %v12703_v37 = vld [vmem:[%s15163_s2] ss:$0 sm:$0xff]  ;;  %s12416_s26 = scalar_lea.vmem %s15063_s27, 16  ;;  %s12420_s2 = sshll.u32 %s12485_s22, 4  ;;  %s12421_s2 = int_to_ptr.vmem [resolvable:$false] %s12420_s2 }
  0x30   : > { %10720 = vmatmul.mubr.msk.f32.gmra.mrb[4].mxu0 %vm557_vm3, %v521_v8  ;;  %10811 = vmatprep.subr.mxu1 %v12697_v36  ;;  %p12417_p11 = scmp.ne.s32.totalorder %s15063_s27, %s12416_s26  ;;  %p12423_p0 = scmp.lt.s32.totalorder %s15063_s27, %s12421_s2 }
  0x31   : > { %10722 = vmatprep.mubr.msk.f32.mxu0 %vm557_vm3, %v522_v9 }
  0x32   : > { %p12418_p12 = pnand %p12417_p11, %p12604_p5 }
  0x34   : > { %10723 = vmatmul.mubr.msk.f32.gmra.mrb[6].mxu0 %vm557_vm3, %v523_v10  ;;  %p12419_p13 = pneg %p12418_p12 }
  0x35   : > { %10725 = vmatprep.mubr.msk.f32.mxu0 %vm557_vm3, %v524_v11 }
  0x38   : > { %10726 = vmatmul.mubr.msk.f32.gmra.mrb[8].mxu0 %vm557_vm3, %v525_v12 }
  0x39   : > { %10728 = vmatprep.mubr.msk.f32.mxu0 %vm557_vm3, %v526_v13 }
  0x3c   : > { %10729 = vmatmul.mubr.msk.f32.gmra.mrb[10].mxu0 %vm557_vm3, %v527_v14 }
  0x3d   : > { %10731 = vmatprep.mubr.msk.f32.mxu0 %vm557_vm3, %v528_v15 }
  0x40   : > { %10732 = vmatmul.mubr.msk.f32.gmra.mrb[12].mxu0 %vm557_vm3, %v529_v16 }
  0x41   : > { %10734 = vmatprep.mubr.msk.f32.mxu0 %vm557_vm3, %v530_v17  ;;  %v12746_v17 = vld [vmem:[%s15162_s3 + $0x10] sm:$0xff] }
  0x44   : > { %10735 = vmatmul.mubr.msk.f32.gmra.mrb[14].mxu0 %vm557_vm3, %v531_v18 }
  0x45   : > { %10737 = vmatprep.mubr.msk.f32.mxu0 %vm557_vm3, %v532_v19 }
  0x48   : > { %10738 = vmatmul.mubr.msk.f32.gmra.mrb[16].mxu0 %vm557_vm3, %v533_v20 }
  0x49   : > { %10740 = vmatprep.mubr.msk.f32.mxu0 %vm557_vm3, %v534_v21 }
  0x4c   : > { %10741 = vmatmul.mubr.msk.f32.gmra.mrb[18].mxu0 %vm557_vm3, %v535_v22 }
  0x4d   : > { %10743 = vmatprep.mubr.msk.f32.mxu0 %vm557_vm3, %v536_v23 }
  0x50   : > { %10744 = vmatmul.mubr.msk.f32.gmra.mrb[20].mxu0 %vm557_vm3, %v537_v24 }
  0x51   : > { %10746 = vmatprep.mubr.msk.f32.mxu0 %vm557_vm3, %v538_v25 }
  0x54   : > { %10747 = vmatmul.mubr.msk.f32.gmra.mrb[22].mxu0 %vm557_vm3, %v539_v26 }
  0x55   : > { %10749 = vmatprep.mubr.msk.f32.mxu0 %vm557_vm3, %v540_v27 }
  0x58   : > { %10750 = vmatmul.mubr.msk.f32.gmra.mrb[24].mxu0 %vm557_vm3, %v541_v28 }
  0x59   : > { %10752 = vmatprep.mubr.msk.f32.mxu0 %vm557_vm3, %v542_v29 }
  0x5c   : > { %10753 = vmatmul.mubr.msk.f32.gmra.mrb[26].mxu0 %vm557_vm3, %v543_v30 }
  0x5d   : > { %10755 = vmatprep.mubr.msk.f32.mxu0 %vm557_vm3, %v544_v31 }
  0x60   : > { %10756 = vmatmul.mubr.msk.f32.gmra.mrb[28].mxu0 %vm557_vm3, %v545_v32 }
  0x61   : > { %10758 = vmatprep.mubr.msk.f32.mxu0 %vm557_vm3, %v546_v33 }
  0x64   : > { %10759 = vmatmul.mubr.msk.f32.gmra.mrb[30].mxu0 %vm557_vm3, %v547_v34  ;;  %vm14702_vm3 = vmpackc.low %vm1663_vm6, %vm12480_vm1 }
  0xfb   : > { %v10715_v38 = vpop.f32.mrb[0].mxu0 }
  0xfc   : > { %v730_v39 = vadd.f32 %v10715_v38, %v12703_v37  ;;  %v724_v40 = vpop.f32.mrb[1].mxu0 }
  0xfd   : > { %v725_v41 = vadd.f32 %v12703_v37, %v724_v40 }
  0xfe   : > { %v884_v42 = vmax.f32 %v730_v39, 0.0 }
  0xff   : > { %v883_v43 = vmax.f32 %v725_v41, 0.0  ;;  %v10718_v44 = vpop.f32.mrb[2].mxu0 }
 0x100   : > { %917 = vst.msk [vmem:[#allocation2 + $0x8] sm:$0xff] %vm915_vm4, %v884_v42  ;;  %v740_v45 = vadd.f32 %v10718_v44, %v12703_v37  ;;  %v734_v46 = vpop.f32.mrb[3].mxu0 }
 0x101   : > { %916 = vst.msk [vmem:[#allocation2] sm:$0xff] %vm915_vm4, %v883_v43  ;;  %v735_v47 = vadd.f32 %v12703_v37, %v734_v46 }
 0x102   : > { %v886_v48 = vmax.f32 %v740_v45, 0.0 }
 0x103   : > { %v885_v49 = vmax.f32 %v735_v47, 0.0  ;;  %v10721_v50 = vpop.f32.mrb[4].mxu0 }
 0x104   : > { %919 = vst.msk [vmem:[#allocation2 + $0x18] sm:$0xff] %vm915_vm4, %v886_v48  ;;  %v750_v51 = vadd.f32 %v10721_v50, %v12703_v37  ;;  %v744_v52 = vpop.f32.mrb[5].mxu0 }
 0x105   : > { %918 = vst.msk [vmem:[#allocation2 + $0x10] sm:$0xff] %vm915_vm4, %v885_v49  ;;  %v745_v53 = vadd.f32 %v12703_v37, %v744_v52 }
 0x106   : > { %v888_v54 = vmax.f32 %v750_v51, 0.0 }
 0x107   : > { %v887_v55 = vmax.f32 %v745_v53, 0.0  ;;  %v10724_v56 = vpop.f32.mrb[6].mxu0  ;;  %v12715_v57 = vld [vmem:[#allocation2 + $0x8] sm:$0xff] }
 0x108   : > { %921 = vst.msk [vmem:[#allocation2 + $0x28] sm:$0xff] %vm915_vm4, %v888_v54  ;;  %v760_v58 = vadd.f32 %v10724_v56, %v12703_v37  ;;  %v754_v59 = vpop.f32.mrb[7].mxu0  ;;  %v12719_v60 = vld [vmem:[#allocation2] sm:$0xff]  ;;  %v1019_v61 = vrot.slane %v12715_v57, 1 }
 0x109   : > { %920 = vst.msk [vmem:[#allocation2 + $0x20] sm:$0xff] %vm915_vm4, %v887_v55  ;;  %v755_v62 = vadd.f32 %v12703_v37, %v754_v59  ;;  %v1018_v63 = vrot.slane %v12719_v60, 1 }
 0x10a   : > { %v890_v0 = vmax.f32 %v760_v58, 0.0 }
 0x10b   : > { %v889_v1 = vmax.f32 %v755_v62, 0.0  ;;  %v10727_v2 = vpop.f32.mrb[8].mxu0  ;;  %v1020_v3 = vsel %vm1017_vm5, %v1018_v63, %v1019_v61  ;;  %v12726_v4 = vld [vmem:[#allocation2 + $0x18] sm:$0xff] }
 0x10c   : > { %923 = vst.msk [vmem:[#allocation2 + $0x38] sm:$0xff] %vm915_vm4, %v890_v0  ;;  %v770_v5 = vadd.f32 %v10727_v2, %v12703_v37  ;;  %v764_v6 = vpop.f32.mrb[9].mxu0  ;;  %10763 = vmatprep.mubr.msk.f32.mxu1 %vm915_vm4, %v1020_v3  ;;  %v12731_v7 = vld [vmem:[#allocation2 + $0x10] sm:$0xff]  ;;  %v1023_v8 = vrot.slane %v12726_v4, 1 }
 0x10d   : > { %922 = vst.msk [vmem:[#allocation2 + $0x30] sm:$0xff] %vm915_vm4, %v889_v1  ;;  %v765_v9 = vadd.f32 %v12703_v37, %v764_v6  ;;  %v1021_v10 = vrot.slane %v12731_v7, 1 }
 0x10e   : > { %v892_v11 = vmax.f32 %v770_v5, 0.0 }
 0x10f   : > { %v891_v12 = vmax.f32 %v765_v9, 0.0  ;;  %v10730_v13 = vpop.f32.mrb[10].mxu0  ;;  %v1022_v14 = vsel %vm1017_vm5, %v1019_v61, %v1021_v10  ;;  %v12739_v15 = vsel %vm1017_vm5, %v1021_v10, %v1023_v8  ;;  %v12741_v16 = vld [vmem:[#allocation2 + $0x28] sm:$0xff] }
 0x110   : > { %925 = vst.msk [vmem:[#allocation2 + $0x48] sm:$0xff] %vm915_vm4, %v892_v11  ;;  %v780_v18 = vadd.f32 %v10730_v13, %v12703_v37  ;;  %v774_v19 = vpop.f32.mrb[11].mxu0  ;;  %10764 = vmatmul.mubr.msk.f32.vlgmr.msra.gmra.mrb[0].mxu1 %vm915_vm4, %v1022_v14  ;;  %v12751_v20 = vld [vmem:[#allocation2 + $0x20] sm:$0xff]  ;;  %v1027_v21 = vrot.slane %v12741_v16, 1 }
 0x111   : > { %924 = vst.msk [vmem:[#allocation2 + $0x40] sm:$0xff] %vm915_vm4, %v891_v12  ;;  %v775_v22 = vadd.f32 %v12703_v37, %v774_v19  ;;  %10766 = vmatprep.mubr.msk.f32.mxu1 %vm915_vm4, %v12739_v15  ;;  %10812 = vmatpush3.msra.mxu1 %v12697_v36  ;;  %v1025_v23 = vrot.slane %v12751_v20, 1 }
 0x112   : > { %v894_v24 = vmax.f32 %v780_v18, 0.0  ;;  %10861 = vmatprep.subr.mxu1 %v12746_v17 }
 0x113   : > { %v893_v25 = vmax.f32 %v775_v22, 0.0  ;;  %v10733_v26 = vpop.f32.mrb[12].mxu0  ;;  %v12762_v27 = vsel %vm1017_vm5, %v1023_v8, %v1025_v23  ;;  %v12765_v28 = vsel %vm1017_vm5, %v1025_v23, %v1027_v21  ;;  %v12767_v29 = vld [vmem:[#allocation2 + $0x38] sm:$0xff] }
 0x114   : > { %927 = vst.msk [vmem:[#allocation2 + $0x58] sm:$0xff] %vm915_vm4, %v894_v24  ;;  %v790_v30 = vadd.f32 %v10733_v26, %v12703_v37  ;;  %v784_v31 = vpop.f32.mrb[13].mxu0  ;;  %10767 = vmatmul.mubr.msk.f32.gmra.mrb[2].mxu1 %vm915_vm4, %v12762_v27  ;;  %v12773_v32 = vld [vmem:[#allocation2 + $0x30] sm:$0xff]  ;;  %v1031_v33 = vrot.slane %v12767_v29, 1 }
 0x115   : > { %926 = vst.msk [vmem:[#allocation2 + $0x50] sm:$0xff] %vm915_vm4, %v893_v25  ;;  %v785_v34 = vadd.f32 %v12703_v37, %v784_v31  ;;  %10769 = vmatprep.mubr.msk.f32.mxu1 %vm915_vm4, %v12765_v28  ;;  %v1029_v35 = vrot.slane %v12773_v32, 1 }
 0x116   : > { %v896_v36 = vmax.f32 %v790_v30, 0.0 }
 0x117   : > { %v895_v38 = vmax.f32 %v785_v34, 0.0  ;;  %v10736_v39 = vpop.f32.mrb[14].mxu0  ;;  %v12782_v40 = vsel %vm1017_vm5, %v1027_v21, %v1029_v35  ;;  %v12785_v41 = vsel %vm1017_vm5, %v1029_v35, %v1031_v33  ;;  %v12787_v42 = vld [vmem:[#allocation2 + $0x48] sm:$0xff] }
 0x118   : > { %929 = vst.msk [vmem:[#allocation2 + $0x68] sm:$0xff] %vm915_vm4, %v896_v36  ;;  %v800_v43 = vadd.f32 %v10736_v39, %v12703_v37  ;;  %v794_v44 = vpop.f32.mrb[15].mxu0  ;;  %10770 = vmatmul.mubr.msk.f32.gmra.mrb[4].mxu1 %vm915_vm4, %v12782_v40  ;;  %v12793_v45 = vld [vmem:[#allocation2 + $0x40] sm:$0xff]  ;;  %v1035_v46 = vrot.slane %v12787_v42, 1 }
 0x119   : > { %928 = vst.msk [vmem:[#allocation2 + $0x60] sm:$0xff] %vm915_vm4, %v895_v38  ;;  %v795_v47 = vadd.f32 %v12703_v37, %v794_v44  ;;  %10772 = vmatprep.mubr.msk.f32.mxu1 %vm915_vm4, %v12785_v41  ;;  %v1033_v48 = vrot.slane %v12793_v45, 1 }
 0x11a   : > { %v898_v49 = vmax.f32 %v800_v43, 0.0 }
 0x11b   : > { %v897_v50 = vmax.f32 %v795_v47, 0.0  ;;  %v10739_v51 = vpop.f32.mrb[16].mxu0  ;;  %v12802_v52 = vsel %vm1017_vm5, %v1031_v33, %v1033_v48  ;;  %v12805_v53 = vsel %vm1017_vm5, %v1033_v48, %v1035_v46  ;;  %v12807_v54 = vld [vmem:[#allocation2 + $0x58] sm:$0xff] }
 0x11c   : > { %931 = vst.msk [vmem:[#allocation2 + $0x78] sm:$0xff] %vm915_vm4, %v898_v49  ;;  %v810_v55 = vadd.f32 %v10739_v51, %v12703_v37  ;;  %v804_v56 = vpop.f32.mrb[17].mxu0  ;;  %10773 = vmatmul.mubr.msk.f32.gmra.mrb[6].mxu1 %vm915_vm4, %v12802_v52  ;;  %v12813_v58 = vld [vmem:[#allocation2 + $0x50] sm:$0xff]  ;;  %v1039_v59 = vrot.slane %v12807_v54, 1 }
 0x11d   : > { %930 = vst.msk [vmem:[#allocation2 + $0x70] sm:$0xff] %vm915_vm4, %v897_v50  ;;  %v805_v61 = vadd.f32 %v12703_v37, %v804_v56  ;;  %10775 = vmatprep.mubr.msk.f32.mxu1 %vm915_vm4, %v12805_v53  ;;  %v1037_v62 = vrot.slane %v12813_v58, 1 }
 0x11e   : > { %v900_v63 = vmax.f32 %v810_v55, 0.0 }
 0x11f   : > { %v899_v0 = vmax.f32 %v805_v61, 0.0  ;;  %v10742_v1 = vpop.f32.mrb[18].mxu0  ;;  %v12822_v2 = vsel %vm1017_vm5, %v1035_v46, %v1037_v62  ;;  %v12825_v3 = vsel %vm1017_vm5, %v1037_v62, %v1039_v59  ;;  %v12827_v5 = vld [vmem:[#allocation2 + $0x68] sm:$0xff] }
 0x120   : > { %933 = vst.msk [vmem:[#allocation2 + $0x88] sm:$0xff] %vm915_vm4, %v900_v63  ;;  %v820_v6 = vadd.f32 %v10742_v1, %v12703_v37  ;;  %v814_v8 = vpop.f32.mrb[19].mxu0  ;;  %10776 = vmatmul.mubr.msk.f32.gmra.mrb[8].mxu1 %vm915_vm4, %v12822_v2  ;;  %v12833_v9 = vld [vmem:[#allocation2 + $0x60] sm:$0xff]  ;;  %v1043_v10 = vrot.slane %v12827_v5, 1 }
 0x121   : > { %932 = vst.msk [vmem:[#allocation2 + $0x80] sm:$0xff] %vm915_vm4, %v899_v0  ;;  %v815_v11 = vadd.f32 %v12703_v37, %v814_v8  ;;  %10778 = vmatprep.mubr.msk.f32.mxu1 %vm915_vm4, %v12825_v3  ;;  %v1041_v12 = vrot.slane %v12833_v9, 1 }
 0x122   : > { %v902_v13 = vmax.f32 %v820_v6, 0.0 }
 0x123   : > { %v901_v14 = vmax.f32 %v815_v11, 0.0  ;;  %v10745_v18 = vpop.f32.mrb[20].mxu0  ;;  %v12842_v19 = vsel %vm1017_vm5, %v1039_v59, %v1041_v12  ;;  %v12845_v21 = vsel %vm1017_vm5, %v1041_v12, %v1043_v10  ;;  %v12847_v22 = vld [vmem:[#allocation2 + $0x78] sm:$0xff] }
 0x124   : > { %935 = vst.msk [vmem:[#allocation2 + $0x98] sm:$0xff] %vm915_vm4, %v902_v13  ;;  %v830_v23 = vadd.f32 %v10745_v18, %v12703_v37  ;;  %v824_v24 = vpop.f32.mrb[21].mxu0  ;;  %10779 = vmatmul.mubr.msk.f32.gmra.mrb[10].mxu1 %vm915_vm4, %v12842_v19  ;;  %v12853_v25 = vld [vmem:[#allocation2 + $0x70] sm:$0xff]  ;;  %v1047_v26 = vrot.slane %v12847_v22, 1 }
 0x125   : > { %934 = vst.msk [vmem:[#allocation2 + $0x90] sm:$0xff] %vm915_vm4, %v901_v14  ;;  %v825_v30 = vadd.f32 %v12703_v37, %v824_v24  ;;  %10781 = vmatprep.mubr.msk.f32.mxu1 %vm915_vm4, %v12845_v21  ;;  %v1045_v31 = vrot.slane %v12853_v25, 1 }
 0x126   : > { %v904_v33 = vmax.f32 %v830_v23, 0.0 }
 0x127   : > { %v903_v34 = vmax.f32 %v825_v30, 0.0  ;;  %v10748_v35 = vpop.f32.mrb[22].mxu0  ;;  %v12862_v36 = vsel %vm1017_vm5, %v1043_v10, %v1045_v31  ;;  %v12865_v38 = vsel %vm1017_vm5, %v1045_v31, %v1047_v26  ;;  %v12867_v39 = vld [vmem:[#allocation2 + $0x88] sm:$0xff] }
 0x128   : > { %937 = vst.msk [vmem:[#allocation2 + $0xa8] sm:$0xff] %vm915_vm4, %v904_v33  ;;  %v840_v43 = vadd.f32 %v10748_v35, %v12703_v37  ;;  %v834_v44 = vpop.f32.mrb[23].mxu0  ;;  %10782 = vmatmul.mubr.msk.f32.gmra.mrb[12].mxu1 %vm915_vm4, %v12862_v36  ;;  %v12873_v46 = vld [vmem:[#allocation2 + $0x80] sm:$0xff]  ;;  %v1051_v47 = vrot.slane %v12867_v39, 1 }
 0x129   : > { %936 = vst.msk [vmem:[#allocation2 + $0xa0] sm:$0xff] %vm915_vm4, %v903_v34  ;;  %v835_v48 = vadd.f32 %v12703_v37, %v834_v44  ;;  %10784 = vmatprep.mubr.msk.f32.mxu1 %vm915_vm4, %v12865_v38  ;;  %v1049_v49 = vrot.slane %v12873_v46, 1 }
 0x12a   : > { %v906_v50 = vmax.f32 %v840_v43, 0.0 }
 0x12b   : > { %v905_v51 = vmax.f32 %v835_v48, 0.0  ;;  %v10751_v55 = vpop.f32.mrb[24].mxu0  ;;  %v12882_v56 = vsel %vm1017_vm5, %v1047_v26, %v1049_v49  ;;  %v12885_v59 = vsel %vm1017_vm5, %v1049_v49, %v1051_v47  ;;  %v12887_v61 = vld [vmem:[#allocation2 + $0x98] sm:$0xff] }
 0x12c   : > { %939 = vst.msk [vmem:[#allocation2 + $0xb8] sm:$0xff] %vm915_vm4, %v906_v50  ;;  %v850_v62 = vadd.f32 %v10751_v55, %v12703_v37  ;;  %v844_v63 = vpop.f32.mrb[25].mxu0  ;;  %10785 = vmatmul.mubr.msk.f32.gmra.mrb[14].mxu1 %vm915_vm4, %v12882_v56  ;;  %v12893_v0 = vld [vmem:[#allocation2 + $0x90] sm:$0xff]  ;;  %v1055_v1 = vrot.slane %v12887_v61, 1 }
 0x12d   : > { %938 = vst.msk [vmem:[#allocation2 + $0xb0] sm:$0xff] %vm915_vm4, %v905_v51  ;;  %v845_v6 = vadd.f32 %v12703_v37, %v844_v63  ;;  %10787 = vmatprep.mubr.msk.f32.mxu1 %vm915_vm4, %v12885_v59  ;;  %v1053_v8 = vrot.slane %v12893_v0, 1 }
 0x12e   : > { %v908_v10 = vmax.f32 %v850_v62, 0.0 }
 0x12f   : > { %v907_v11 = vmax.f32 %v845_v6, 0.0  ;;  %v10754_v12 = vpop.f32.mrb[26].mxu0  ;;  %v12902_v13 = vsel %vm1017_vm5, %v1051_v47, %v1053_v8  ;;  %v12905_v14 = vsel %vm1017_vm5, %v1053_v8, %v1055_v1  ;;  %v12907_v18 = vld [vmem:[#allocation2 + $0xa8] sm:$0xff] }
 0x130   : > { %941 = vst.msk [vmem:[#allocation2 + $0xc8] sm:$0xff] %vm915_vm4, %v908_v10  ;;  %v860_v23 = vadd.f32 %v10754_v12, %v12703_v37  ;;  %v854_v24 = vpop.f32.mrb[27].mxu0  ;;  %10788 = vmatmul.mubr.msk.f32.gmra.mrb[16].mxu1 %vm915_vm4, %v12902_v13  ;;  %v12913_v26 = vld [vmem:[#allocation2 + $0xa0] sm:$0xff]  ;;  %v1059_v30 = vrot.slane %v12907_v18, 1 }
 0x131   : > { %940 = vst.msk [vmem:[#allocation2 + $0xc0] sm:$0xff] %vm915_vm4, %v907_v11  ;;  %v855_v31 = vadd.f32 %v12703_v37, %v854_v24  ;;  %10790 = vmatprep.mubr.msk.f32.mxu1 %vm915_vm4, %v12905_v14  ;;  %v1057_v33 = vrot.slane %v12913_v26, 1 }
 0x132   : > { %v910_v34 = vmax.f32 %v860_v23, 0.0 }
 0x133   : > { %v909_v35 = vmax.f32 %v855_v31, 0.0  ;;  %v10757_v43 = vpop.f32.mrb[28].mxu0  ;;  %v12922_v44 = vsel %vm1017_vm5, %v1055_v1, %v1057_v33  ;;  %v12925_v47 = vsel %vm1017_vm5, %v1057_v33, %v1059_v30  ;;  %v12927_v48 = vld [vmem:[#allocation2 + $0xb8] sm:$0xff] }
 0x134   : > { %943 = vst.msk [vmem:[#allocation2 + $0xd8] sm:$0xff] %vm915_vm4, %v910_v34  ;;  %v870_v49 = vadd.f32 %v10757_v43, %v12703_v37  ;;  %v864_v50 = vpop.f32.mrb[29].mxu0  ;;  %10791 = vmatmul.mubr.msk.f32.gmra.mrb[18].mxu1 %vm915_vm4, %v12922_v44  ;;  %v12933_v51 = vld [vmem:[#allocation2 + $0xb0] sm:$0xff]  ;;  %v1063_v55 = vrot.slane %v12927_v48, 1 }
 0x135   : > { %942 = vst.msk [vmem:[#allocation2 + $0xd0] sm:$0xff] %vm915_vm4, %v909_v35  ;;  %v865_v62 = vadd.f32 %v12703_v37, %v864_v50  ;;  %10793 = vmatprep.mubr.msk.f32.mxu1 %vm915_vm4, %v12925_v47  ;;  %v1061_v63 = vrot.slane %v12933_v51, 1 }
 0x136   : > { %v912_v1 = vmax.f32 %v870_v49, 0.0 }
 0x137   : > { %v911_v6 = vmax.f32 %v865_v62, 0.0  ;;  %v10760_v8 = vpop.f32.mrb[30].mxu0  ;;  %v12942_v10 = vsel %vm1017_vm5, %v1059_v30, %v1061_v63  ;;  %v12945_v11 = vsel %vm1017_vm5, %v1061_v63, %v1063_v55  ;;  %v12947_v12 = vld [vmem:[#allocation2 + $0xc8] sm:$0xff] }
 0x138   : > { %945 = vst.msk [vmem:[#allocation2 + $0xe8] sm:$0xff] %vm915_vm4, %v912_v1  ;;  %v880_v23 = vadd.f32 %v10760_v8, %v12703_v37  ;;  %v874_v24 = vpop.f32.mrb[31].mxu0  ;;  %10794 = vmatmul.mubr.msk.f32.gmra.mrb[20].mxu1 %vm915_vm4, %v12942_v10  ;;  %v12953_v31 = vld [vmem:[#allocation2 + $0xc0] sm:$0xff]  ;;  %v1067_v33 = vrot.slane %v12947_v12, 1 }
 0x139   : > { %944 = vst.msk [vmem:[#allocation2 + $0xe0] sm:$0xff] %vm915_vm4, %v911_v6  ;;  %v875_v30 = vadd.f32 %v12703_v37, %v874_v24  ;;  %10796 = vmatprep.mubr.msk.f32.mxu1 %vm915_vm4, %v12945_v11  ;;  %v1065_v34 = vrot.slane %v12953_v31, 1 }
 0x13a   : > { %v914_v35 = vmax.f32 %v880_v23, 0.0 }
 0x13b   : > { %v913_v43 = vmax.f32 %v875_v30, 0.0  ;;  %v12962_v49 = vsel %vm1017_vm5, %v1063_v55, %v1065_v34  ;;  %v12965_v50 = vsel %vm1017_vm5, %v1065_v34, %v1067_v33  ;;  %v12967_v62 = vld [vmem:[#allocation2 + $0xd8] sm:$0xff] }
 0x13c   : > { %15164 = vst [vmem:[#allocation12_spill] sm:$0xff] %v12965_v50  ;;  %947 = vst.msk [vmem:[#allocation2 + $0xf8] sm:$0xff] %vm915_vm4, %v914_v35  ;;  %10797 = vmatmul.mubr.msk.f32.gmra.mrb[22].mxu1 %vm915_vm4, %v12962_v49  ;;  %v12972_v37 = vld [vmem:[#allocation2 + $0xd0] sm:$0xff]  ;;  %v1071_v63 = vrot.slane %v12967_v62, 1 }
 0x13d   : > { %946 = vst.msk [vmem:[#allocation2 + $0xf0] sm:$0xff] %vm915_vm4, %v913_v43  ;;  %10799 = vmatprep.mubr.msk.f32.mxu1 %vm915_vm4, %v12965_v50  ;;  %v1069_v55 = vrot.slane %v12972_v37, 1 }
 0x13f   : > { %v12980_v1 = vsel %vm1017_vm5, %v1067_v33, %v1069_v55  ;;  %v12983_v6 = vsel %vm1017_vm5, %v1069_v55, %v1071_v63  ;;  %v12985_v8 = vld [vmem:[#allocation2 + $0xe8] sm:$0xff] }
 0x140   : > { %15165 = vst [vmem:[#allocation13_spill] sm:$0xff] %v12980_v1  ;;  %15166 = vst [vmem:[#allocation14_spill] sm:$0xff] %v12983_v6  ;;  %10800 = vmatmul.mubr.msk.f32.gmra.mrb[24].mxu1 %vm915_vm4, %v12980_v1  ;;  %v12989_v23 = vld [vmem:[#allocation2 + $0xe0] sm:$0xff]  ;;  %v1075_v24 = vrot.slane %v12985_v8, 1 }
 0x141   : > { %10802 = vmatprep.mubr.msk.f32.mxu1 %vm915_vm4, %v12983_v6  ;;  %v1073_v30 = vrot.slane %v12989_v23, 1  ;;  %v13008_v1 = vld [vmem:[#allocation2 + $0x100] sm:$0xff] }
 0x142   : > { %v15124_v50 = vrot.slane %v13008_v1, 1 }
 0x143   : > { %v12996_v33 = vsel %vm1017_vm5, %v1071_v63, %v1073_v30  ;;  %v12999_v34 = vsel %vm1017_vm5, %v1073_v30, %v1075_v24  ;;  %v13001_v35 = vld [vmem:[#allocation2 + $0xf8] sm:$0xff] }
 0x144   : > { %15167 = vst [vmem:[#allocation15_spill] sm:$0xff] %v12999_v34  ;;  %10803 = vmatmul.mubr.msk.f32.gmra.mrb[26].mxu1 %vm915_vm4, %v12996_v33  ;;  %v13005_v43 = vld [vmem:[#allocation2 + $0xf0] sm:$0xff]  ;;  %v1079_v55 = vrot.slane %v13001_v35, 1 }
 0x145   : > { %10805 = vmatprep.mubr.msk.f32.mxu1 %vm915_vm4, %v12999_v34  ;;  %v1077_v63 = vrot.slane %v13005_v43, 1 }
 0x146   : > { %v13027_v34 = vsel %vm1017_vm5, %v1079_v55, %v15124_v50 }
 0x147   : > { %v13014_v6 = vsel %vm1017_vm5, %v1075_v24, %v1077_v63  ;;  %v13017_v30 = vsel %vm1017_vm5, %v1077_v63, %v1079_v55  ;;  %15170 = vst [vmem:[#allocation18_spill] sm:$0xff] %v13027_v34  ;;  %v9528_v24 = vld [vmem:[%s15162_s3 + $0x18] sm:$0xff]  ;;  %v1665_v55 = vrot.slane %v12715_v57, 2  ;;  %v1667_v63 = vrot.slane %v12731_v7, 2 }
 0x148   : > { %15168 = vst [vmem:[#allocation16_spill] sm:$0xff] %v13014_v6  ;;  %15169 = vst [vmem:[#allocation17_spill] sm:$0xff] %v13017_v30  ;;  %10806 = vmatmul.mubr.msk.f32.gmra.mrb[28].mxu1 %vm915_vm4, %v13014_v6 }
 0x149   : > { %10808 = vmatprep.mubr.msk.f32.mxu1 %vm915_vm4, %v13017_v30  ;;  %v1668_v30 = vsel %vm1663_vm6, %v1665_v55, %v1667_v63 }
 0x14c   : > { %10809 = vmatmul.mubr.msk.f32.gmra.mrb[30].mxu1 %vm915_vm4, %v13027_v34  ;;  %v1669_v34 = vrot.slane %v12726_v4, 2 }
 0x14d   : > { %10813 = vmatprep.mubr.msk.f32.mxu1 %vm915_vm4, %v12719_v60 }
 0x14e   : > { %v13114_v6 = vsel %vm1663_vm6, %v1667_v63, %v1669_v34  ;;  %v1677_v63 = vrot.slane %v12767_v29, 2 }
 0x14f   : > { %15171 = vst [vmem:[#allocation19_spill] sm:$0xff] %v13114_v6 }
 0x150   : > { %10814 = vmatmul.mubr.msk.f32.vlgmr.msra.gmra.mrb[0].mxu1 %vm915_vm4, %v12715_v57  ;;  %v13110_v57 = vld [vmem:[%s15162_s3 + $0x20] sm:$0xff] }
 0x151   : > { %10816 = vmatprep.mubr.msk.f32.mxu1 %vm915_vm4, %v12731_v7  ;;  %10862 = vmatpush3.msra.mxu1 %v12746_v17  ;;  %v1664_v17 = vrot.slane %v12719_v60, 2  ;;  %v1671_v60 = vrot.slane %v12751_v20, 2 }
 0x152   : > { %10911 = vmatprep.subr.mxu1 %v9528_v24 }
 0x153   : > { %v1666_v50 = vsel %vm1663_vm6, %v1664_v17, %v1665_v55  ;;  %v1673_v17 = vrot.slane %v12741_v16, 2  ;;  %v1675_v55 = vrot.slane %v12773_v32, 2 }
 0x154   : > { %10817 = vmatmul.mubr.msk.f32.gmra.mrb[2].mxu1 %vm915_vm4, %v12726_v4 }
 0x155   : > { %10819 = vmatprep.mubr.msk.f32.mxu1 %vm915_vm4, %v12751_v20 }
 0x158   : > { %10820 = vmatmul.mubr.msk.f32.gmra.mrb[4].mxu1 %vm915_vm4, %v12741_v16 }
 0x159   : > { %10822 = vmatprep.mubr.msk.f32.mxu1 %vm915_vm4, %v12773_v32 }
 0x15c   : > { %10823 = vmatmul.mubr.msk.f32.gmra.mrb[6].mxu1 %vm915_vm4, %v12767_v29 }
 0x15d   : > { %10825 = vmatprep.mubr.msk.f32.mxu1 %vm915_vm4, %v12793_v45 }
 0x160   : > { %10826 = vmatmul.mubr.msk.f32.gmra.mrb[8].mxu1 %vm915_vm4, %v12787_v42 }
 0x161   : > { %10828 = vmatprep.mubr.msk.f32.mxu1 %vm915_vm4, %v12813_v58 }
 0x164   : > { %10829 = vmatmul.mubr.msk.f32.gmra.mrb[10].mxu1 %vm915_vm4, %v12807_v54 }
 0x165   : > { %10831 = vmatprep.mubr.msk.f32.mxu1 %vm915_vm4, %v12833_v9 }
 0x168   : > { %10832 = vmatmul.mubr.msk.f32.gmra.mrb[12].mxu1 %vm915_vm4, %v12827_v5 }
 0x169   : > { %10834 = vmatprep.mubr.msk.f32.mxu1 %vm915_vm4, %v12853_v25 }
 0x16c   : > { %10835 = vmatmul.mubr.msk.f32.gmra.mrb[14].mxu1 %vm915_vm4, %v12847_v22 }
 0x16d   : > { %10837 = vmatprep.mubr.msk.f32.mxu1 %vm915_vm4, %v12873_v46 }
 0x170   : > { %10838 = vmatmul.mubr.msk.f32.gmra.mrb[16].mxu1 %vm915_vm4, %v12867_v39 }
 0x171   : > { %10840 = vmatprep.mubr.msk.f32.mxu1 %vm915_vm4, %v12893_v0 }
 0x174   : > { %10841 = vmatmul.mubr.msk.f32.gmra.mrb[18].mxu1 %vm915_vm4, %v12887_v61 }
 0x175   : > { %10843 = vmatprep.mubr.msk.f32.mxu1 %vm915_vm4, %v12913_v26 }
 0x178   : > { %10844 = vmatmul.mubr.msk.f32.gmra.mrb[20].mxu1 %vm915_vm4, %v12907_v18 }
 0x179   : > { %10846 = vmatprep.mubr.msk.f32.mxu1 %vm915_vm4, %v12933_v51 }
 0x17c   : > { %10847 = vmatmul.mubr.msk.f32.gmra.mrb[22].mxu1 %vm915_vm4, %v12927_v48 }
 0x17d   : > { %10849 = vmatprep.mubr.msk.f32.mxu1 %vm915_vm4, %v12953_v31 }
 0x180   : > { %10850 = vmatmul.mubr.msk.f32.gmra.mrb[24].mxu1 %vm915_vm4, %v12947_v12 }
 0x181   : > { %10852 = vmatprep.mubr.msk.f32.mxu1 %vm915_vm4, %v12972_v37 }
 0x184   : > { %10853 = vmatmul.mubr.msk.f32.gmra.mrb[26].mxu1 %vm915_vm4, %v12967_v62 }
 0x185   : > { %10855 = vmatprep.mubr.msk.f32.mxu1 %vm915_vm4, %v12989_v23 }
 0x188   : > { %10856 = vmatmul.mubr.msk.f32.gmra.mrb[28].mxu1 %vm915_vm4, %v12985_v8 }
 0x189   : > { %10858 = vmatprep.mubr.msk.f32.mxu1 %vm915_vm4, %v13005_v43 }
 0x18c   : > { %10859 = vmatmul.mubr.msk.f32.gmra.mrb[30].mxu1 %vm915_vm4, %v13001_v35 }
 0x18d   : > { %10863 = vmatprep.mubr.msk.f32.mxu1 %vm915_vm4, %v1666_v50  ;;  %v13121_v50 = vsel %vm1663_vm6, %v1669_v34, %v1671_v60  ;;  %v13139_v34 = vsel %vm1663_vm6, %v1675_v55, %v1677_v63 }
 0x18e   : > { %15172 = vst [vmem:[#allocation20_spill] sm:$0xff] %v13121_v50  ;;  %15175 = vst [vmem:[#allocation23_spill] sm:$0xff] %v13139_v34 }
 0x190   : > { %10864 = vmatmul.mubr.msk.f32.vlgmr.msra.gmra.mrb[0].mxu1 %vm915_vm4, %v1668_v30  ;;  %v13127_v30 = vsel %vm1663_vm6, %v1671_v60, %v1673_v17 }
 0x191   : > { %10866 = vmatprep.mubr.msk.f32.mxu1 %vm915_vm4, %v13114_v6  ;;  %10912 = vmatpush3.msra.mxu1 %v9528_v24  ;;  %15173 = vst [vmem:[#allocation21_spill] sm:$0xff] %v13127_v30  ;;  %v13133_v24 = vsel %vm1663_vm6, %v1673_v17, %v1675_v55  ;;  %v1679_v6 = vrot.slane %v12793_v45, 2 }
 0x192   : > { %10961 = vmatprep.subr.mxu1 %v13110_v57  ;;  %15174 = vst [vmem:[#allocation22_spill] sm:$0xff] %v13133_v24 }
 0x193   : > { %v13145_v60 = vsel %vm1663_vm6, %v1677_v63, %v1679_v6 }
 0x194   : > { %10867 = vmatmul.mubr.msk.f32.gmra.mrb[2].mxu1 %vm915_vm4, %v13121_v50  ;;  %v1681_v50 = vrot.slane %v12787_v42, 2  ;;  %15176 = vst [vmem:[#allocation24_spill] sm:$0xff] %v13145_v60 }
 0x195   : > { %10869 = vmatprep.mubr.msk.f32.mxu1 %vm915_vm4, %v13127_v30  ;;  %v1683_v30 = vrot.slane %v12813_v58, 2 }
 0x196   : > { %v13151_v17 = vsel %vm1663_vm6, %v1679_v6, %v1681_v50 }
 0x197   : > { %15177 = vst [vmem:[#allocation25_spill] sm:$0xff] %v13151_v17  ;;  %v13157_v55 = vsel %vm1663_vm6, %v1681_v50, %v1683_v30 }
 0x198   : > { %10870 = vmatmul.mubr.msk.f32.gmra.mrb[4].mxu1 %vm915_vm4, %v13133_v24  ;;  %v1685_v24 = vrot.slane %v12807_v54, 2  ;;  %15178 = vst [vmem:[#allocation26_spill] sm:$0xff] %v13157_v55 }
 0x199   : > { %10872 = vmatprep.mubr.msk.f32.mxu1 %vm915_vm4, %v13139_v34  ;;  %v1687_v34 = vrot.slane %v12833_v9, 2 }
 0x19a   : > { %v13163_v63 = vsel %vm1663_vm6, %v1683_v30, %v1685_v24 }
 0x19b   : > { %15179 = vst [vmem:[#allocation27_spill] sm:$0xff] %v13163_v63  ;;  %v13169_v6 = vsel %vm1663_vm6, %v1685_v24, %v1687_v34 }
 0x19c   : > { %10873 = vmatmul.mubr.msk.f32.gmra.mrb[6].mxu1 %vm915_vm4, %v13145_v60  ;;  %v1689_v60 = vrot.slane %v12827_v5, 2  ;;  %15180 = vst [vmem:[#allocation28_spill] sm:$0xff] %v13169_v6 }
 0x19d   : > { %10875 = vmatprep.mubr.msk.f32.mxu1 %vm915_vm4, %v13151_v17  ;;  %v1691_v17 = vrot.slane %v12853_v25, 2 }
 0x19e   : > { %v13175_v50 = vsel %vm1663_vm6, %v1687_v34, %v1689_v60 }
 0x19f   : > { %15181 = vst [vmem:[#allocation29_spill] sm:$0xff] %v13175_v50  ;;  %v13181_v30 = vsel %vm1663_vm6, %v1689_v60, %v1691_v17 }
 0x1a0   : > { %10876 = vmatmul.mubr.msk.f32.gmra.mrb[8].mxu1 %vm915_vm4, %v13157_v55  ;;  %v1693_v55 = vrot.slane %v12847_v22, 2  ;;  %15182 = vst [vmem:[#allocation30_spill] sm:$0xff] %v13181_v30 }
 0x1a1   : > { %10878 = vmatprep.mubr.msk.f32.mxu1 %vm915_vm4, %v13163_v63  ;;  %v1695_v63 = vrot.slane %v12873_v46, 2 }
 0x1a2   : > { %v13187_v24 = vsel %vm1663_vm6, %v1691_v17, %v1693_v55 }
 0x1a3   : > { %15183 = vst [vmem:[#allocation31_spill] sm:$0xff] %v13187_v24  ;;  %v13193_v34 = vsel %vm1663_vm6, %v1693_v55, %v1695_v63 }
 0x1a4   : > { %10879 = vmatmul.mubr.msk.f32.gmra.mrb[10].mxu1 %vm915_vm4, %v13169_v6  ;;  %v1697_v6 = vrot.slane %v12867_v39, 2  ;;  %15184 = vst [vmem:[#allocation32_spill] sm:$0xff] %v13193_v34 }
 0x1a5   : > { %10881 = vmatprep.mubr.msk.f32.mxu1 %vm915_vm4, %v13175_v50  ;;  %v1699_v50 = vrot.slane %v12893_v0, 2 }
 0x1a6   : > { %v13199_v60 = vsel %vm1663_vm6, %v1695_v63, %v1697_v6 }
 0x1a7   : > { %15185 = vst [vmem:[#allocation33_spill] sm:$0xff] %v13199_v60  ;;  %v13205_v17 = vsel %vm1663_vm6, %v1697_v6, %v1699_v50 }
 0x1a8   : > { %10882 = vmatmul.mubr.msk.f32.gmra.mrb[12].mxu1 %vm915_vm4, %v13181_v30  ;;  %v1701_v30 = vrot.slane %v12887_v61, 2  ;;  %15186 = vst [vmem:[#allocation34_spill] sm:$0xff] %v13205_v17 }
 0x1a9   : > { %10884 = vmatprep.mubr.msk.f32.mxu1 %vm915_vm4, %v13187_v24  ;;  %v1703_v24 = vrot.slane %v12913_v26, 2 }
 0x1aa   : > { %v13211_v55 = vsel %vm1663_vm6, %v1699_v50, %v1701_v30 }
 0x1ab   : > { %15187 = vst [vmem:[#allocation35_spill] sm:$0xff] %v13211_v55  ;;  %v13217_v63 = vsel %vm1663_vm6, %v1701_v30, %v1703_v24 }
 0x1ac   : > { %10885 = vmatmul.mubr.msk.f32.gmra.mrb[14].mxu1 %vm915_vm4, %v13193_v34  ;;  %v1705_v34 = vrot.slane %v12907_v18, 2  ;;  %15188 = vst [vmem:[#allocation36_spill] sm:$0xff] %v13217_v63 }
 0x1ad   : > { %10887 = vmatprep.mubr.msk.f32.mxu1 %vm915_vm4, %v13199_v60  ;;  %v1707_v60 = vrot.slane %v12933_v51, 2 }
 0x1ae   : > { %v13223_v6 = vsel %vm1663_vm6, %v1703_v24, %v1705_v34 }
 0x1af   : > { %15189 = vst [vmem:[#allocation37_spill] sm:$0xff] %v13223_v6  ;;  %v13229_v50 = vsel %vm1663_vm6, %v1705_v34, %v1707_v60 }
 0x1b0   : > { %10888 = vmatmul.mubr.msk.f32.gmra.mrb[16].mxu1 %vm915_vm4, %v13205_v17  ;;  %v1709_v17 = vrot.slane %v12927_v48, 2  ;;  %15190 = vst [vmem:[#allocation38_spill] sm:$0xff] %v13229_v50 }
 0x1b1   : > { %10890 = vmatprep.mubr.msk.f32.mxu1 %vm915_vm4, %v13211_v55  ;;  %v1711_v55 = vrot.slane %v12953_v31, 2 }
 0x1b2   : > { %v13235_v30 = vsel %vm1663_vm6, %v1707_v60, %v1709_v17 }
 0x1b3   : > { %15191 = vst [vmem:[#allocation39_spill] sm:$0xff] %v13235_v30  ;;  %v13241_v24 = vsel %vm1663_vm6, %v1709_v17, %v1711_v55 }
 0x1b4   : > { %10891 = vmatmul.mubr.msk.f32.gmra.mrb[18].mxu1 %vm915_vm4, %v13217_v63  ;;  %v1713_v63 = vrot.slane %v12947_v12, 2  ;;  %15192 = vst [vmem:[#allocation40_spill] sm:$0xff] %v13241_v24 }
 0x1b5   : > { %10893 = vmatprep.mubr.msk.f32.mxu1 %vm915_vm4, %v13223_v6  ;;  %v1715_v6 = vrot.slane %v12972_v37, 2 }
 0x1b6   : > { %v13247_v34 = vsel %vm1663_vm6, %v1711_v55, %v1713_v63 }
 0x1b7   : > { %15193 = vst [vmem:[#allocation41_spill] sm:$0xff] %v13247_v34  ;;  %v13253_v60 = vsel %vm1663_vm6, %v1713_v63, %v1715_v6 }
 0x1b8   : > { %10894 = vmatmul.mubr.msk.f32.gmra.mrb[20].mxu1 %vm915_vm4, %v13229_v50  ;;  %v1717_v50 = vrot.slane %v12967_v62, 2  ;;  %15194 = vst [vmem:[#allocation42_spill] sm:$0xff] %v13253_v60 }
 0x1b9   : > { %10896 = vmatprep.mubr.msk.f32.mxu1 %vm915_vm4, %v13235_v30  ;;  %v1719_v30 = vrot.slane %v12989_v23, 2 }
 0x1ba   : > { %v13259_v17 = vsel %vm1663_vm6, %v1715_v6, %v1717_v50 }
 0x1bb   : > { %15195 = vst [vmem:[#allocation43_spill] sm:$0xff] %v13259_v17  ;;  %v13265_v55 = vsel %vm1663_vm6, %v1717_v50, %v1719_v30 }
 0x1bc   : > { %10897 = vmatmul.mubr.msk.f32.gmra.mrb[22].mxu1 %vm915_vm4, %v13241_v24  ;;  %v1721_v24 = vrot.slane %v12985_v8, 2 }
 0x1bd   : > { %10899 = vmatprep.mubr.msk.f32.mxu1 %vm915_vm4, %v13247_v34  ;;  %v1723_v34 = vrot.slane %v13005_v43, 2 }
 0x1be   : > { %v13271_v63 = vsel %vm1663_vm6, %v1719_v30, %v1721_v24 }
 0x1bf   : > { %v13277_v6 = vsel %vm1663_vm6, %v1721_v24, %v1723_v34  ;;  %v9594_v24 = vld [vmem:[%s15162_s3 + $0x28] sm:$0xff] }
 0x1c0   : > { %10900 = vmatmul.mubr.msk.f32.gmra.mrb[24].mxu1 %vm915_vm4, %v13253_v60  ;;  %v1725_v60 = vrot.slane %v13001_v35, 2 }
 0x1c1   : > { %10902 = vmatprep.mubr.msk.f32.mxu1 %vm915_vm4, %v13259_v17  ;;  %v1727_v17 = vrot.slane %v13008_v1, 2 }
 0x1c2   : > { %v13283_v50 = vsel %vm1663_vm6, %v1723_v34, %v1725_v60  ;;  %v13568_v34 = vld [vmem:[#allocation2 + $0x68] sm:$0xff] }
 0x1c3   : > { %v13290_v30 = vsel %vm1663_vm6, %v1725_v60, %v1727_v17  ;;  %v13572_v60 = vld [vmem:[#allocation2 + $0x70] sm:$0xff] }
 0x1c4   : > { %10903 = vmatmul.mubr.msk.f32.gmra.mrb[26].mxu1 %vm915_vm4, %v13265_v55 }
 0x1c5   : > { %10905 = vmatprep.mubr.msk.f32.mxu1 %vm915_vm4, %v13271_v63 }
 0x1c8   : > { %10906 = vmatmul.mubr.msk.f32.gmra.mrb[28].mxu1 %vm915_vm4, %v13277_v6 }
 0x1c9   : > { %10908 = vmatprep.mubr.msk.f32.mxu1 %vm915_vm4, %v13283_v50 }
 0x1cc   : > { %10909 = vmatmul.mubr.msk.f32.gmra.mrb[30].mxu1 %vm915_vm4, %v13290_v30 }
 0x1cd   : > { %10913 = vmatprep.mubr.msk.f32.mxu1 %vm915_vm4, %v12731_v7  ;;  %v9627_v7 = vld [vmem:[%s15162_s3 + $0x30] sm:$0xff] }
 0x1d0   : > { %10914 = vmatmul.mubr.msk.f32.vlgmr.msra.gmra.mrb[0].mxu1 %vm915_vm4, %v12726_v4  ;;  %v13360_v4 = vld [vmem:[#allocation2 + $0x108] sm:$0xff] }
 0x1d1   : > { %10916 = vmatprep.mubr.msk.f32.mxu1 %vm915_vm4, %v12751_v20  ;;  %10962 = vmatpush3.msra.mxu1 %v13110_v57  ;;  %v15198_v20 = vld [vmem:[#allocation14_spill] sm:$0xff] }
 0x1d2   : > { %11011 = vmatprep.subr.mxu1 %v9594_v24  ;;  %v13564_v57 = vld [vmem:[#allocation2 + $0x60] sm:$0xff] }
 0x1d4   : > { %10917 = vmatmul.mubr.msk.f32.gmra.mrb[2].mxu1 %vm915_vm4, %v12741_v16  ;;  %v15197_v16 = vld [vmem:[#allocation13_spill] sm:$0xff] }
 0x1d5   : > { %10919 = vmatprep.mubr.msk.f32.mxu1 %vm915_vm4, %v12773_v32  ;;  %v15200_v32 = vld [vmem:[#allocation16_spill] sm:$0xff] }
 0x1d8   : > { %10920 = vmatmul.mubr.msk.f32.gmra.mrb[4].mxu1 %vm915_vm4, %v12767_v29  ;;  %v13424_v29 = vld [vmem:[#allocation2 + $0x110] sm:$0xff] }
 0x1d9   : > { %10922 = vmatprep.mubr.msk.f32.mxu1 %vm915_vm4, %v12793_v45 }
 0x1dc   : > { %10923 = vmatmul.mubr.msk.f32.gmra.mrb[6].mxu1 %vm915_vm4, %v12787_v42  ;;  %v15202_v42 = vrot.slane %v13008_v1, 1 }
 0x1dd   : > { %10925 = vmatprep.mubr.msk.f32.mxu1 %vm915_vm4, %v12813_v58  ;;  %v9660_v58 = vld [vmem:[%s15162_s3 + $0x38] sm:$0xff] }
 0x1e0   : > { %10926 = vmatmul.mubr.msk.f32.gmra.mrb[8].mxu1 %vm915_vm4, %v12807_v54  ;;  %v15204_v54 = vld [vmem:[#allocation19_spill] sm:$0xff] }
 0x1e1   : > { %10928 = vmatprep.mubr.msk.f32.mxu1 %vm915_vm4, %v12833_v9  ;;  %v15208_v9 = vld [vmem:[#allocation23_spill] sm:$0xff] }
 0x1e4   : > { %10929 = vmatmul.mubr.msk.f32.gmra.mrb[10].mxu1 %vm915_vm4, %v12827_v5  ;;  %v15207_v5 = vld [vmem:[#allocation22_spill] sm:$0xff] }
 0x1e5   : > { %10931 = vmatprep.mubr.msk.f32.mxu1 %vm915_vm4, %v12853_v25  ;;  %v15212_v25 = vld [vmem:[#allocation27_spill] sm:$0xff] }
 0x1e8   : > { %10932 = vmatmul.mubr.msk.f32.gmra.mrb[12].mxu1 %vm915_vm4, %v12847_v22  ;;  %v15211_v22 = vld [vmem:[#allocation26_spill] sm:$0xff] }
 0x1e9   : > { %10934 = vmatprep.mubr.msk.f32.mxu1 %vm915_vm4, %v12873_v46  ;;  %v15216_v46 = vld [vmem:[#allocation31_spill] sm:$0xff] }
 0x1ec   : > { %10935 = vmatmul.mubr.msk.f32.gmra.mrb[14].mxu1 %vm915_vm4, %v12867_v39  ;;  %v15215_v39 = vld [vmem:[#allocation30_spill] sm:$0xff] }
 0x1ed   : > { %10937 = vmatprep.mubr.msk.f32.mxu1 %vm915_vm4, %v12893_v0  ;;  %v15220_v0 = vld [vmem:[#allocation35_spill] sm:$0xff] }
 0x1f0   : > { %10938 = vmatmul.mubr.msk.f32.gmra.mrb[16].mxu1 %vm915_vm4, %v12887_v61  ;;  %v15219_v61 = vld [vmem:[#allocation34_spill] sm:$0xff] }
 0x1f1   : > { %10940 = vmatprep.mubr.msk.f32.mxu1 %vm915_vm4, %v12913_v26  ;;  %v15224_v26 = vld [vmem:[#allocation39_spill] sm:$0xff] }
 0x1f4   : > { %10941 = vmatmul.mubr.msk.f32.gmra.mrb[18].mxu1 %vm915_vm4, %v12907_v18  ;;  %v15223_v18 = vld [vmem:[#allocation38_spill] sm:$0xff] }
 0x1f5   : > { %10943 = vmatprep.mubr.msk.f32.mxu1 %vm915_vm4, %v12933_v51  ;;  %v15228_v51 = vld [vmem:[#allocation43_spill] sm:$0xff] }
 0x1f8   : > { %10944 = vmatmul.mubr.msk.f32.gmra.mrb[20].mxu1 %vm915_vm4, %v12927_v48  ;;  %v15227_v48 = vld [vmem:[#allocation42_spill] sm:$0xff] }
 0x1f9   : > { %10946 = vmatprep.mubr.msk.f32.mxu1 %vm915_vm4, %v12953_v31 }
 0x1fc   : > { %10947 = vmatmul.mubr.msk.f32.gmra.mrb[22].mxu1 %vm915_vm4, %v12947_v12 }
 0x1fd   : > { %10949 = vmatprep.mubr.msk.f32.mxu1 %vm915_vm4, %v12972_v37  ;;  %v13535_v37 = vld [vmem:[%s15162_s3 + $0x40] sm:$0xff]  ;;  %s12422_s3 = scalar_lea.vmem %s12421_s2, 32 }
 0x1fe   : > { %p12424_p1 = scmp.lt.s32.totalorder %s12422_s3, %s12416_s26 }
 0x200   : > { %10950 = vmatmul.mubr.msk.f32.gmra.mrb[24].mxu1 %vm915_vm4, %v12967_v62  ;;  %v13530_v62 = vld [vmem:[#allocation2 + $0x28] sm:$0xff]  ;;  %p12425_p2 = por %p12424_p1, %p12423_p0 }
 0x201   : > { %10952 = vmatprep.mubr.msk.f32.mxu1 %vm915_vm4, %v12989_v23  ;;  %v13548_v23 = vld [vmem:[#allocation2 + $0x40] sm:$0xff] }
 0x202   : > { %p12426_p3 = pnand %p12425_p2, %p12419_p13 }
 0x204   : > { %10953 = vmatmul.mubr.msk.f32.gmra.mrb[26].mxu1 %vm915_vm4, %v12985_v8  ;;  %v13544_v8 = vld [vmem:[#allocation2 + $0x38] sm:$0xff] }
 0x205   : > { %10955 = vmatprep.mubr.msk.f32.mxu1 %vm915_vm4, %v13005_v43  ;;  %v13560_v43 = vld [vmem:[#allocation2 + $0x58] sm:$0xff] }
 0x208   : > { %10956 = vmatmul.mubr.msk.f32.gmra.mrb[28].mxu1 %vm915_vm4, %v13001_v35  ;;  %v13556_v35 = vld [vmem:[#allocation2 + $0x50] sm:$0xff] }
 0x209   : > { %10958 = vmatprep.mubr.msk.f32.mxu1 %vm915_vm4, %v13008_v1  ;;  %v13539_v1 = vld [vmem:[#allocation2 + $0x30] sm:$0xff] }
 0x20c   : > { %10959 = vmatmul.mubr.msk.f32.gmra.mrb[30].mxu1 %vm915_vm4, %v13360_v4 }
 0x20d   : > { %10963 = vmatprep.mubr.msk.f32.mxu1 %vm915_vm4, %v12739_v15  ;;  %v15196_v15 = vld [vmem:[#allocation12_spill] sm:$0xff] }
 0x210   : > { %10964 = vmatmul.mubr.msk.f32.vlgmr.msra.gmra.mrb[0].mxu1 %vm915_vm4, %v12762_v27  ;;  %v15199_v27 = vld [vmem:[#allocation15_spill] sm:$0xff] }
 0x211   : > { %10966 = vmatprep.mubr.msk.f32.mxu1 %vm915_vm4, %v12765_v28  ;;  %11012 = vmatpush3.msra.mxu1 %v9594_v24  ;;  %v13422_v28 = vrot.slane %v13360_v4, 1  ;;  %v13600_v24 = vld [vmem:[#allocation2 + $0xa8] sm:$0xff] }
 0x212   : > { %11061 = vmatprep.subr.mxu1 %v9627_v7 }
 0x213   : > { %v2503_v45 = vsel %vm1017_vm5, %v15202_v42, %v13422_v28  ;;  %v13632_v42 = vld [vmem:[#allocation2 + $0xe8] sm:$0xff] }
 0x214   : > { %10967 = vmatmul.mubr.msk.f32.gmra.mrb[2].mxu1 %vm915_vm4, %v12782_v40  ;;  %v15201_v40 = vld [vmem:[#allocation17_spill] sm:$0xff] }
 0x215   : > { %10969 = vmatprep.mubr.msk.f32.mxu1 %vm915_vm4, %v12785_v41  ;;  %v2504_v41 = vrot.slane %v13424_v29, 1 }
 0x218   : > { %10970 = vmatmul.mubr.msk.f32.gmra.mrb[4].mxu1 %vm915_vm4, %v12802_v52  ;;  %v15203_v52 = vld [vmem:[#allocation18_spill] sm:$0xff] }
 0x219   : > { %10972 = vmatprep.mubr.msk.f32.mxu1 %vm915_vm4, %v12805_v53  ;;  %v13442_v53 = vsel %vm1017_vm5, %v13422_v28, %v2504_v41 }
 0x21c   : > { %10973 = vmatmul.mubr.msk.f32.gmra.mrb[6].mxu1 %vm915_vm4, %v12822_v2  ;;  %v15205_v2 = vld [vmem:[#allocation20_spill] sm:$0xff] }
 0x21d   : > { %10975 = vmatprep.mubr.msk.f32.mxu1 %vm915_vm4, %v12825_v3  ;;  %v15206_v3 = vld [vmem:[#allocation21_spill] sm:$0xff] }
 0x220   : > { %10976 = vmatmul.mubr.msk.f32.gmra.mrb[8].mxu1 %vm915_vm4, %v12842_v19  ;;  %v15209_v19 = vld [vmem:[#allocation24_spill] sm:$0xff] }
 0x221   : > { %10978 = vmatprep.mubr.msk.f32.mxu1 %vm915_vm4, %v12845_v21  ;;  %v15210_v21 = vld [vmem:[#allocation25_spill] sm:$0xff] }
 0x224   : > { %10979 = vmatmul.mubr.msk.f32.gmra.mrb[10].mxu1 %vm915_vm4, %v12862_v36  ;;  %v15213_v36 = vld [vmem:[#allocation28_spill] sm:$0xff] }
 0x225   : > { %10981 = vmatprep.mubr.msk.f32.mxu1 %vm915_vm4, %v12865_v38  ;;  %v15214_v38 = vld [vmem:[#allocation29_spill] sm:$0xff] }
 0x228   : > { %10982 = vmatmul.mubr.msk.f32.gmra.mrb[12].mxu1 %vm915_vm4, %v12882_v56  ;;  %v15217_v56 = vld [vmem:[#allocation32_spill] sm:$0xff] }
 0x229   : > { %10984 = vmatprep.mubr.msk.f32.mxu1 %vm915_vm4, %v12885_v59  ;;  %v15218_v59 = vld [vmem:[#allocation33_spill] sm:$0xff] }
 0x22c   : > { %10985 = vmatmul.mubr.msk.f32.gmra.mrb[14].mxu1 %vm915_vm4, %v12902_v13  ;;  %v15221_v13 = vld [vmem:[#allocation36_spill] sm:$0xff] }
 0x22d   : > { %10987 = vmatprep.mubr.msk.f32.mxu1 %vm915_vm4, %v12905_v14  ;;  %v15222_v14 = vld [vmem:[#allocation37_spill] sm:$0xff] }
 0x230   : > { %10988 = vmatmul.mubr.msk.f32.gmra.mrb[16].mxu1 %vm915_vm4, %v12922_v44  ;;  %v15225_v44 = vld [vmem:[#allocation40_spill] sm:$0xff] }
 0x231   : > { %10990 = vmatprep.mubr.msk.f32.mxu1 %vm915_vm4, %v12925_v47  ;;  %v15226_v47 = vld [vmem:[#allocation41_spill] sm:$0xff] }
 0x234   : > { %10991 = vmatmul.mubr.msk.f32.gmra.mrb[18].mxu1 %vm915_vm4, %v12942_v10  ;;  %v13504_v10 = vrot.slane %v13360_v4, 2 }
 0x235   : > { %10993 = vmatprep.mubr.msk.f32.mxu1 %vm915_vm4, %v12945_v11  ;;  %v2892_v11 = vrot.slane %v13424_v29, 2 }
 0x236   : > { %v2891_v12 = vsel %vm1663_vm6, %v1727_v17, %v13504_v10  ;;  %v13576_v17 = vld [vmem:[#allocation2 + $0x78] sm:$0xff] }
 0x237   : > { %v13522_v31 = vsel %vm1663_vm6, %v13504_v10, %v2892_v11 }
 0x238   : > { %10994 = vmatmul.mubr.msk.f32.gmra.mrb[20].mxu1 %vm915_vm4, %v12962_v49  ;;  %v13526_v49 = vld [vmem:[#allocation2 + $0x20] sm:$0xff] }
 0x239   : > { %10996 = vmatprep.mubr.msk.f32.mxu1 %vm915_vm4, %v15196_v15  ;;  %v13608_v15 = vld [vmem:[#allocation2 + $0xb8] sm:$0xff] }
 0x23c   : > { %10997 = vmatmul.mubr.msk.f32.gmra.mrb[22].mxu1 %vm915_vm4, %v15197_v16  ;;  %v13612_v16 = vld [vmem:[#allocation2 + $0xc0] sm:$0xff] }
 0x23d   : > { %10999 = vmatprep.mubr.msk.f32.mxu1 %vm915_vm4, %v15198_v20  ;;  %v13616_v20 = vld [vmem:[#allocation2 + $0xc8] sm:$0xff] }
 0x240   : > { %11000 = vmatmul.mubr.msk.f32.gmra.mrb[24].mxu1 %vm915_vm4, %v12996_v33  ;;  %v13552_v33 = vld [vmem:[#allocation2 + $0x48] sm:$0xff] }
 0x241   : > { %11002 = vmatprep.mubr.msk.f32.mxu1 %vm915_vm4, %v15199_v27  ;;  %v13620_v27 = vld [vmem:[#allocation2 + $0xd0] sm:$0xff] }
 0x244   : > { %11003 = vmatmul.mubr.msk.f32.gmra.mrb[26].mxu1 %vm915_vm4, %v15200_v32  ;;  %v13624_v32 = vld [vmem:[#allocation2 + $0xd8] sm:$0xff] }
 0x245   : > { %11005 = vmatprep.mubr.msk.f32.mxu1 %vm915_vm4, %v15201_v40  ;;  %v13628_v40 = vld [vmem:[#allocation2 + $0xe0] sm:$0xff] }
 0x248   : > { %11006 = vmatmul.mubr.msk.f32.gmra.mrb[28].mxu1 %vm915_vm4, %v15203_v52  ;;  %v13640_v52 = vld [vmem:[#allocation2 + $0xf8] sm:$0xff] }
 0x249   : > { %11008 = vmatprep.mubr.msk.f32.mxu1 %vm915_vm4, %v2503_v45  ;;  %v13636_v45 = vld [vmem:[#allocation2 + $0xf0] sm:$0xff] }
 0x24c   : > { %11009 = vmatmul.mubr.msk.f32.gmra.mrb[30].mxu1 %vm915_vm4, %v13442_v53 }
 0x24d   : > { %11013 = vmatprep.mubr.msk.f32.mxu1 %vm915_vm4, %v15204_v54  ;;  %v13644_v54 = vld [vmem:[#allocation2 + $0x100] sm:$0xff] }
 0x250   : > { %11014 = vmatmul.mubr.msk.f32.vlgmr.msra.gmra.mrb[0].mxu1 %vm915_vm4, %v15205_v2  ;;  %v3607_v2 = vrot.slane %v13530_v62, 1 }
 0x251   : > { %11016 = vmatprep.mubr.msk.f32.mxu1 %vm915_vm4, %v15206_v3  ;;  %11062 = vmatpush3.msra.mxu1 %v9627_v7  ;;  %v13604_v7 = vld [vmem:[#allocation2 + $0xb0] sm:$0xff]  ;;  %v13654_v3 = vld [vmem:[#allocation2 + $0x118] sm:$0xff] }
 0x252   : > { %11111 = vmatprep.subr.mxu1 %v9660_v58 }
 0x254   : > { %11017 = vmatmul.mubr.msk.f32.gmra.mrb[2].mxu1 %vm915_vm4, %v15207_v5  ;;  %v3609_v5 = vrot.slane %v13539_v1, 1 }
 0x255   : > { %11019 = vmatprep.mubr.msk.f32.mxu1 %vm915_vm4, %v15208_v9  ;;  %v3611_v9 = vrot.slane %v13544_v8, 1 }
 0x258   : > { %11020 = vmatmul.mubr.msk.f32.gmra.mrb[4].mxu1 %vm915_vm4, %v15209_v19 }
 0x259   : > { %11022 = vmatprep.mubr.msk.f32.mxu1 %vm915_vm4, %v15210_v21  ;;  %v4517_v21 = vld [vmem:[%s15109_s5 + $0x8] sm:$0x7] }
 0x25c   : > { %11023 = vmatmul.mubr.msk.f32.gmra.mrb[6].mxu1 %vm915_vm4, %v15211_v22 }
 0x25d   : > { %11025 = vmatprep.mubr.msk.f32.mxu1 %vm915_vm4, %v15212_v25  ;;  %v3613_v25 = vrot.slane %v13548_v23, 1 }
 0x260   : > { %11026 = vmatmul.mubr.msk.f32.gmra.mrb[8].mxu1 %vm915_vm4, %v15213_v36  ;;  %v3610_v36 = vsel %vm1017_vm5, %v3607_v2, %v3609_v5 }
 0x261   : > { %11028 = vmatprep.mubr.msk.f32.mxu1 %vm915_vm4, %v15214_v38  ;;  %v3615_v38 = vrot.slane %v13552_v33, 1 }
 0x264   : > { %11029 = vmatmul.mubr.msk.f32.gmra.mrb[10].mxu1 %vm915_vm4, %v15215_v39  ;;  %v3612_v39 = vsel %vm1017_vm5, %v3609_v5, %v3611_v9 }
 0x265   : > { %11031 = vmatprep.mubr.msk.f32.mxu1 %vm915_vm4, %v15216_v46  ;;  %v3617_v46 = vrot.slane %v13556_v35, 1 }
 0x268   : > { %11032 = vmatmul.mubr.msk.f32.gmra.mrb[12].mxu1 %vm915_vm4, %v15217_v56  ;;  %v3614_v56 = vsel %vm1017_vm5, %v3611_v9, %v3613_v25 }
 0x269   : > { %11034 = vmatprep.mubr.msk.f32.mxu1 %vm915_vm4, %v15218_v59  ;;  %v3619_v59 = vrot.slane %v13560_v43, 1 }
 0x26c   : > { %11035 = vmatmul.mubr.msk.f32.gmra.mrb[14].mxu1 %vm915_vm4, %v15219_v61  ;;  %v3616_v61 = vsel %vm1017_vm5, %v3613_v25, %v3615_v38 }
 0x26d   : > { %11037 = vmatprep.mubr.msk.f32.mxu1 %vm915_vm4, %v15220_v0  ;;  %v3621_v0 = vrot.slane %v13564_v57, 1 }
 0x270   : > { %11038 = vmatmul.mubr.msk.f32.gmra.mrb[16].mxu1 %vm915_vm4, %v15221_v13  ;;  %v3618_v13 = vsel %vm1017_vm5, %v3615_v38, %v3617_v46 }
 0x271   : > { %11040 = vmatprep.mubr.msk.f32.mxu1 %vm915_vm4, %v15222_v14  ;;  %v3623_v14 = vrot.slane %v13568_v34, 1 }
 0x274   : > { %11041 = vmatmul.mubr.msk.f32.gmra.mrb[18].mxu1 %vm915_vm4, %v15223_v18  ;;  %v3620_v18 = vsel %vm1017_vm5, %v3617_v46, %v3619_v59 }
 0x275   : > { %11043 = vmatprep.mubr.msk.f32.mxu1 %vm915_vm4, %v15224_v26  ;;  %v3625_v26 = vrot.slane %v13572_v60, 1 }
 0x278   : > { %11044 = vmatmul.mubr.msk.f32.gmra.mrb[20].mxu1 %vm915_vm4, %v15225_v44  ;;  %v3622_v44 = vsel %vm1017_vm5, %v3619_v59, %v3621_v0 }
 0x279   : > { %11046 = vmatprep.mubr.msk.f32.mxu1 %vm915_vm4, %v15226_v47  ;;  %v3627_v47 = vrot.slane %v13576_v17, 1 }
 0x27c   : > { %11047 = vmatmul.mubr.msk.f32.gmra.mrb[22].mxu1 %vm915_vm4, %v15227_v48  ;;  %v3624_v48 = vsel %vm1017_vm5, %v3621_v0, %v3623_v14 }
 0x27d   : > { %11049 = vmatprep.mubr.msk.f32.mxu1 %vm915_vm4, %v15228_v51 }
 0x280   : > { %11050 = vmatmul.mubr.msk.f32.gmra.mrb[24].mxu1 %vm915_vm4, %v13265_v55  ;;  %v13580_v55 = vld [vmem:[#allocation2 + $0x80] sm:$0xff] }
 0x281   : > { %11052 = vmatprep.mubr.msk.f32.mxu1 %vm915_vm4, %v13271_v63  ;;  %v13584_v63 = vld [vmem:[#allocation2 + $0x88] sm:$0xff]  ;;  %v3629_v51 = vrot.slane %v13580_v55, 1 }
 0x283   : > { %v3630_v5 = vsel %vm1017_vm5, %v3627_v47, %v3629_v51 }
 0x284   : > { %11053 = vmatmul.mubr.msk.f32.gmra.mrb[26].mxu1 %vm915_vm4, %v13277_v6  ;;  %v13588_v6 = vld [vmem:[#allocation2 + $0x90] sm:$0xff] }
 0x285   : > { %11055 = vmatprep.mubr.msk.f32.mxu1 %vm915_vm4, %v13283_v50  ;;  %v13592_v50 = vld [vmem:[#allocation2 + $0x98] sm:$0xff] }
 0x286   : > { %v3635_v9 = vrot.slane %v13592_v50, 1 }
 0x288   : > { %11056 = vmatmul.mubr.msk.f32.gmra.mrb[28].mxu1 %vm915_vm4, %v13290_v30  ;;  %v13596_v30 = vld [vmem:[#allocation2 + $0xa0] sm:$0xff] }
 0x289   : > { %11058 = vmatprep.mubr.msk.f32.mxu1 %vm915_vm4, %v2891_v12  ;;  %v3626_v12 = vsel %vm1017_vm5, %v3623_v14, %v3625_v26 }
 0x28c   : > { %11059 = vmatmul.mubr.msk.f32.gmra.mrb[30].mxu1 %vm915_vm4, %v13522_v31 }
 0x28d   : > { %11063 = vmatprep.mubr.msk.f32.mxu1 %vm915_vm4, %v13526_v49 }
 0x290   : > { %11064 = vmatmul.mubr.msk.f32.vlgmr.msra.gmra.mrb[0].mxu1 %vm915_vm4, %v13530_v62 }
 0x291   : > { %11066 = vmatprep.mubr.msk.f32.mxu1 %vm915_vm4, %v13539_v1  ;;  %11112 = vmatpush3.msra.mxu1 %v9660_v58  ;;  %v3606_v58 = vrot.slane %v13526_v49, 1 }
 0x292   : > { %11161 = vmatprep.subr.mxu1 %v13535_v37 }
 0x293   : > { %v3608_v19 = vsel %vm1017_vm5, %v3606_v58, %v3607_v2  ;;  %v3628_v58 = vsel %vm1017_vm5, %v3625_v26, %v3627_v47  ;;  %v3633_v2 = vrot.slane %v13588_v6, 1 }
 0x294   : > { %11067 = vmatmul.mubr.msk.f32.gmra.mrb[2].mxu1 %vm915_vm4, %v13544_v8 }
 0x295   : > { %11069 = vmatprep.mubr.msk.f32.mxu1 %vm915_vm4, %v13548_v23  ;;  %v3636_v25 = vsel %vm1017_vm5, %v3633_v2, %v3635_v9 }
 0x298   : > { %11070 = vmatmul.mubr.msk.f32.gmra.mrb[4].mxu1 %vm915_vm4, %v13552_v33 }
 0x299   : > { %11072 = vmatprep.mubr.msk.f32.mxu1 %vm915_vm4, %v13556_v35 }
 0x29c   : > { %11073 = vmatmul.mubr.msk.f32.gmra.mrb[6].mxu1 %vm915_vm4, %v13560_v43 }
 0x29d   : > { %11075 = vmatprep.mubr.msk.f32.mxu1 %vm915_vm4, %v13564_v57 }
 0x2a0   : > { %11076 = vmatmul.mubr.msk.f32.gmra.mrb[8].mxu1 %vm915_vm4, %v13568_v34 }
 0x2a1   : > { %11078 = vmatprep.mubr.msk.f32.mxu1 %vm915_vm4, %v13572_v60 }
 0x2a4   : > { %11079 = vmatmul.mubr.msk.f32.gmra.mrb[10].mxu1 %vm915_vm4, %v13576_v17 }
 0x2a5   : > { %11081 = vmatprep.mubr.msk.f32.mxu1 %vm915_vm4, %v13580_v55 }
 0x2a8   : > { %11082 = vmatmul.mubr.msk.f32.gmra.mrb[12].mxu1 %vm915_vm4, %v13584_v63 }
 0x2a9   : > { %11084 = vmatprep.mubr.msk.f32.mxu1 %vm915_vm4, %v13588_v6 }
 0x2ac   : > { %11085 = vmatmul.mubr.msk.f32.gmra.mrb[14].mxu1 %vm915_vm4, %v13592_v50 }
 0x2ad   : > { %11087 = vmatprep.mubr.msk.f32.mxu1 %vm915_vm4, %v13596_v30 }
 0x2b0   : > { %11088 = vmatmul.mubr.msk.f32.gmra.mrb[16].mxu1 %vm915_vm4, %v13600_v24 }
 0x2b1   : > { %11090 = vmatprep.mubr.msk.f32.mxu1 %vm915_vm4, %v13604_v7 }
 0x2b4   : > { %11091 = vmatmul.mubr.msk.f32.gmra.mrb[18].mxu1 %vm915_vm4, %v13608_v15 }
 0x2b5   : > { %11093 = vmatprep.mubr.msk.f32.mxu1 %vm915_vm4, %v13612_v16 }
 0x2b8   : > { %11094 = vmatmul.mubr.msk.f32.gmra.mrb[20].mxu1 %vm915_vm4, %v13616_v20 }
 0x2b9   : > { %11096 = vmatprep.mubr.msk.f32.mxu1 %vm915_vm4, %v13620_v27 }
 0x2bc   : > { %11097 = vmatmul.mubr.msk.f32.gmra.mrb[22].mxu1 %vm915_vm4, %v13624_v32 }
 0x2bd   : > { %11099 = vmatprep.mubr.msk.f32.mxu1 %vm915_vm4, %v13628_v40 }
 0x2c0   : > { %11100 = vmatmul.mubr.msk.f32.gmra.mrb[24].mxu1 %vm915_vm4, %v13632_v42 }
 0x2c1   : > { %11102 = vmatprep.mubr.msk.f32.mxu1 %vm915_vm4, %v13636_v45 }
 0x2c4   : > { %11103 = vmatmul.mubr.msk.f32.gmra.mrb[26].mxu1 %vm915_vm4, %v13640_v52 }
 0x2c5   : > { %11105 = vmatprep.mubr.msk.f32.mxu1 %vm915_vm4, %v13644_v54 }
 0x2c8   : > { %11106 = vmatmul.mubr.msk.f32.gmra.mrb[28].mxu1 %vm915_vm4, %v13360_v4  ;;  %v4516_v4 = vld [vmem:[%s15109_s5] sm:$0xff] }
 0x2c9   : > { %11108 = vmatprep.mubr.msk.f32.mxu1 %vm915_vm4, %v13424_v29  ;;  %v11731_v22 = vpack.c.bf16 %v4517_v21, %v4516_v4  ;;  %v3637_v4 = vrot.slane %v13596_v30, 1  ;;  %v9760_v29 = vld [vmem:[%s15110_s6 + $0x10] sm:$0xff] }
 0x2cb   : > { %11733 = vmatprep.subr.msk.bf16.mxu0 %vm11732_vm8, %v11731_v22  ;;  %v3638_v38 = vsel %vm1017_vm5, %v3635_v9, %v3637_v4 }
 0x2cc   : > { %11109 = vmatmul.mubr.msk.f32.gmra.mrb[30].mxu1 %vm915_vm4, %v13654_v3  ;;  %11736 = vmatpush3.bf16.msk.msra.mxu0 %vm11732_vm8, %v11731_v22  ;;  %v3639_v22 = vrot.slane %v13600_v24, 1  ;;  %vm9231_vm8 = vcmask 252928  }
 0x2cd   : > { %11113 = vmatprep.mubr.msk.f32.mxu1 %vm915_vm4, %v3608_v19 }
 0x2ce   : > { %v3640_v46 = vsel %vm1017_vm5, %v3637_v4, %v3639_v22  ;;  %v3667_v4 = vrot.slane %v13654_v3, 1 }
 0x2d0   : > { %11114 = vmatmul.mubr.msk.f32.vlgmr.msra.gmra.mrb[0].mxu1 %vm915_vm4, %v3610_v36  ;;  %v3641_v36 = vrot.slane %v13604_v7, 1 }
 0x2d1   : > { %11116 = vmatprep.mubr.msk.f32.mxu1 %vm915_vm4, %v3612_v39  ;;  %11162 = vmatpush3.msra.mxu1 %v13535_v37  ;;  %v3631_v37 = vrot.slane %v13584_v63, 1  ;;  %v3643_v39 = vrot.slane %v13608_v15, 1 }
 0x2d2   : > { %v3642_v59 = vsel %vm1017_vm5, %v3639_v22, %v3641_v36  ;;  %v13750_v22 = vld [vmem:[#allocation2 + $0x120] sm:$0xff] }
 0x2d3   : > { %v3632_v19 = vsel %vm1017_vm5, %v3629_v51, %v3631_v37  ;;  %v3634_v21 = vsel %vm1017_vm5, %v3631_v37, %v3633_v2  ;;  %v3644_v0 = vsel %vm1017_vm5, %v3641_v36, %v3643_v39  ;;  %v3669_v36 = vrot.slane %v13750_v22, 1 }
 0x2d4   : > { %11117 = vmatmul.mubr.msk.f32.gmra.mrb[2].mxu1 %vm915_vm4, %v3614_v56  ;;  %v3645_v56 = vrot.slane %v13612_v16, 1 }
 0x2d5   : > { %11119 = vmatprep.mubr.msk.f32.mxu1 %vm915_vm4, %v3616_v61  ;;  %v3647_v61 = vrot.slane %v13616_v20, 1 }
 0x2d6   : > { %v3646_v14 = vsel %vm1017_vm5, %v3643_v39, %v3645_v56  ;;  %v3994_v39 = vrot.slane %v13526_v49, 2  ;;  %v4003_v49 = vrot.slane %v13552_v33, 2  ;;  %v4009_v33 = vrot.slane %v13564_v57, 2 }
 0x2d7   : > { %v3648_v26 = vsel %vm1017_vm5, %v3645_v56, %v3647_v61  ;;  %v3997_v56 = vrot.slane %v13539_v1, 2  ;;  %v4005_v1 = vrot.slane %v13556_v35, 2 }
 0x2d8   : > { %11120 = vmatmul.mubr.msk.f32.gmra.mrb[4].mxu1 %vm915_vm4, %v3618_v13  ;;  %v3649_v13 = vrot.slane %v13620_v27, 1 }
 0x2d9   : > { %11122 = vmatprep.mubr.msk.f32.mxu1 %vm915_vm4, %v3620_v18  ;;  %v3651_v18 = vrot.slane %v13624_v32, 1 }
 0x2da   : > { %v3650_v47 = vsel %vm1017_vm5, %v3647_v61, %v3649_v13 }
 0x2db   : > { %v3652_v51 = vsel %vm1017_vm5, %v3649_v13, %v3651_v18  ;;  %v4006_v13 = vsel %vm1663_vm6, %v4003_v49, %v4005_v1 }
 0x2dc   : > { %11123 = vmatmul.mubr.msk.f32.gmra.mrb[6].mxu1 %vm915_vm4, %v3622_v44  ;;  %v3653_v44 = vrot.slane %v13628_v40, 1 }
 0x2dd   : > { %11125 = vmatprep.mubr.msk.f32.mxu1 %vm915_vm4, %v3624_v48  ;;  %v3655_v48 = vrot.slane %v13632_v42, 1 }
 0x2de   : > { %v3654_v37 = vsel %vm1017_vm5, %v3651_v18, %v3653_v44 }
 0x2df   : > { %v3656_v2 = vsel %vm1017_vm5, %v3653_v44, %v3655_v48 }
 0x2e0   : > { %11126 = vmatmul.mubr.msk.f32.gmra.mrb[8].mxu1 %vm915_vm4, %v3626_v12  ;;  %v3657_v12 = vrot.slane %v13636_v45, 1 }
 0x2e1   : > { %11128 = vmatprep.mubr.msk.f32.mxu1 %vm915_vm4, %v3628_v58  ;;  %v3659_v58 = vrot.slane %v13640_v52, 1 }
 0x2e2   : > { %v3658_v9 = vsel %vm1017_vm5, %v3655_v48, %v3657_v12 }
 0x2e4   : > { %11129 = vmatmul.mubr.msk.f32.gmra.mrb[10].mxu1 %vm915_vm4, %v3630_v5  ;;  %v3661_v5 = vrot.slane %v13644_v54, 1 }
 0x2e5   : > { %11131 = vmatprep.mubr.msk.f32.mxu1 %vm915_vm4, %v3632_v19  ;;  %v3660_v19 = vsel %vm1017_vm5, %v3657_v12, %v3659_v58 }
 0x2e8   : > { %11132 = vmatmul.mubr.msk.f32.gmra.mrb[12].mxu1 %vm915_vm4, %v3634_v21  ;;  %v3664_v21 = vsel %vm1017_vm5, %v3661_v5, %v13422_v28  ;;  %v3995_v28 = vrot.slane %v13530_v62, 2 }
 0x2e9   : > { %11134 = vmatprep.mubr.msk.f32.mxu1 %vm915_vm4, %v3636_v25  ;;  %v3662_v25 = vsel %vm1017_vm5, %v3659_v58, %v3661_v5 }
 0x2ea   : > { %v3996_v61 = vsel %vm1663_vm6, %v3994_v39, %v3995_v28 }
 0x2ec   : > { %11135 = vmatmul.mubr.msk.f32.gmra.mrb[14].mxu1 %vm915_vm4, %v3638_v38  ;;  %v3668_v38 = vsel %vm1017_vm5, %v2504_v41, %v3667_v4  ;;  %v4001_v41 = vrot.slane %v13548_v23, 2 }
 0x2ed   : > { %11137 = vmatprep.mubr.msk.f32.mxu1 %vm915_vm4, %v3640_v46  ;;  %v3670_v46 = vsel %vm1017_vm5, %v3667_v4, %v3669_v36  ;;  %v4039_v4 = vrot.slane %v13624_v32, 2  ;;  %v4045_v32 = vrot.slane %v13636_v45, 2  ;;  %v4055_v45 = vrot.slane %v13654_v3, 2 }
 0x2ee   : > { %v4004_v23 = vsel %vm1663_vm6, %v4001_v41, %v4003_v49 }
 0x2f0   : > { %11138 = vmatmul.mubr.msk.f32.gmra.mrb[16].mxu1 %vm915_vm4, %v3642_v59  ;;  %v3999_v59 = vrot.slane %v13544_v8, 2 }
 0x2f1   : > { %11140 = vmatprep.mubr.msk.f32.mxu1 %vm915_vm4, %v3644_v0  ;;  %v4007_v0 = vrot.slane %v13560_v43, 2  ;;  %v4013_v43 = vrot.slane %v13572_v60, 2 }
 0x2f2   : > { %v4000_v62 = vsel %vm1663_vm6, %v3997_v56, %v3999_v59  ;;  %v4002_v8 = vsel %vm1663_vm6, %v3999_v59, %v4001_v41 }
 0x2f3   : > { %v4008_v35 = vsel %vm1663_vm6, %v4005_v1, %v4007_v0  ;;  %v4010_v18 = vsel %vm1663_vm6, %v4007_v0, %v4009_v33 }
 0x2f4   : > { %11141 = vmatmul.mubr.msk.f32.gmra.mrb[18].mxu1 %vm915_vm4, %v3646_v14  ;;  %v4011_v14 = vrot.slane %v13568_v34, 2  ;;  %v4017_v34 = vrot.slane %v13580_v55, 2 }
 0x2f5   : > { %11143 = vmatprep.mubr.msk.f32.mxu1 %vm915_vm4, %v3648_v26  ;;  %v4015_v26 = vrot.slane %v13576_v17, 2  ;;  %v4021_v17 = vrot.slane %v13588_v6, 2 }
 0x2f6   : > { %v4012_v57 = vsel %vm1663_vm6, %v4009_v33, %v4011_v14  ;;  %v4014_v44 = vsel %vm1663_vm6, %v4011_v14, %v4013_v43 }
 0x2f7   : > { %v4016_v60 = vsel %vm1663_vm6, %v4013_v43, %v4015_v26  ;;  %v4018_v48 = vsel %vm1663_vm6, %v4015_v26, %v4017_v34 }
 0x2f8   : > { %11144 = vmatmul.mubr.msk.f32.gmra.mrb[20].mxu1 %vm915_vm4, %v3650_v47  ;;  %v4019_v47 = vrot.slane %v13584_v63, 2  ;;  %v4025_v63 = vrot.slane %v13596_v30, 2 }
 0x2f9   : > { %11146 = vmatprep.mubr.msk.f32.mxu1 %vm915_vm4, %v3652_v51  ;;  %v4023_v51 = vrot.slane %v13592_v50, 2  ;;  %v4029_v50 = vrot.slane %v13604_v7, 2 }
 0x2fa   : > { %v4020_v55 = vsel %vm1663_vm6, %v4017_v34, %v4019_v47  ;;  %v4022_v12 = vsel %vm1663_vm6, %v4019_v47, %v4021_v17 }
 0x2fb   : > { %v4024_v6 = vsel %vm1663_vm6, %v4021_v17, %v4023_v51  ;;  %v4026_v58 = vsel %vm1663_vm6, %v4023_v51, %v4025_v63 }
 0x2fc   : > { %11147 = vmatmul.mubr.msk.f32.gmra.mrb[22].mxu1 %vm915_vm4, %v3654_v37  ;;  %v4027_v37 = vrot.slane %v13600_v24, 2  ;;  %v4033_v24 = vrot.slane %v13612_v16, 2 }
 0x2fd   : > { %11149 = vmatprep.mubr.msk.f32.mxu1 %vm915_vm4, %v3656_v2  ;;  %v4031_v2 = vrot.slane %v13608_v15, 2  ;;  %v4037_v15 = vrot.slane %v13620_v27, 2 }
 0x2fe   : > { %v4028_v30 = vsel %vm1663_vm6, %v4025_v63, %v4027_v37  ;;  %v4030_v5 = vsel %vm1663_vm6, %v4027_v37, %v4029_v50 }
 0x2ff   : > { %v4032_v7 = vsel %vm1663_vm6, %v4029_v50, %v4031_v2  ;;  %v4040_v27 = vsel %vm1663_vm6, %v4037_v15, %v4039_v4 }
 0x300   : > { %11150 = vmatmul.mubr.msk.f32.gmra.mrb[24].mxu1 %vm915_vm4, %v3658_v9  ;;  %v4035_v9 = vrot.slane %v13616_v20, 2  ;;  %v4041_v20 = vrot.slane %v13628_v40, 2 }
 0x301   : > { %11152 = vmatprep.mubr.msk.f32.mxu1 %vm915_vm4, %v3660_v19  ;;  %v4034_v19 = vsel %vm1663_vm6, %v4031_v2, %v4033_v24 }
 0x302   : > { %v4036_v16 = vsel %vm1663_vm6, %v4033_v24, %v4035_v9  ;;  %v4042_v36 = vsel %vm1663_vm6, %v4039_v4, %v4041_v20 }
 0x304   : > { %11153 = vmatmul.mubr.msk.f32.gmra.mrb[26].mxu1 %vm915_vm4, %v3662_v25  ;;  %v4043_v25 = vrot.slane %v13632_v42, 2  ;;  %v4049_v42 = vrot.slane %v13644_v54, 2  ;;  %v4057_v54 = vrot.slane %v13750_v22, 2  ;;  %v13878_v22 = vld [vmem:[%s15108_s4] ss:$0 sm:$0xff] }
 0x305   : > { %11155 = vmatprep.mubr.msk.f32.mxu1 %vm915_vm4, %v3664_v21  ;;  %v4038_v21 = vsel %vm1663_vm6, %v4035_v9, %v4037_v15 }
 0x306   : > { %v4044_v40 = vsel %vm1663_vm6, %v4041_v20, %v4043_v25  ;;  %v4046_v39 = vsel %vm1663_vm6, %v4043_v25, %v4045_v32  ;;  %v4058_v3 = vsel %vm1663_vm6, %v4055_v45, %v4057_v54 }
 0x308   : > { %11156 = vmatmul.mubr.msk.f32.gmra.mrb[28].mxu1 %vm915_vm4, %v13442_v53  ;;  %v3998_v53 = vsel %vm1663_vm6, %v3995_v28, %v3997_v56  ;;  %v4056_v56 = vsel %vm1663_vm6, %v2892_v11, %v4055_v45  ;;  %v9761_v11 = vld [vmem:[%s15110_s6 + $0x18] sm:$0x3] }
 0x309   : > { %11158 = vmatprep.mubr.msk.f32.mxu1 %vm915_vm4, %v3668_v38  ;;  %v4047_v38 = vrot.slane %v13640_v52, 2  ;;  %v4052_v52 = vsel %vm1663_vm6, %v4049_v42, %v13504_v10 }
 0x30b   : > { %v4048_v28 = vsel %vm1663_vm6, %v4045_v32, %v4047_v38 }
 0x30c   : > { %11159 = vmatmul.mubr.msk.f32.gmra.mrb[30].mxu1 %vm915_vm4, %v3670_v46  ;;  %v4050_v46 = vsel %vm1663_vm6, %v4047_v38, %v4049_v42 }
 0x30d   : > { %11163 = vmatprep.mubr.msk.f32.mxu1 %vm915_vm4, %v3996_v61 }
 0x310   : > { %11164 = vmatmul.mubr.msk.f32.vlgmr.msra.gmra.mrb[0].mxu1 %vm915_vm4, %v3998_v53 }
 0x311   : > { %11166 = vmatprep.mubr.msk.f32.mxu1 %vm915_vm4, %v4000_v62 }
 0x314   : > { %11167 = vmatmul.mubr.msk.f32.gmra.mrb[2].mxu1 %vm915_vm4, %v4002_v8 }
 0x315   : > { %11169 = vmatprep.mubr.msk.f32.mxu1 %vm915_vm4, %v4004_v23 }
 0x318   : > { %11170 = vmatmul.mubr.msk.f32.gmra.mrb[4].mxu1 %vm915_vm4, %v4006_v13 }
 0x319   : > { %11172 = vmatprep.mubr.msk.f32.mxu1 %vm915_vm4, %v4008_v35 }
 0x31c   : > { %11173 = vmatmul.mubr.msk.f32.gmra.mrb[6].mxu1 %vm915_vm4, %v4010_v18 }
 0x31d   : > { %11175 = vmatprep.mubr.msk.f32.mxu1 %vm915_vm4, %v4012_v57 }
 0x320   : > { %11176 = vmatmul.mubr.msk.f32.gmra.mrb[8].mxu1 %vm915_vm4, %v4014_v44 }
 0x321   : > { %11178 = vmatprep.mubr.msk.f32.mxu1 %vm915_vm4, %v4016_v60 }
 0x324   : > { %11179 = vmatmul.mubr.msk.f32.gmra.mrb[10].mxu1 %vm915_vm4, %v4018_v48 }
 0x325   : > { %11181 = vmatprep.mubr.msk.f32.mxu1 %vm915_vm4, %v4020_v55 }
 0x328   : > { %11182 = vmatmul.mubr.msk.f32.gmra.mrb[12].mxu1 %vm915_vm4, %v4022_v12 }
 0x329   : > { %11184 = vmatprep.mubr.msk.f32.mxu1 %vm915_vm4, %v4024_v6 }
 0x32c   : > { %11185 = vmatmul.mubr.msk.f32.gmra.mrb[14].mxu1 %vm915_vm4, %v4026_v58 }
 0x32d   : > { %11187 = vmatprep.mubr.msk.f32.mxu1 %vm915_vm4, %v4028_v30 }
 0x330   : > { %11188 = vmatmul.mubr.msk.f32.gmra.mrb[16].mxu1 %vm915_vm4, %v4030_v5 }
 0x331   : > { %11190 = vmatprep.mubr.msk.f32.mxu1 %vm915_vm4, %v4032_v7 }
 0x334   : > { %11191 = vmatmul.mubr.msk.f32.gmra.mrb[18].mxu1 %vm915_vm4, %v4034_v19 }
 0x335   : > { %11193 = vmatprep.mubr.msk.f32.mxu1 %vm915_vm4, %v4036_v16 }
 0x338   : > { %11194 = vmatmul.mubr.msk.f32.gmra.mrb[20].mxu1 %vm915_vm4, %v4038_v21 }
 0x339   : > { %11196 = vmatprep.mubr.msk.f32.mxu1 %vm915_vm4, %v4040_v27 }
 0x33c   : > { %11197 = vmatmul.mubr.msk.f32.gmra.mrb[22].mxu1 %vm915_vm4, %v4042_v36 }
 0x33d   : > { %11199 = vmatprep.mubr.msk.f32.mxu1 %vm915_vm4, %v4044_v40 }
 0x340   : > { %11200 = vmatmul.mubr.msk.f32.gmra.mrb[24].mxu1 %vm915_vm4, %v4046_v39 }
 0x341   : > { %11202 = vmatprep.mubr.msk.f32.mxu1 %vm915_vm4, %v4048_v28 }
 0x344   : > { %11203 = vmatmul.mubr.msk.f32.gmra.mrb[26].mxu1 %vm915_vm4, %v4050_v46 }
 0x345   : > { %11205 = vmatprep.mubr.msk.f32.mxu1 %vm915_vm4, %v4052_v52 }
 0x348   : > { %11206 = vmatmul.mubr.msk.f32.gmra.mrb[28].mxu1 %vm915_vm4, %v13522_v31  ;;  %v11737_v31 = vpack.c.bf16 %v9761_v11, %v9760_v29 }
 0x349   : > { %11208 = vmatprep.mubr.msk.f32.mxu1 %vm915_vm4, %v4056_v56 }
 0x34a   : > { %11739 = vmatprep.subr.msk.bf16.mxu0 %vm13863_vm10, %v11737_v31 }
 0x34c   : > { %11209 = vmatmul.mubr.msk.f32.gmra.mrb[30].mxu1 %vm915_vm4, %v4058_v3  ;;  %vm12484_vm4 = vmmov 0  }
 0x3e3   : > { %v11165_v59 = vpop.f32.mrb[0].mxu1 }
 0x3e4   : > { %v4388_v61 = vadd.f32 %v11165_v59, %v13878_v22  ;;  %v4189_v41 = vpop.f32.mrb[1].mxu1 }
 0x3e5   : > { %v4387_v53 = vadd.f32 %v13878_v22, %v4189_v41 }
 0x3e6   : > { %v4420_v49 = vmax.f32 %v4388_v61, 0.0 }
 0x3e7   : > { %v4419_v62 = vmax.f32 %v4387_v53, 0.0  ;;  %v11168_v1 = vpop.f32.mrb[2].mxu1 }
 0x3e8   : > { %4453 = vst.msk [vmem:[#allocation3 + $0x8] sm:$0xff] %vm4451_vm11, %v4420_v49  ;;  %v4390_v8 = vadd.f32 %v11168_v1, %v13878_v22  ;;  %v4199_v0 = vpop.f32.mrb[3].mxu1 }
 0x3e9   : > { %4452 = vst.msk [vmem:[#allocation3] sm:$0xff] %vm4451_vm11, %v4419_v62  ;;  %v4389_v23 = vadd.f32 %v13878_v22, %v4199_v0 }
 0x3ea   : > { %v4422_v33 = vmax.f32 %v4390_v8, 0.0 }
 0x3eb   : > { %v4421_v13 = vmax.f32 %v4389_v23, 0.0  ;;  %v11171_v14 = vpop.f32.mrb[4].mxu1 }
 0x3ec   : > { %4455 = vst.msk [vmem:[#allocation3 + $0x18] sm:$0xff] %vm4451_vm11, %v4422_v33  ;;  %v4392_v35 = vadd.f32 %v11171_v14, %v13878_v22  ;;  %v4209_v43 = vpop.f32.mrb[5].mxu1 }
 0x3ed   : > { %4454 = vst.msk [vmem:[#allocation3 + $0x10] sm:$0xff] %vm4451_vm11, %v4421_v13  ;;  %v4391_v18 = vadd.f32 %v13878_v22, %v4209_v43 }
 0x3ee   : > { %v4424_v26 = vmax.f32 %v4392_v35, 0.0 }
 0x3ef   : > { %v4423_v57 = vmax.f32 %v4391_v18, 0.0  ;;  %v11174_v34 = vpop.f32.mrb[6].mxu1  ;;  %v4485_v48 = vld [vmem:[#allocation3 + $0x8] sm:$0xff] }
 0x3f0   : > { %4457 = vst.msk [vmem:[#allocation3 + $0x28] sm:$0xff] %vm4451_vm11, %v4424_v26  ;;  %v4394_v44 = vadd.f32 %v11174_v34, %v13878_v22  ;;  %v4219_v47 = vpop.f32.mrb[7].mxu1  ;;  %v4484_v60 = vld [vmem:[#allocation3] sm:$0xff] }
 0x3f1   : > { %4456 = vst.msk [vmem:[#allocation3 + $0x20] sm:$0xff] %vm4451_vm11, %v4423_v57  ;;  %v4393_v17 = vadd.f32 %v13878_v22, %v4219_v47  ;;  %11215 = vmatprep.mubr.msk.f32.mxu0 %vm4451_vm11, %v4484_v60 }
 0x3f2   : > { %v4426_v51 = vmax.f32 %v4394_v44, 0.0  ;;  %11216 = vmatmul.mubr.msk.f32.vlgmr.msra.gmra.mrb[32].mxu0 %vm4451_vm11, %v4485_v48 }
 0x3f3   : > { %v4425_v55 = vmax.f32 %v4393_v17, 0.0  ;;  %v11177_v63 = vpop.f32.mrb[8].mxu1  ;;  %11742 = vmatpush3.bf16.msk.msra.mxu0 %vm13863_vm10, %v11737_v31  ;;  %v4487_v58 = vld [vmem:[#allocation3 + $0x18] sm:$0xff] }
 0x3f4   : > { %4459 = vst.msk [vmem:[#allocation3 + $0x38] sm:$0xff] %vm4451_vm11, %v4426_v51  ;;  %v4396_v12 = vadd.f32 %v11177_v63, %v13878_v22  ;;  %v4229_v37 = vpop.f32.mrb[9].mxu1  ;;  %v4486_v6 = vld [vmem:[#allocation3 + $0x10] sm:$0xff] }
 0x3f5   : > { %4458 = vst.msk [vmem:[#allocation3 + $0x30] sm:$0xff] %vm4451_vm11, %v4425_v55  ;;  %v4395_v50 = vadd.f32 %v13878_v22, %v4229_v37  ;;  %11218 = vmatprep.mubr.msk.f32.mxu0 %vm4451_vm11, %v4486_v6 }
 0x3f6   : > { %v4428_v2 = vmax.f32 %v4396_v12, 0.0  ;;  %11219 = vmatmul.mubr.msk.f32.gmra.mrb[34].mxu0 %vm4451_vm11, %v4487_v58 }
 0x3f7   : > { %v4427_v30 = vmax.f32 %v4395_v50, 0.0  ;;  %v11180_v24 = vpop.f32.mrb[10].mxu1  ;;  %v4489_v19 = vld [vmem:[#allocation3 + $0x28] sm:$0xff] }
 0x3f8   : > { %4461 = vst.msk [vmem:[#allocation3 + $0x48] sm:$0xff] %vm4451_vm11, %v4428_v2  ;;  %v4398_v5 = vadd.f32 %v11180_v24, %v13878_v22  ;;  %v4239_v9 = vpop.f32.mrb[11].mxu1  ;;  %v4488_v7 = vld [vmem:[#allocation3 + $0x20] sm:$0xff] }
 0x3f9   : > { %4460 = vst.msk [vmem:[#allocation3 + $0x40] sm:$0xff] %vm4451_vm11, %v4427_v30  ;;  %v4397_v15 = vadd.f32 %v13878_v22, %v4239_v9  ;;  %11221 = vmatprep.mubr.msk.f32.mxu0 %vm4451_vm11, %v4488_v7 }
 0x3fa   : > { %v4430_v4 = vmax.f32 %v4398_v5, 0.0  ;;  %11222 = vmatmul.mubr.msk.f32.gmra.mrb[36].mxu0 %vm4451_vm11, %v4489_v19 }
 0x3fb   : > { %v4429_v16 = vmax.f32 %v4397_v15, 0.0  ;;  %v11183_v20 = vpop.f32.mrb[12].mxu1  ;;  %v4491_v36 = vld [vmem:[#allocation3 + $0x38] sm:$0xff] }
 0x3fc   : > { %4463 = vst.msk [vmem:[#allocation3 + $0x58] sm:$0xff] %vm4451_vm11, %v4430_v4  ;;  %v4400_v21 = vadd.f32 %v11183_v20, %v13878_v22  ;;  %v4249_v25 = vpop.f32.mrb[13].mxu1  ;;  %v4490_v27 = vld [vmem:[#allocation3 + $0x30] sm:$0xff] }
 0x3fd   : > { %4462 = vst.msk [vmem:[#allocation3 + $0x50] sm:$0xff] %vm4451_vm11, %v4429_v16  ;;  %v4399_v32 = vadd.f32 %v13878_v22, %v4249_v25  ;;  %11224 = vmatprep.mubr.msk.f32.mxu0 %vm4451_vm11, %v4490_v27 }
 0x3fe   : > { %v4432_v38 = vmax.f32 %v4400_v21, 0.0  ;;  %11225 = vmatmul.mubr.msk.f32.gmra.mrb[38].mxu0 %vm4451_vm11, %v4491_v36 }
 0x3ff   : > { %v4431_v40 = vmax.f32 %v4399_v32, 0.0  ;;  %v11186_v42 = vpop.f32.mrb[14].mxu1  ;;  %v4493_v46 = vld [vmem:[#allocation3 + $0x48] sm:$0xff] }
 0x400   : > { %4465 = vst.msk [vmem:[#allocation3 + $0x68] sm:$0xff] %vm4451_vm11, %v4432_v38  ;;  %v4402_v39 = vadd.f32 %v11186_v42, %v13878_v22  ;;  %v4259_v28 = vpop.f32.mrb[15].mxu1  ;;  %v4492_v45 = vld [vmem:[#allocation3 + $0x40] sm:$0xff] }
 0x401   : > { %4464 = vst.msk [vmem:[#allocation3 + $0x60] sm:$0xff] %vm4451_vm11, %v4431_v40  ;;  %v4401_v52 = vadd.f32 %v13878_v22, %v4259_v28  ;;  %11227 = vmatprep.mubr.msk.f32.mxu0 %vm4451_vm11, %v4492_v45 }
 0x402   : > { %v4434_v54 = vmax.f32 %v4402_v39, 0.0  ;;  %11228 = vmatmul.mubr.msk.f32.gmra.mrb[40].mxu0 %vm4451_vm11, %v4493_v46 }
 0x403   : > { %v4433_v56 = vmax.f32 %v4401_v52, 0.0  ;;  %v11189_v3 = vpop.f32.mrb[16].mxu1  ;;  %v4495_v61 = vld [vmem:[#allocation3 + $0x58] sm:$0xff] }
 0x404   : > { %4467 = vst.msk [vmem:[#allocation3 + $0x78] sm:$0xff] %vm4451_vm11, %v4434_v54  ;;  %v4404_v29 = vadd.f32 %v11189_v3, %v13878_v22  ;;  %v4269_v11 = vpop.f32.mrb[17].mxu1  ;;  %v4494_v31 = vld [vmem:[#allocation3 + $0x50] sm:$0xff] }
 0x405   : > { %4466 = vst.msk [vmem:[#allocation3 + $0x70] sm:$0xff] %vm4451_vm11, %v4433_v56  ;;  %v4403_v59 = vadd.f32 %v13878_v22, %v4269_v11  ;;  %11230 = vmatprep.mubr.msk.f32.mxu0 %vm4451_vm11, %v4494_v31 }
 0x406   : > { %v4436_v41 = vmax.f32 %v4404_v29, 0.0  ;;  %11231 = vmatmul.mubr.msk.f32.gmra.mrb[42].mxu0 %vm4451_vm11, %v4495_v61 }
 0x407   : > { %v4435_v53 = vmax.f32 %v4403_v59, 0.0  ;;  %v11192_v49 = vpop.f32.mrb[18].mxu1  ;;  %v4497_v23 = vld [vmem:[#allocation3 + $0x68] sm:$0xff] }
 0x408   : > { %4469 = vst.msk [vmem:[#allocation3 + $0x88] sm:$0xff] %vm4451_vm11, %v4436_v41  ;;  %v4406_v62 = vadd.f32 %v11192_v49, %v13878_v22  ;;  %v4279_v1 = vpop.f32.mrb[19].mxu1  ;;  %v4496_v8 = vld [vmem:[#allocation3 + $0x60] sm:$0xff]  ;;  %v4956_v49 = vld [vmem:[%s15110_s6] sm:$0xff] }
 0x409   : > { %4468 = vst.msk [vmem:[#allocation3 + $0x80] sm:$0xff] %vm4451_vm11, %v4435_v53  ;;  %v4405_v0 = vadd.f32 %v13878_v22, %v4279_v1  ;;  %11233 = vmatprep.mubr.msk.f32.mxu0 %vm4451_vm11, %v4496_v8  ;;  %v12481_v53 = vmov 0.0  }
 0x40a   : > { %v4438_v33 = vmax.f32 %v4406_v62, 0.0  ;;  %11234 = vmatmul.mubr.msk.f32.gmra.mrb[44].mxu0 %vm4451_vm11, %v4497_v23  ;;  %496 = vst.msk [vmem:[#allocation5 + $0x18] sm:$0xff] %vm494_vm12, %v12481_v53  ;;  %495 = vst.msk [vmem:[#allocation5 + $0x10] sm:$0xff] %vm494_vm12, %v12481_v53  ;;  %v4957_v62 = vld [vmem:[%s15110_s6 + $0x8] sm:$0x3] }
 0x40b   : > { %v4437_v13 = vmax.f32 %v4405_v0, 0.0  ;;  %v11195_v14 = vpop.f32.mrb[20].mxu1  ;;  %v4499_v57 = vld [vmem:[#allocation3 + $0x78] sm:$0xff]  ;;  %497 = vst.msk [vmem:[#allocation5 + $0x20] sm:$0xff] %vm494_vm12, %v12481_v53  ;;  %498 = vst.msk [vmem:[#allocation5 + $0x28] sm:$0xff] %vm494_vm12, %v12481_v53  ;;  %v14014_v1 = vpack.c.bf16 %v4957_v62, %v4956_v49 }
 0x40c   : > { %4471 = vst.msk [vmem:[#allocation3 + $0x98] sm:$0xff] %vm4451_vm11, %v4438_v33  ;;  %v4408_v35 = vadd.f32 %v11195_v14, %v13878_v22  ;;  %v4289_v43 = vpop.f32.mrb[21].mxu1  ;;  %v4498_v18 = vld [vmem:[#allocation3 + $0x70] sm:$0xff] }
 0x40d   : > { %4470 = vst.msk [vmem:[#allocation3 + $0x90] sm:$0xff] %vm4451_vm11, %v4437_v13  ;;  %v4407_v26 = vadd.f32 %v13878_v22, %v4289_v43  ;;  %11236 = vmatprep.mubr.msk.f32.mxu0 %vm4451_vm11, %v4498_v18  ;;  %11745 = vmatprep.subr.msk.bf16.mxu0 %vm13863_vm10, %v14014_v1 }
 0x40e   : > { %v4440_v34 = vmax.f32 %v4408_v35, 0.0  ;;  %11237 = vmatmul.mubr.msk.f32.gmra.mrb[46].mxu0 %vm4451_vm11, %v4499_v57  ;;  %499 = vst.msk [vmem:[#allocation5 + $0x30] sm:$0xff] %vm494_vm12, %v12481_v53  ;;  %500 = vst.msk [vmem:[#allocation5 + $0x38] sm:$0xff] %vm494_vm12, %v12481_v53 }
 0x40f   : > { %v4439_v44 = vmax.f32 %v4407_v26, 0.0  ;;  %v11198_v47 = vpop.f32.mrb[22].mxu1  ;;  %v4501_v55 = vld [vmem:[#allocation3 + $0x88] sm:$0xff]  ;;  %501 = vst.msk [vmem:[#allocation5 + $0x40] sm:$0xff] %vm494_vm12, %v12481_v53  ;;  %502 = vst.msk [vmem:[#allocation5 + $0x48] sm:$0xff] %vm494_vm12, %v12481_v53 }
 0x410   : > { %4473 = vst.msk [vmem:[#allocation3 + $0xa8] sm:$0xff] %vm4451_vm11, %v4440_v34  ;;  %v4410_v60 = vadd.f32 %v11198_v47, %v13878_v22  ;;  %v4299_v17 = vpop.f32.mrb[23].mxu1  ;;  %v4500_v48 = vld [vmem:[#allocation3 + $0x80] sm:$0xff] }
 0x411   : > { %4472 = vst.msk [vmem:[#allocation3 + $0xa0] sm:$0xff] %vm4451_vm11, %v4439_v44  ;;  %v4409_v51 = vadd.f32 %v13878_v22, %v4299_v17  ;;  %11239 = vmatprep.mubr.msk.f32.mxu0 %vm4451_vm11, %v4500_v48 }
 0x412   : > { %v4442_v63 = vmax.f32 %v4410_v60, 0.0  ;;  %11240 = vmatmul.mubr.msk.f32.gmra.mrb[48].mxu0 %vm4451_vm11, %v4501_v55  ;;  %503 = vst.msk [vmem:[#allocation5 + $0x50] sm:$0xff] %vm494_vm12, %v12481_v53  ;;  %504 = vst.msk [vmem:[#allocation5 + $0x58] sm:$0xff] %vm494_vm12, %v12481_v53 }
 0x413   : > { %v4441_v12 = vmax.f32 %v4409_v51, 0.0  ;;  %v11201_v37 = vpop.f32.mrb[24].mxu1  ;;  %v4503_v30 = vld [vmem:[#allocation3 + $0x98] sm:$0xff]  ;;  %505 = vst.msk [vmem:[#allocation5 + $0x60] sm:$0xff] %vm494_vm12, %v12481_v53 }
 0x414   : > { %4475 = vst.msk [vmem:[#allocation3 + $0xb8] sm:$0xff] %vm4451_vm11, %v4442_v63  ;;  %v4412_v6 = vadd.f32 %v11201_v37, %v13878_v22  ;;  %v4309_v50 = vpop.f32.mrb[25].mxu1  ;;  %v4502_v58 = vld [vmem:[#allocation3 + $0x90] sm:$0xff]  ;;  %v14031_v37 = vld [vmem:[#allocation5 + $0x10] sm:$0xff] }
 0x415   : > { %4474 = vst.msk [vmem:[#allocation3 + $0xb0] sm:$0xff] %vm4451_vm11, %v4441_v12  ;;  %v4411_v2 = vadd.f32 %v13878_v22, %v4309_v50  ;;  %11242 = vmatprep.mubr.msk.f32.mxu0 %vm4451_vm11, %v4502_v58 }
 0x416   : > { %v4444_v24 = vmax.f32 %v4412_v6, 0.0  ;;  %11243 = vmatmul.mubr.msk.f32.gmra.mrb[50].mxu0 %vm4451_vm11, %v4503_v30  ;;  %511 = vst.msk [vmem:[#allocation7] sm:$0xff] %vm510_vm13, %v12481_v53  ;;  %512 = vst.msk [vmem:[#allocation7 + $0x8] sm:$0xff] %vm510_vm13, %v12481_v53 }
 0x417   : > { %v4443_v5 = vmax.f32 %v4411_v2, 0.0  ;;  %v11204_v9 = vpop.f32.mrb[26].mxu1  ;;  %v4505_v16 = vld [vmem:[#allocation3 + $0xa8] sm:$0xff]  ;;  %513 = vst.msk [vmem:[#allocation7 + $0x50] sm:$0xff] %vm510_vm13, %v12481_v53  ;;  %514 = vst.msk [vmem:[#allocation7 + $0x58] sm:$0xff] %vm510_vm13, %v12481_v53 }
 0x418   : > { %4477 = vst.msk [vmem:[#allocation3 + $0xc8] sm:$0xff] %vm4451_vm11, %v4444_v24  ;;  %v4414_v7 = vadd.f32 %v11204_v9, %v13878_v22  ;;  %v4319_v15 = vpop.f32.mrb[27].mxu1  ;;  %v4504_v19 = vld [vmem:[#allocation3 + $0xa0] sm:$0xff] }
 0x419   : > { %4476 = vst.msk [vmem:[#allocation3 + $0xc0] sm:$0xff] %vm4451_vm11, %v4443_v5  ;;  %v4413_v4 = vadd.f32 %v13878_v22, %v4319_v15  ;;  %11245 = vmatprep.mubr.msk.f32.mxu0 %vm4451_vm11, %v4504_v19  ;;  %v4970_v5 = vrot.slane %v14031_v37, 1 }
 0x41a   : > { %v4446_v20 = vmax.f32 %v4414_v7, 0.0  ;;  %11246 = vmatmul.mubr.msk.f32.gmra.mrb[52].mxu0 %vm4451_vm11, %v4505_v16  ;;  %507 = vst.msk [vmem:[#allocation6 + $0x50] sm:$0xff] %vm506_vm15, %v12481_v53  ;;  %508 = vst.msk [vmem:[#allocation6 + $0x58] sm:$0xff] %vm506_vm15, %v12481_v53 }
 0x41b   : > { %v4445_v21 = vmax.f32 %v4413_v4, 0.0  ;;  %v11207_v25 = vpop.f32.mrb[28].mxu1  ;;  %v4507_v40 = vld [vmem:[#allocation3 + $0xb8] sm:$0xff]  ;;  %509 = vst.msk [vmem:[#allocation6 + $0x60] sm:$0xff] %vm506_vm15, %v12481_v53 }
 0x41c   : > { %4479 = vst.msk [vmem:[#allocation3 + $0xd8] sm:$0xff] %vm4451_vm11, %v4446_v20  ;;  %v4416_v27 = vadd.f32 %v11207_v25, %v13878_v22  ;;  %v4329_v32 = vpop.f32.mrb[29].mxu1  ;;  %v4506_v36 = vld [vmem:[#allocation3 + $0xb0] sm:$0xff] }
 0x41d   : > { %4478 = vst.msk [vmem:[#allocation3 + $0xd0] sm:$0xff] %vm4451_vm11, %v4445_v21  ;;  %v4415_v38 = vadd.f32 %v13878_v22, %v4329_v32  ;;  %11248 = vmatprep.mubr.msk.f32.mxu0 %vm4451_vm11, %v4506_v36 }
 0x41e   : > { %v4448_v42 = vmax.f32 %v4416_v27, 0.0  ;;  %11249 = vmatmul.mubr.msk.f32.gmra.mrb[54].mxu0 %vm4451_vm11, %v4507_v40 }
 0x41f   : > { %v4447_v39 = vmax.f32 %v4415_v38, 0.0  ;;  %v11210_v28 = vpop.f32.mrb[30].mxu1  ;;  %v4509_v56 = vld [vmem:[#allocation3 + $0xc8] sm:$0xff] }
 0x420   : > { %4481 = vst.msk [vmem:[#allocation3 + $0xe8] sm:$0xff] %vm4451_vm11, %v4448_v42  ;;  %v4418_v45 = vadd.f32 %v11210_v28, %v13878_v22  ;;  %v4339_v52 = vpop.f32.mrb[31].mxu1  ;;  %v4508_v46 = vld [vmem:[#allocation3 + $0xc0] sm:$0xff] }
 0x421   : > { %4480 = vst.msk [vmem:[#allocation3 + $0xe0] sm:$0xff] %vm4451_vm11, %v4447_v39  ;;  %v4417_v54 = vadd.f32 %v13878_v22, %v4339_v52  ;;  %11251 = vmatprep.mubr.msk.f32.mxu0 %vm4451_vm11, %v4508_v46  ;;  %v9780_v39 = vld [vmem:[%s15110_s6 + $0x20] sm:$0xff]  ;;  %v9781_v28 = vld [vmem:[%s15110_s6 + $0x28] sm:$0x3] }
 0x422   : > { %v4450_v3 = vmax.f32 %v4418_v45, 0.0  ;;  %11252 = vmatmul.mubr.msk.f32.gmra.mrb[56].mxu0 %vm4451_vm11, %v4509_v56 }
 0x423   : > { %v4449_v29 = vmax.f32 %v4417_v54, 0.0  ;;  %v4511_v31 = vld [vmem:[#allocation3 + $0xd8] sm:$0xff] }
 0x424   : > { %4483 = vst.msk [vmem:[#allocation3 + $0xf8] sm:$0xff] %vm4451_vm11, %v4450_v3  ;;  %v4510_v11 = vld [vmem:[#allocation3 + $0xd0] sm:$0xff] }
 0x425   : > { %4482 = vst.msk [vmem:[#allocation3 + $0xf0] sm:$0xff] %vm4451_vm11, %v4449_v29  ;;  %11254 = vmatprep.mubr.msk.f32.mxu0 %vm4451_vm11, %v4510_v11  ;;  %v14058_v29 = vpack.c.bf16 %v9781_v28, %v9780_v39  ;;  %v9792_v39 = vld [vmem:[%s15110_s6 + $0x38] sm:$0x3] }
 0x426   : > { %11255 = vmatmul.mubr.msk.f32.gmra.mrb[58].mxu0 %vm4451_vm11, %v4511_v31 }
 0x427   : > { %v4513_v22 = vld [vmem:[#allocation3 + $0xe8] sm:$0xff] }
 0x428   : > { %v4512_v59 = vld [vmem:[#allocation3 + $0xe0] sm:$0xff] }
 0x429   : > { %11257 = vmatprep.mubr.msk.f32.mxu0 %vm4451_vm11, %v4512_v59 }
 0x42a   : > { %11258 = vmatmul.mubr.msk.f32.gmra.mrb[60].mxu0 %vm4451_vm11, %v4513_v22 }
 0x42b   : > { %v4515_v41 = vld [vmem:[#allocation3 + $0xf8] sm:$0xff] }
 0x42c   : > { %v4514_v61 = vld [vmem:[#allocation3 + $0xf0] sm:$0xff] }
 0x42d   : > { %11260 = vmatprep.mubr.msk.f32.mxu0 %vm4451_vm11, %v4514_v61 }
 0x42e   : > { %11261 = vmatmul.mubr.msk.f32.gmra.mrb[62].mxu0 %vm4451_vm11, %v4515_v41 }
 0x4c5   : > { %v11217_v8 = vpop.f32.mrb[32].mxu0 }
 0x4c6   : > { %4844 = vst.msk [vmem:[#allocation4 + $0x8] sm:$0xff] %vm494_vm12, %v11217_v8  ;;  %v4684_v0 = vpop.f32.mrb[33].mxu0 }
 0x4c7   : > { %4843 = vst.msk [vmem:[#allocation4] sm:$0xff] %vm494_vm12, %v4684_v0 }
 0x4c9   : > { %v11220_v23 = vpop.f32.mrb[34].mxu0 }
 0x4ca   : > { %4846 = vst.msk [vmem:[#allocation4 + $0x18] sm:$0xff] %vm494_vm12, %v11220_v23  ;;  %v4694_v33 = vpop.f32.mrb[35].mxu0 }
 0x4cb   : > { %4845 = vst.msk [vmem:[#allocation4 + $0x10] sm:$0xff] %vm494_vm12, %v4694_v33 }
 0x4cd   : > { %v11223_v13 = vpop.f32.mrb[36].mxu0 }
 0x4ce   : > { %4848 = vst.msk [vmem:[#allocation4 + $0x28] sm:$0xff] %vm494_vm12, %v11223_v13  ;;  %v4704_v14 = vpop.f32.mrb[37].mxu0  ;;  %v4875_v35 = vld [vmem:[#allocation4] ss:$2 sm:$0x3f] }
 0x4cf   : > { %v4877_v43 = vld [vmem:[#allocation4 + $0x1] ss:$2 sm:$0x3f]  ;;  %4847 = vst.msk [vmem:[#allocation4 + $0x20] sm:$0xff] %vm494_vm12, %v4704_v14 }
 0x4d0   : > { %v4882_v34 = vmax.f32 %v4875_v35, %v4877_v43 }
 0x4d1   : > { %v11226_v18 = vpop.f32.mrb[38].mxu0 }
 0x4d2   : > { %v4879_v26 = vld [vmem:[#allocation4 + $0x10] ss:$2 sm:$0x3f]  ;;  %v4881_v57 = vld [vmem:[#allocation4 + $0x11] ss:$2 sm:$0x3f] }
 0x4d3   : > { %4850 = vst.msk [vmem:[#allocation4 + $0x38] sm:$0xff] %vm494_vm12, %v11226_v18  ;;  %v4883_v44 = vmax.f32 %v4879_v26, %v4881_v57  ;;  %v4714_v47 = vpop.f32.mrb[39].mxu0 }
 0x4d4   : > { %4849 = vst.msk [vmem:[#allocation4 + $0x30] sm:$0xff] %vm494_vm12, %v4714_v47 }
 0x4d5   : > { %v4884_v60 = vmax.f32 %v4882_v34, %v4883_v44  ;;  %v11229_v17 = vpop.f32.mrb[40].mxu0 }
 0x4d6   : > { %4852 = vst.msk [vmem:[#allocation4 + $0x48] sm:$0xff] %vm494_vm12, %v11229_v17  ;;  %v4724_v48 = vpop.f32.mrb[41].mxu0  ;;  %v4888_v51 = vld [vmem:[#allocation4 + $0x20] ss:$2 sm:$0x3f] }
 0x4d7   : > { %4886 = vst.msk [vmem:[#allocation5 + $0x19] sm:$0x3f] %vm4885_vm14, %v4884_v60  ;;  %v4890_v55 = vld [vmem:[#allocation4 + $0x21] ss:$2 sm:$0x3f] }
 0x4d8   : > { %4851 = vst.msk [vmem:[#allocation4 + $0x40] sm:$0xff] %vm494_vm12, %v4724_v48  ;;  %v4895_v58 = vmax.f32 %v4888_v51, %v4890_v55 }
 0x4d9   : > { %v11232_v63 = vpop.f32.mrb[42].mxu0 }
 0x4da   : > { %4854 = vst.msk [vmem:[#allocation4 + $0x58] sm:$0xff] %vm494_vm12, %v11232_v63  ;;  %v4734_v12 = vpop.f32.mrb[43].mxu0 }
 0x4db   : > { %v4892_v6 = vld [vmem:[#allocation4 + $0x30] ss:$2 sm:$0x3f]  ;;  %v4894_v50 = vld [vmem:[#allocation4 + $0x31] ss:$2 sm:$0x3f] }
 0x4dc   : > { %4853 = vst.msk [vmem:[#allocation4 + $0x50] sm:$0xff] %vm494_vm12, %v4734_v12  ;;  %v4896_v2 = vmax.f32 %v4892_v6, %v4894_v50 }
 0x4dd   : > { %v11235_v30 = vpop.f32.mrb[44].mxu0 }
 0x4de   : > { %v4897_v24 = vmax.f32 %v4895_v58, %v4896_v2  ;;  %4856 = vst.msk [vmem:[#allocation4 + $0x68] sm:$0xff] %vm494_vm12, %v11235_v30  ;;  %v4744_v7 = vpop.f32.mrb[45].mxu0  ;;  %v14036_v15 = vld [vmem:[#allocation5 + $0x18] sm:$0xff] }
 0x4df   : > { %v4900_v9 = vld [vmem:[#allocation4 + $0x40] ss:$2 sm:$0x3f]  ;;  %v4902_v19 = vld [vmem:[#allocation4 + $0x41] ss:$2 sm:$0x3f] }
 0x4e0   : > { %4898 = vst.msk [vmem:[#allocation5 + $0x21] sm:$0x3f] %vm4885_vm14, %v4897_v24  ;;  %v4971_v4 = vrot.slane %v14036_v15, 1  ;;  %v4907_v27 = vmax.f32 %v4900_v9, %v4902_v19 }
 0x4e1   : > { %4855 = vst.msk [vmem:[#allocation4 + $0x60] sm:$0xff] %vm494_vm12, %v4744_v7  ;;  %v11238_v16 = vpop.f32.mrb[46].mxu0 }
 0x4e2   : > { %4858 = vst.msk [vmem:[#allocation4 + $0x78] sm:$0xff] %vm494_vm12, %v11238_v16  ;;  %v4972_v25 = vsel %vm1017_vm5, %v4970_v5, %v4971_v4  ;;  %v4754_v36 = vpop.f32.mrb[47].mxu0  ;;  %v14103_v16 = vld [vmem:[#allocation5 + $0x48] sm:$0xff] }
 0x4e3   : > { %v4904_v20 = vld [vmem:[#allocation4 + $0x50] ss:$2 sm:$0x3f]  ;;  %v4906_v21 = vld [vmem:[#allocation4 + $0x51] ss:$2 sm:$0x3f]  ;;  %11267 = vmatprep.mubr.msk.f32.mxu0 %vm494_vm12, %v4972_v25 }
 0x4e4   : > { %v4908_v32 = vmax.f32 %v4904_v20, %v4906_v21  ;;  %4857 = vst.msk [vmem:[#allocation4 + $0x70] sm:$0xff] %vm494_vm12, %v4754_v36  ;;  %v14105_v20 = vld [vmem:[#allocation5 + $0x50] sm:$0xff]  ;;  %v4983_v21 = vrot.slane %v14103_v16, 1 }
 0x4e5   : > { %v11241_v40 = vpop.f32.mrb[48].mxu0 }
 0x4e6   : > { %v4909_v38 = vmax.f32 %v4907_v27, %v4908_v32  ;;  %4860 = vst.msk [vmem:[#allocation4 + $0x88] sm:$0xff] %vm494_vm12, %v11241_v40  ;;  %v4764_v42 = vpop.f32.mrb[49].mxu0  ;;  %v4985_v32 = vrot.slane %v14105_v20, 1 }
 0x4e7   : > { %4859 = vst.msk [vmem:[#allocation4 + $0x80] sm:$0xff] %vm494_vm12, %v4764_v42  ;;  %v14054_v52 = vld [vmem:[#allocation5 + $0x20] sm:$0xff]  ;;  %v9791_v42 = vld [vmem:[%s15110_s6 + $0x30] sm:$0xff] }
 0x4e8   : > { %4910 = vst.msk [vmem:[#allocation5 + $0x29] sm:$0x3f] %vm4885_vm14, %v4909_v38  ;;  %v4912_v45 = vld [vmem:[#allocation4 + $0x60] ss:$2 sm:$0x3f]  ;;  %v4973_v56 = vrot.slane %v14054_v52, 1  ;;  %v14125_v40 = vsel %vm1017_vm5, %v4983_v21, %v4985_v32  ;;  %v11755_v28 = vpack.c.bf16 %v9792_v39, %v9791_v42 }
 0x4e9   : > { %v4914_v46 = vld [vmem:[#allocation4 + $0x61] ss:$2 sm:$0x3f]  ;;  %v11244_v54 = vpop.f32.mrb[50].mxu0 }
 0x4ea   : > { %4862 = vst.msk [vmem:[#allocation4 + $0x98] sm:$0xff] %vm494_vm12, %v11244_v54  ;;  %v4774_v3 = vpop.f32.mrb[51].mxu0  ;;  %v14062_v59 = vsel %vm1017_vm5, %v4971_v4, %v4973_v56  ;;  %v4919_v22 = vmax.f32 %v4912_v45, %v4914_v46  ;;  %v5239_v45 = vrot.slane %v14031_v37, 2  ;;  %v5240_v46 = vrot.slane %v14036_v15, 2 }
 0x4eb   : > { %v4916_v11 = vld [vmem:[#allocation4 + $0x70] ss:$2 sm:$0x3f]  ;;  %v4918_v31 = vld [vmem:[#allocation4 + $0x71] ss:$2 sm:$0x3f]  ;;  %11268 = vmatmul.mubr.msk.f32.vlgmr.msra.gmra.mrb[64].mxu0 %vm494_vm12, %v14062_v59 }
 0x4ec   : > { %4861 = vst.msk [vmem:[#allocation4 + $0x90] sm:$0xff] %vm494_vm12, %v4774_v3  ;;  %v4920_v61 = vmax.f32 %v4916_v11, %v4918_v31  ;;  %11748 = vmatpush3.bf16.msk.msra.mxu0 %vm13863_vm10, %v14014_v1  ;;  %v5242_v54 = vrot.slane %v14054_v52, 2  ;;  %v9803_v3 = vld [vmem:[%s15110_s6 + $0x48] sm:$0x3] }
 0x4ed   : > { %v11247_v41 = vpop.f32.mrb[52].mxu0  ;;  %11751 = vmatprep.subr.msk.bf16.mxu0 %vm13863_vm10, %v14058_v29 }
 0x4ee   : > { %v4921_v49 = vmax.f32 %v4919_v22, %v4920_v61  ;;  %4864 = vst.msk [vmem:[#allocation4 + $0xa8] sm:$0xff] %vm494_vm12, %v11247_v41  ;;  %v4924_v62 = vld [vmem:[#allocation4 + $0x80] ss:$2 sm:$0x3f]  ;;  %v4784_v8 = vpop.f32.mrb[53].mxu0  ;;  %v5243_v31 = vsel %vm1663_vm6, %v5240_v46, %v5242_v54 }
 0x4ef   : > { %v14073_v0 = vld [vmem:[#allocation5 + $0x28] sm:$0xff]  ;;  %v4926_v23 = vld [vmem:[#allocation4 + $0x81] ss:$2 sm:$0x3f]  ;;  %4863 = vst.msk [vmem:[#allocation4 + $0xa0] sm:$0xff] %vm494_vm12, %v4784_v8 }
 0x4f0   : > { %4922 = vst.msk [vmem:[#allocation5 + $0x31] sm:$0x3f] %vm4885_vm14, %v4921_v49  ;;  %v4975_v33 = vrot.slane %v14073_v0, 1  ;;  %v4931_v43 = vmax.f32 %v4924_v62, %v4926_v23  ;;  %v5252_v23 = vrot.slane %v14103_v16, 2 }
 0x4f1   : > { %v11250_v13 = vpop.f32.mrb[54].mxu0 }
 0x4f2   : > { %4866 = vst.msk [vmem:[#allocation4 + $0xb8] sm:$0xff] %vm494_vm12, %v11250_v13  ;;  %v14080_v35 = vsel %vm1017_vm5, %v4973_v56, %v4975_v33  ;;  %v4794_v26 = vpop.f32.mrb[55].mxu0  ;;  %v9802_v56 = vld [vmem:[%s15110_s6 + $0x40] sm:$0xff] }
 0x4f3   : > { %v4928_v1 = vld [vmem:[#allocation4 + $0x90] ss:$2 sm:$0x3f]  ;;  %v4930_v14 = vld [vmem:[#allocation4 + $0x91] ss:$2 sm:$0x3f]  ;;  %11270 = vmatprep.mubr.msk.f32.mxu0 %vm494_vm12, %v14080_v35  ;;  %v11761_v11 = vpack.c.bf16 %v9803_v3, %v9802_v56 }
 0x4f4   : > { %v4932_v18 = vmax.f32 %v4928_v1, %v4930_v14  ;;  %4865 = vst.msk [vmem:[#allocation4 + $0xb0] sm:$0xff] %vm494_vm12, %v4794_v26 }
 0x4f5   : > { %v11253_v34 = vpop.f32.mrb[56].mxu0 }
 0x4f6   : > { %v4933_v57 = vmax.f32 %v4931_v43, %v4932_v18  ;;  %v4804_v44 = vpop.f32.mrb[57].mxu0  ;;  %v4936_v47 = vld [vmem:[#allocation4 + $0xa0] ss:$2 sm:$0x3f] }
 0x4f7   : > { %v14086_v60 = vld [vmem:[#allocation5 + $0x30] sm:$0xff]  ;;  %v4938_v17 = vld [vmem:[#allocation4 + $0xa1] ss:$2 sm:$0x3f] }
 0x4f8   : > { %4934 = vst.msk [vmem:[#allocation5 + $0x39] sm:$0x3f] %vm4885_vm14, %v4933_v57  ;;  %v4977_v51 = vrot.slane %v14086_v60, 1  ;;  %v4943_v50 = vmax.f32 %v4936_v47, %v4938_v17  ;;  %v5246_v22 = vrot.slane %v14086_v60, 2  ;;  %v9813_v43 = vld [vmem:[%s15110_s6 + $0x50] sm:$0xff] }
 0x4f9   : > { %v11256_v48 = vpop.f32.mrb[58].mxu0  ;;  %v9814_v18 = vld [vmem:[%s15110_s6 + $0x58] sm:$0x3]  ;;  %v9825_v57 = vld [vmem:[%s15110_s6 + $0x68] sm:$0x3]  ;;  %v5396_v44 = vld [vmem:[#allocation5 + $0x58] sm:$0xff] }
 0x4fa   : > { %v4814_v55 = vpop.f32.mrb[59].mxu0  ;;  %v14090_v6 = vsel %vm1017_vm5, %v4975_v33, %v4977_v51  ;;  %v5254_v33 = vrot.slane %v14105_v20, 2  ;;  %v11767_v26 = vpack.c.bf16 %v9814_v18, %v9813_v43  ;;  %v9835_v17 = vld [vmem:[%s15110_s6 + $0x70] sm:$0xff]  ;;  %v9836_v48 = vld [vmem:[%s15110_s6 + $0x78] sm:$0x3] }
 0x4fb   : > { %v4940_v63 = vld [vmem:[#allocation4 + $0xb0] ss:$2 sm:$0x3f]  ;;  %v4942_v12 = vld [vmem:[#allocation4 + $0xb1] ss:$2 sm:$0x3f]  ;;  %11271 = vmatmul.mubr.msk.f32.gmra.mrb[66].mxu0 %vm494_vm12, %v14090_v6 }
 0x4fc   : > { %v4944_v58 = vmax.f32 %v4940_v63, %v4942_v12  ;;  %v14211_v14 = vsel %vm1663_vm6, %v5252_v23, %v5254_v33  ;;  %v5711_v55 = vrot.slane %v5396_v44, 2  ;;  %v9846_v12 = vld [vmem:[%s15110_s6 + $0x80] sm:$0xff] }
 0x4fd   : > { %v11259_v2 = vpop.f32.mrb[60].mxu0 }
 0x4fe   : > { %v4945_v30 = vmax.f32 %v4943_v50, %v4944_v58  ;;  %v4824_v24 = vpop.f32.mrb[61].mxu0  ;;  %v5712_v63 = vsel %vm1663_vm6, %v5254_v33, %v5711_v55  ;;  %v9847_v50 = vld [vmem:[%s15110_s6 + $0x88] sm:$0x3]  ;;  %v9858_v2 = vld [vmem:[%s15112_s8 + $0x10] sm:$0xff] }
 0x4ff   : > { %v14094_v5 = vld [vmem:[#allocation5 + $0x38] sm:$0xff]  ;;  %v11785_v58 = vpack.c.bf16 %v9847_v50, %v9846_v12 }
 0x500   : > { %v4979_v9 = vrot.slane %v14094_v5, 1  ;;  %4946 = vst.msk [vmem:[#allocation5 + $0x41] sm:$0x3f] %vm4885_vm14, %v4945_v30  ;;  %v5248_v41 = vrot.slane %v14094_v5, 2  ;;  %v9859_v30 = vld [vmem:[%s15112_s8 + $0x18] sm:$0xf] }
 0x501   : > { %v11262_v7 = vpop.f32.mrb[62].mxu0  ;;  %v11791_v24 = vpack.c.bf16 %v9859_v30, %v9858_v2  ;;  %v14438_v12 = vld [vmem:[#allocation6 + $0x50] sm:$0xff]  ;;  %v7711_v2 = vld [vmem:[%s15117_s13] sm:$0xff] }
 0x502   : > { %v14099_v19 = vsel %vm1017_vm5, %v4977_v51, %v4979_v9  ;;  %v4834_v4 = vpop.f32.mrb[63].mxu0  ;;  %v14194_v8 = vsel %vm1663_vm6, %v5246_v22, %v5248_v41  ;;  %v11779_v51 = vpack.c.bf16 %v9836_v48, %v9835_v17  ;;  %v7713_v30 = vld [vmem:[%s15117_s13 + $0x10] sm:$0xff] }
 0x503   : > { %11273 = vmatprep.mubr.msk.f32.mxu0 %vm494_vm12, %v14099_v19 }
 0x507   : > { %v14108_v25 = vld [vmem:[#allocation5 + $0x40] sm:$0xff] }
 0x508   : > { %v4981_v27 = vrot.slane %v14108_v25, 1  ;;  %v5250_v62 = vrot.slane %v14108_v25, 2 }
 0x50a   : > { %v14113_v36 = vsel %vm1017_vm5, %v4979_v9, %v4981_v27  ;;  %v14116_v38 = vsel %vm1017_vm5, %v4981_v27, %v4983_v21  ;;  %v14201_v13 = vsel %vm1663_vm6, %v5248_v41, %v5250_v62  ;;  %v14206_v1 = vsel %vm1663_vm6, %v5250_v62, %v5252_v23  ;;  %v6343_v9 = vld [vmem:[%s15112_s8 + $0x8] sm:$0xf] }
 0x50b   : > { %11274 = vmatmul.mubr.msk.f32.gmra.mrb[68].mxu0 %vm494_vm12, %v14113_v36 }
 0x50c   : > { %11276 = vmatprep.mubr.msk.f32.mxu0 %vm494_vm12, %v14116_v38 }
 0x50f   : > { %11277 = vmatmul.mubr.msk.f32.gmra.mrb[70].mxu0 %vm494_vm12, %v14125_v40 }
 0x510   : > { %11283 = vmatprep.mubr.msk.f32.mxu0 %vm494_vm12, %v14031_v37  ;;  %v5241_v37 = vsel %vm1663_vm6, %v5239_v45, %v5240_v46 }
 0x513   : > { %11284 = vmatmul.mubr.msk.f32.vlgmr.msra.gmra.mrb[64].mxu0 %vm494_vm12, %v14036_v15 }
 0x514   : > { %11286 = vmatprep.mubr.msk.f32.mxu0 %vm494_vm12, %v14054_v52  ;;  %11754 = vmatpush3.bf16.msk.msra.mxu0 %vm13863_vm10, %v14058_v29  ;;  %v5244_v29 = vrot.slane %v14073_v0, 2 }
 0x515   : > { %11757 = vmatprep.subr.msk.bf16.mxu0 %vm13863_vm10, %v11755_v28 }
 0x516   : > { %v14178_v61 = vsel %vm1663_vm6, %v5242_v54, %v5244_v29  ;;  %v14188_v49 = vsel %vm1663_vm6, %v5244_v29, %v5246_v22 }
 0x517   : > { %11287 = vmatmul.mubr.msk.f32.gmra.mrb[66].mxu0 %vm494_vm12, %v14073_v0 }
 0x518   : > { %11289 = vmatprep.mubr.msk.f32.mxu0 %vm494_vm12, %v14086_v60 }
 0x51b   : > { %11290 = vmatmul.mubr.msk.f32.gmra.mrb[68].mxu0 %vm494_vm12, %v14094_v5 }
 0x51c   : > { %11292 = vmatprep.mubr.msk.f32.mxu0 %vm494_vm12, %v14108_v25 }
 0x51f   : > { %11293 = vmatmul.mubr.msk.f32.gmra.mrb[70].mxu0 %vm494_vm12, %v14103_v16 }
 0x520   : > { %11299 = vmatprep.mubr.msk.f32.mxu0 %vm494_vm12, %v5241_v37 }
 0x523   : > { %11300 = vmatmul.mubr.msk.f32.vlgmr.msra.gmra.mrb[64].mxu0 %vm494_vm12, %v5243_v31 }
 0x524   : > { %11302 = vmatprep.mubr.msk.f32.mxu0 %vm494_vm12, %v14178_v61  ;;  %11760 = vmatpush3.bf16.msk.msra.mxu0 %vm13863_vm10, %v11755_v28 }
 0x525   : > { %11763 = vmatprep.subr.msk.bf16.mxu0 %vm13863_vm10, %v11761_v11 }
 0x527   : > { %11303 = vmatmul.mubr.msk.f32.gmra.mrb[66].mxu0 %vm494_vm12, %v14188_v49 }
 0x528   : > { %11305 = vmatprep.mubr.msk.f32.mxu0 %vm494_vm12, %v14194_v8 }
 0x52b   : > { %11306 = vmatmul.mubr.msk.f32.gmra.mrb[68].mxu0 %vm494_vm12, %v14201_v13 }
 0x52c   : > { %11308 = vmatprep.mubr.msk.f32.mxu0 %vm494_vm12, %v14206_v1 }
 0x52f   : > { %11309 = vmatmul.mubr.msk.f32.gmra.mrb[70].mxu0 %vm494_vm12, %v14211_v14 }
 0x530   : > { %11315 = vmatprep.mubr.msk.f32.mxu0 %vm494_vm12, %v14036_v15  ;;  %v9824_v15 = vld [vmem:[%s15110_s6 + $0x60] sm:$0xff] }
 0x531   : > { %v11773_v34 = vpack.c.bf16 %v9825_v57, %v9824_v15 }
 0x533   : > { %11316 = vmatmul.mubr.msk.f32.vlgmr.msra.gmra.mrb[64].mxu0 %vm494_vm12, %v14054_v52 }
 0x534   : > { %11318 = vmatprep.mubr.msk.f32.mxu0 %vm494_vm12, %v14073_v0  ;;  %11766 = vmatpush3.bf16.msk.msra.mxu0 %vm13863_vm10, %v11761_v11 }
 0x535   : > { %11769 = vmatprep.subr.msk.bf16.mxu0 %vm13863_vm10, %v11767_v26 }
 0x537   : > { %11319 = vmatmul.mubr.msk.f32.gmra.mrb[66].mxu0 %vm494_vm12, %v14086_v60 }
 0x538   : > { %11321 = vmatprep.mubr.msk.f32.mxu0 %vm494_vm12, %v14094_v5 }
 0x53b   : > { %11322 = vmatmul.mubr.msk.f32.gmra.mrb[68].mxu0 %vm494_vm12, %v14108_v25 }
 0x53c   : > { %11324 = vmatprep.mubr.msk.f32.mxu0 %vm494_vm12, %v14103_v16 }
 0x53f   : > { %11325 = vmatmul.mubr.msk.f32.gmra.mrb[70].mxu0 %vm494_vm12, %v14105_v20 }
 0x540   : > { %11331 = vmatprep.mubr.msk.f32.mxu0 %vm494_vm12, %v14062_v59  ;;  %v5559_v59 = vrot.slane %v5396_v44, 1 }
 0x542   : > { %v5560_v47 = vsel %vm1017_vm5, %v4985_v32, %v5559_v59 }
 0x543   : > { %11332 = vmatmul.mubr.msk.f32.vlgmr.msra.gmra.mrb[64].mxu0 %vm494_vm12, %v14080_v35 }
 0x544   : > { %11334 = vmatprep.mubr.msk.f32.mxu0 %vm494_vm12, %v14090_v6  ;;  %11772 = vmatpush3.bf16.msk.msra.mxu0 %vm13863_vm10, %v11767_v26 }
 0x545   : > { %11775 = vmatprep.subr.msk.bf16.mxu0 %vm13863_vm10, %v11773_v34 }
 0x547   : > { %11335 = vmatmul.mubr.msk.f32.gmra.mrb[66].mxu0 %vm494_vm12, %v14099_v19 }
 0x548   : > { %11337 = vmatprep.mubr.msk.f32.mxu0 %vm494_vm12, %v14113_v36 }
 0x54b   : > { %11338 = vmatmul.mubr.msk.f32.gmra.mrb[68].mxu0 %vm494_vm12, %v14116_v38 }
 0x54c   : > { %11340 = vmatprep.mubr.msk.f32.mxu0 %vm494_vm12, %v14125_v40 }
 0x54f   : > { %11341 = vmatmul.mubr.msk.f32.gmra.mrb[70].mxu0 %vm494_vm12, %v5560_v47 }
 0x550   : > { %11347 = vmatprep.mubr.msk.f32.mxu0 %vm494_vm12, %v5243_v31 }
 0x553   : > { %11348 = vmatmul.mubr.msk.f32.vlgmr.msra.gmra.mrb[64].mxu0 %vm494_vm12, %v14178_v61 }
 0x554   : > { %11350 = vmatprep.mubr.msk.f32.mxu0 %vm494_vm12, %v14188_v49  ;;  %11778 = vmatpush3.bf16.msk.msra.mxu0 %vm13863_vm10, %v11773_v34 }
 0x555   : > { %11781 = vmatprep.subr.msk.bf16.mxu0 %vm13863_vm10, %v11779_v51 }
 0x557   : > { %11351 = vmatmul.mubr.msk.f32.gmra.mrb[66].mxu0 %vm494_vm12, %v14194_v8 }
 0x558   : > { %11353 = vmatprep.mubr.msk.f32.mxu0 %vm494_vm12, %v14201_v13 }
 0x55b   : > { %11354 = vmatmul.mubr.msk.f32.gmra.mrb[68].mxu0 %vm494_vm12, %v14206_v1 }
 0x55c   : > { %11356 = vmatprep.mubr.msk.f32.mxu0 %vm494_vm12, %v14211_v14 }
 0x55f   : > { %11357 = vmatmul.mubr.msk.f32.gmra.mrb[70].mxu0 %vm494_vm12, %v5712_v63 }
 0x560   : > { %11363 = vmatprep.mubr.msk.f32.mxu0 %vm494_vm12, %v14054_v52  ;;  %v5853_v52 = vld [vmem:[#allocation5 + $0x60] sm:$0xff] }
 0x561   : > { %v6168_v10 = vrot.slane %v5853_v52, 2 }
 0x563   : > { %11364 = vmatmul.mubr.msk.f32.vlgmr.msra.gmra.mrb[64].mxu0 %vm494_vm12, %v14073_v0  ;;  %v6016_v0 = vrot.slane %v5853_v52, 1 }
 0x564   : > { %11366 = vmatprep.mubr.msk.f32.mxu0 %vm494_vm12, %v14086_v60  ;;  %11784 = vmatpush3.bf16.msk.msra.mxu0 %vm13863_vm10, %v11779_v51  ;;  %v6169_v60 = vsel %vm1663_vm6, %v5711_v55, %v6168_v10  ;;  %v9889_v10 = vld [vmem:[%s15112_s8 + $0x30] sm:$0xff] }
 0x565   : > { %11787 = vmatprep.subr.msk.bf16.mxu0 %vm13863_vm10, %v11785_v58 }
 0x567   : > { %11367 = vmatmul.mubr.msk.f32.gmra.mrb[66].mxu0 %vm494_vm12, %v14094_v5  ;;  %v6342_v5 = vld [vmem:[%s15112_s8] sm:$0xff] }
 0x568   : > { %11369 = vmatprep.mubr.msk.f32.mxu0 %vm494_vm12, %v14108_v25  ;;  %v11797_v7 = vpack.c.bf16 %v6343_v9, %v6342_v5  ;;  %v7712_v9 = vld [vmem:[%s15117_s13 + $0x8] sm:$0xff] }
 0x56b   : > { %11370 = vmatmul.mubr.msk.f32.gmra.mrb[68].mxu0 %vm494_vm12, %v14103_v16 }
 0x56c   : > { %11372 = vmatprep.mubr.msk.f32.mxu0 %vm494_vm12, %v14105_v20 }
 0x56f   : > { %11373 = vmatmul.mubr.msk.f32.gmra.mrb[70].mxu0 %vm494_vm12, %v5396_v44 }
 0x570   : > { %11379 = vmatprep.mubr.msk.f32.mxu0 %vm494_vm12, %v14080_v35  ;;  %v6017_v35 = vsel %vm1017_vm5, %v5559_v59, %v6016_v0  ;;  %v6371_v0 = vrot.slane %v14438_v12, 1 }
 0x573   : > { %11380 = vmatmul.mubr.msk.f32.vlgmr.msra.gmra.mrb[64].mxu0 %vm494_vm12, %v14090_v6 }
 0x574   : > { %11382 = vmatprep.mubr.msk.f32.mxu0 %vm494_vm12, %v14099_v19  ;;  %11790 = vmatpush3.bf16.msk.msra.mxu0 %vm13863_vm10, %v11785_v58  ;;  %v9857_v19 = vld [vmem:[%s15111_s7] ss:$0 sm:$0xff] }
 0x575   : > { %11793 = vmatprep.subr.msk.bf16.mxu0 %vm14352_vm2, %v11791_v24 }
 0x577   : > { %11383 = vmatmul.mubr.msk.f32.gmra.mrb[66].mxu0 %vm494_vm12, %v14113_v36 }
 0x578   : > { %11385 = vmatprep.mubr.msk.f32.mxu0 %vm494_vm12, %v14116_v38 }
 0x57b   : > { %11386 = vmatmul.mubr.msk.f32.gmra.mrb[68].mxu0 %vm494_vm12, %v14125_v40 }
 0x57c   : > { %11388 = vmatprep.mubr.msk.f32.mxu0 %vm494_vm12, %v5560_v47 }
 0x57f   : > { %11389 = vmatmul.mubr.msk.f32.gmra.mrb[70].mxu0 %vm494_vm12, %v6017_v35 }
 0x580   : > { %11395 = vmatprep.mubr.msk.f32.mxu0 %vm494_vm12, %v14178_v61 }
 0x583   : > { %11396 = vmatmul.mubr.msk.f32.vlgmr.msra.gmra.mrb[64].mxu0 %vm494_vm12, %v14188_v49 }
 0x584   : > { %11398 = vmatprep.mubr.msk.f32.mxu0 %vm494_vm12, %v14194_v8  ;;  %11796 = vmatpush3.bf16.msk.msra.mxu0 %vm14352_vm2, %v11791_v24  ;;  %v12482_v24 = vmov 0  }
 0x585   : > { %11799 = vmatprep.subr.msk.bf16.mxu0 %vm14352_vm2, %v11797_v7  ;;  %12410 = vset.pattern.permute.xlu0 %v12482_v24 }
 0x586   : > { %7721 = vperm.xlu0 %12410, %v7711_v2   ;;  %12411 = vset.pattern.permute.xlu1 %v12482_v24 }
 0x587   : > { %11399 = vmatmul.mubr.msk.f32.gmra.mrb[66].mxu0 %vm494_vm12, %v14201_v13  ;;  %v9878_v13 = vld [vmem:[%s15112_s8 + $0x20] sm:$0xff]  ;;  %7731 = vperm.xlu1 %12411, %v7713_v30  }
 0x588   : > { %11401 = vmatprep.mubr.msk.f32.mxu0 %vm494_vm12, %v14206_v1  ;;  %v9879_v1 = vld [vmem:[%s15112_s8 + $0x28] sm:$0xf] }
 0x589   : > { %v11803_v26 = vpack.c.bf16 %v9879_v1, %v9878_v13  ;;  %v6782_v13 = vld [vmem:[#allocation6 + $0x58] sm:$0xff] }
 0x58a   : > { %7726 = vperm.xlu0 %12410, %v7712_v9   ;;  %v6945_v1 = vrot.slane %v6782_v13, 1 }
 0x58b   : > { %11402 = vmatmul.mubr.msk.f32.gmra.mrb[68].mxu0 %vm494_vm12, %v14211_v14 }
 0x58c   : > { %11404 = vmatprep.mubr.msk.f32.mxu0 %vm494_vm12, %v5712_v63 }
 0x58f   : > { %11405 = vmatmul.mubr.msk.f32.gmra.mrb[70].mxu0 %vm494_vm12, %v6169_v60  ;;  %v9890_v60 = vld [vmem:[%s15112_s8 + $0x38] sm:$0xf] }
 0x590   : > { %v11809_v5 = vpack.c.bf16 %v9890_v60, %v9889_v10  ;;  %v9955_v10 = vld [vmem:[%s15113_s9] ss:$0 sm:$0xff] }
 0x656   : > { %v11397_v4 = vpop.f32.mrb[64].mxu0 }
 0x657   : > { %v6310_v16 = vadd.f32 %v11397_v4, %v9857_v19  ;;  %v6255_v20 = vpop.f32.mrb[65].mxu0  ;;  %v7716_v4 = vld [vmem:[%s15117_s13 + $0x28] sm:$0xff] }
 0x658   : > { %v6309_v21 = vadd.f32 %v9857_v19, %v6255_v20 }
 0x659   : > { %v6318_v25 = vmax.f32 %v6310_v16, 0.0  ;;  %v7717_v16 = vld [vmem:[%s15117_s13 + $0x30] sm:$0xff] }
 0x65a   : > { %v6317_v27 = vmax.f32 %v6309_v21, 0.0  ;;  %v11400_v32 = vpop.f32.mrb[66].mxu0 }
 0x65b   : > { %6326 = vst.msk [vmem:[#allocation6 + $0x18] sm:$0xff] %vm506_vm15, %v6318_v25  ;;  %v6312_v36 = vadd.f32 %v11400_v32, %v9857_v19  ;;  %v6265_v38 = vpop.f32.mrb[67].mxu0  ;;  %v7718_v25 = vld [vmem:[%s15117_s13 + $0x38] sm:$0xff]  ;;  %v9900_v32 = vld [vmem:[%s15112_s8 + $0x40] sm:$0xff] }
 0x65c   : > { %6325 = vst.msk [vmem:[#allocation6 + $0x10] sm:$0xff] %vm506_vm15, %v6317_v27  ;;  %v6311_v40 = vadd.f32 %v9857_v19, %v6265_v38 }
 0x65d   : > { %v6320_v42 = vmax.f32 %v6312_v36, 0.0  ;;  %v9901_v36 = vld [vmem:[%s15112_s8 + $0x48] sm:$0xf] }
 0x65e   : > { %v6319_v39 = vmax.f32 %v6311_v40, 0.0  ;;  %v11403_v28 = vpop.f32.mrb[68].mxu0 }
 0x65f   : > { %6328 = vst.msk [vmem:[#allocation6 + $0x28] sm:$0xff] %vm506_vm15, %v6320_v42  ;;  %v6314_v45 = vadd.f32 %v11403_v28, %v9857_v19  ;;  %v6275_v46 = vpop.f32.mrb[69].mxu0  ;;  %v11815_v42 = vpack.c.bf16 %v9901_v36, %v9900_v32 }
 0x660   : > { %6327 = vst.msk [vmem:[#allocation6 + $0x20] sm:$0xff] %vm506_vm15, %v6319_v39  ;;  %v6313_v54 = vadd.f32 %v9857_v19, %v6275_v46 }
 0x661   : > { %v6322_v56 = vmax.f32 %v6314_v45, 0.0 }
 0x662   : > { %v6321_v3 = vmax.f32 %v6313_v54, 0.0  ;;  %v11406_v37 = vpop.f32.mrb[70].mxu0  ;;  %v14381_v29 = vld [vmem:[#allocation6 + $0x18] sm:$0xff] }
 0x663   : > { %6330 = vst.msk [vmem:[#allocation6 + $0x38] sm:$0xff] %vm506_vm15, %v6322_v56  ;;  %v6316_v11 = vadd.f32 %v11406_v37, %v9857_v19  ;;  %v6285_v31 = vpop.f32.mrb[71].mxu0  ;;  %v14384_v22 = vld [vmem:[#allocation6 + $0x10] sm:$0xff]  ;;  %v6357_v61 = vrot.slane %v14381_v29, 1  ;;  %v6626_v21 = vrot.slane %v14381_v29, 2 }
 0x664   : > { %6329 = vst.msk [vmem:[#allocation6 + $0x30] sm:$0xff] %vm506_vm15, %v6321_v3  ;;  %v6315_v41 = vadd.f32 %v9857_v19, %v6285_v31  ;;  %v6356_v49 = vrot.slane %v14384_v22, 1  ;;  %v7715_v19 = vld [vmem:[%s15117_s13 + $0x20] sm:$0xff]  ;;  %v6625_v20 = vrot.slane %v14384_v22, 2  ;;  %v6640_v31 = vrot.slane %v14438_v12, 2 }
 0x665   : > { %v6324_v62 = vmax.f32 %v6316_v11, 0.0  ;;  %7741 = vperm.xlu0 %12410, %v7715_v19  }
 0x666   : > { %v6323_v8 = vmax.f32 %v6315_v41, 0.0  ;;  %v6358_v23 = vsel %vm1017_vm5, %v6356_v49, %v6357_v61  ;;  %v14390_v33 = vld [vmem:[#allocation6 + $0x28] sm:$0xff]  ;;  %v6627_v38 = vsel %vm1663_vm6, %v6625_v20, %v6626_v21  ;;  %v9911_v41 = vld [vmem:[%s15112_s8 + $0x50] sm:$0xff]  ;;  %v9912_v49 = vld [vmem:[%s15112_s8 + $0x58] sm:$0xf] }
 0x667   : > { %6332 = vst.msk [vmem:[#allocation6 + $0x48] sm:$0xff] %vm506_vm15, %v6324_v62  ;;  %11411 = vmatprep.mubr.msk.f32.mxu0 %vm506_vm15, %v6358_v23  ;;  %v14400_v14 = vld [vmem:[#allocation6 + $0x20] sm:$0xff]  ;;  %v6361_v43 = vrot.slane %v14390_v33, 1  ;;  %v6630_v40 = vrot.slane %v14390_v33, 2  ;;  %v11821_v62 = vpack.c.bf16 %v9912_v49, %v9911_v41 }
 0x668   : > { %6331 = vst.msk [vmem:[#allocation6 + $0x40] sm:$0xff] %vm506_vm15, %v6323_v8  ;;  %v6359_v18 = vrot.slane %v14400_v14, 1  ;;  %v6628_v27 = vrot.slane %v14400_v14, 2  ;;  %v9923_v8 = vld [vmem:[%s15112_s8 + $0x68] sm:$0xf] }
 0x669   : > { %7751 = vperm.xlu0 %12410, %v7717_v16  }
 0x66a   : > { %v14406_v15 = vsel %vm1017_vm5, %v6357_v61, %v6359_v18  ;;  %v14409_v57 = vsel %vm1017_vm5, %v6359_v18, %v6361_v43  ;;  %v14411_v34 = vld [vmem:[#allocation6 + $0x38] sm:$0xff]  ;;  %v6629_v39 = vsel %vm1663_vm6, %v6626_v21, %v6628_v27  ;;  %v14527_v45 = vsel %vm1663_vm6, %v6628_v27, %v6630_v40  ;;  %v9933_v18 = vld [vmem:[%s15112_s8 + $0x70] sm:$0xff] }
 0x66b   : > { %11412 = vmatmul.mubr.msk.f32.vlgmr.msra.gmra.mrb[72].mxu0 %vm506_vm15, %v14406_v15  ;;  %v14415_v44 = vld [vmem:[#allocation6 + $0x30] sm:$0xff]  ;;  %v6365_v59 = vrot.slane %v14411_v34, 1  ;;  %v6634_v46 = vrot.slane %v14411_v34, 2 }
 0x66c   : > { %11414 = vmatprep.mubr.msk.f32.mxu0 %vm506_vm15, %v14409_v57  ;;  %11802 = vmatpush3.bf16.msk.msra.mxu0 %vm14352_vm2, %v11797_v7  ;;  %v6363_v47 = vrot.slane %v14415_v44, 1  ;;  %v7714_v7 = vld [vmem:[%s15117_s13 + $0x18] sm:$0xff]  ;;  %v6632_v28 = vrot.slane %v14415_v44, 2 }
 0x66d   : > { %11805 = vmatprep.subr.msk.bf16.mxu0 %vm14352_vm2, %v11803_v26  ;;  %7736 = vperm.xlu1 %12411, %v7714_v7  }
 0x66e   : > { %v14426_v17 = vsel %vm1017_vm5, %v6361_v43, %v6363_v47  ;;  %v14429_v48 = vsel %vm1017_vm5, %v6363_v47, %v6365_v59  ;;  %v14431_v51 = vld [vmem:[#allocation6 + $0x48] sm:$0xff]  ;;  %v14537_v54 = vsel %vm1663_vm6, %v6630_v40, %v6632_v28  ;;  %v14543_v3 = vsel %vm1663_vm6, %v6632_v28, %v6634_v46 }
 0x66f   : > { %11415 = vmatmul.mubr.msk.f32.gmra.mrb[74].mxu0 %vm506_vm15, %v14426_v17  ;;  %v14435_v55 = vld [vmem:[#allocation6 + $0x40] sm:$0xff]  ;;  %v6369_v63 = vrot.slane %v14431_v51, 1  ;;  %v6638_v37 = vrot.slane %v14431_v51, 2  ;;  %v6946_v43 = vsel %vm1017_vm5, %v6371_v0, %v6945_v1 }
 0x670   : > { %11417 = vmatprep.mubr.msk.f32.mxu0 %vm506_vm15, %v14429_v48  ;;  %v6367_v50 = vrot.slane %v14435_v55, 1  ;;  %v6636_v56 = vrot.slane %v14435_v55, 2 }
 0x671   : > { %v14457_v35 = vsel %vm1017_vm5, %v6369_v63, %v6371_v0  ;;  %7746 = vperm.xlu1 %12411, %v7716_v4   ;;  %v14560_v61 = vsel %vm1663_vm6, %v6638_v37, %v6640_v31 }
 0x672   : > { %v14444_v58 = vsel %vm1017_vm5, %v6365_v59, %v6367_v50  ;;  %v14447_v52 = vsel %vm1017_vm5, %v6367_v50, %v6369_v63  ;;  %v14549_v11 = vsel %vm1663_vm6, %v6634_v46, %v6636_v56  ;;  %v7097_v59 = vrot.slane %v6782_v13, 2  ;;  %v9944_v63 = vld [vmem:[%s15112_s8 + $0x80] sm:$0xff]  ;;  %v9945_v50 = vld [vmem:[%s15112_s8 + $0x88] sm:$0xf] }
 0x673   : > { %11418 = vmatmul.mubr.msk.f32.gmra.mrb[76].mxu0 %vm506_vm15, %v14444_v58  ;;  %v11839_v0 = vpack.c.bf16 %v9945_v50, %v9944_v63 }
 0x674   : > { %11420 = vmatprep.mubr.msk.f32.mxu0 %vm506_vm15, %v14447_v52  ;;  %v7098_v47 = vsel %vm1663_vm6, %v6640_v31, %v7097_v59 }
 0x675   : > { %7756 = vperm.xlu1 %12411, %v7718_v25  }
 0x677   : > { %11421 = vmatmul.mubr.msk.f32.gmra.mrb[78].mxu0 %vm506_vm15, %v14457_v35 }
 0x678   : > { %11427 = vmatprep.mubr.msk.f32.mxu0 %vm506_vm15, %v14384_v22  ;;  %v14555_v22 = vsel %vm1663_vm6, %v6636_v56, %v6638_v37 }
 0x67b   : > { %11428 = vmatmul.mubr.msk.f32.vlgmr.msra.gmra.mrb[72].mxu0 %vm506_vm15, %v14381_v29 }
 0x67c   : > { %11430 = vmatprep.mubr.msk.f32.mxu0 %vm506_vm15, %v14400_v14  ;;  %11808 = vmatpush3.bf16.msk.msra.mxu0 %vm14352_vm2, %v11803_v26  ;;  %v9934_v26 = vld [vmem:[%s15112_s8 + $0x78] sm:$0xf] }
 0x67d   : > { %11811 = vmatprep.subr.msk.bf16.mxu0 %vm14352_vm2, %v11809_v5 }
 0x67f   : > { %11431 = vmatmul.mubr.msk.f32.gmra.mrb[74].mxu0 %vm506_vm15, %v14390_v33 }
 0x680   : > { %11433 = vmatprep.mubr.msk.f32.mxu0 %vm506_vm15, %v14415_v44 }
 0x683   : > { %11434 = vmatmul.mubr.msk.f32.gmra.mrb[76].mxu0 %vm506_vm15, %v14411_v34 }
 0x684   : > { %11436 = vmatprep.mubr.msk.f32.mxu0 %vm506_vm15, %v14435_v55 }
 0x687   : > { %11437 = vmatmul.mubr.msk.f32.gmra.mrb[78].mxu0 %vm506_vm15, %v14431_v51 }
 0x688   : > { %11443 = vmatprep.mubr.msk.f32.mxu0 %vm506_vm15, %v6627_v38 }
 0x68b   : > { %11444 = vmatmul.mubr.msk.f32.vlgmr.msra.gmra.mrb[72].mxu0 %vm506_vm15, %v6629_v39 }
 0x68c   : > { %11446 = vmatprep.mubr.msk.f32.mxu0 %vm506_vm15, %v14527_v45  ;;  %11814 = vmatpush3.bf16.msk.msra.mxu0 %vm14352_vm2, %v11809_v5 }
 0x68d   : > { %11817 = vmatprep.subr.msk.bf16.mxu0 %vm14352_vm2, %v11815_v42 }
 0x68f   : > { %11447 = vmatmul.mubr.msk.f32.gmra.mrb[74].mxu0 %vm506_vm15, %v14537_v54 }
 0x690   : > { %11449 = vmatprep.mubr.msk.f32.mxu0 %vm506_vm15, %v14543_v3 }
 0x693   : > { %11450 = vmatmul.mubr.msk.f32.gmra.mrb[76].mxu0 %vm506_vm15, %v14549_v11 }
 0x694   : > { %11452 = vmatprep.mubr.msk.f32.mxu0 %vm506_vm15, %v14555_v22 }
 0x697   : > { %11453 = vmatmul.mubr.msk.f32.gmra.mrb[78].mxu0 %vm506_vm15, %v14560_v61 }
 0x698   : > { %11459 = vmatprep.mubr.msk.f32.mxu0 %vm506_vm15, %v14381_v29  ;;  %v9922_v29 = vld [vmem:[%s15112_s8 + $0x60] sm:$0xff] }
 0x699   : > { %v11827_v23 = vpack.c.bf16 %v9923_v8, %v9922_v29  ;;  %v9976_v29 = vld [vmem:[%s15114_s10 + $0x20] sm:$0xff] }
 0x69b   : > { %11460 = vmatmul.mubr.msk.f32.vlgmr.msra.gmra.mrb[72].mxu0 %vm506_vm15, %v14400_v14 }
 0x69c   : > { %11462 = vmatprep.mubr.msk.f32.mxu0 %vm506_vm15, %v14390_v33  ;;  %11820 = vmatpush3.bf16.msk.msra.mxu0 %vm14352_vm2, %v11815_v42 }
 0x69d   : > { %11823 = vmatprep.subr.msk.bf16.mxu0 %vm14352_vm2, %v11821_v62 }
 0x69f   : > { %11463 = vmatmul.mubr.msk.f32.gmra.mrb[74].mxu0 %vm506_vm15, %v14415_v44 }
 0x6a0   : > { %11465 = vmatprep.mubr.msk.f32.mxu0 %vm506_vm15, %v14411_v34 }
 0x6a3   : > { %11466 = vmatmul.mubr.msk.f32.gmra.mrb[76].mxu0 %vm506_vm15, %v14435_v55 }
 0x6a4   : > { %11468 = vmatprep.mubr.msk.f32.mxu0 %vm506_vm15, %v14431_v51 }
 0x6a7   : > { %11469 = vmatmul.mubr.msk.f32.gmra.mrb[78].mxu0 %vm506_vm15, %v14438_v12 }
 0x6a8   : > { %11475 = vmatprep.mubr.msk.f32.mxu0 %vm506_vm15, %v14406_v15  ;;  %v11833_v15 = vpack.c.bf16 %v9934_v26, %v9933_v18 }
 0x6ab   : > { %11476 = vmatmul.mubr.msk.f32.vlgmr.msra.gmra.mrb[72].mxu0 %vm506_vm15, %v14409_v57 }
 0x6ac   : > { %11478 = vmatprep.mubr.msk.f32.mxu0 %vm506_vm15, %v14426_v17  ;;  %11826 = vmatpush3.bf16.msk.msra.mxu0 %vm14352_vm2, %v11821_v62 }
 0x6ad   : > { %11829 = vmatprep.subr.msk.bf16.mxu0 %vm14352_vm2, %v11827_v23 }
 0x6af   : > { %11479 = vmatmul.mubr.msk.f32.gmra.mrb[74].mxu0 %vm506_vm15, %v14429_v48 }
 0x6b0   : > { %11481 = vmatprep.mubr.msk.f32.mxu0 %vm506_vm15, %v14444_v58 }
 0x6b3   : > { %11482 = vmatmul.mubr.msk.f32.gmra.mrb[76].mxu0 %vm506_vm15, %v14447_v52 }
 0x6b4   : > { %11484 = vmatprep.mubr.msk.f32.mxu0 %vm506_vm15, %v14457_v35 }
 0x6b7   : > { %11485 = vmatmul.mubr.msk.f32.gmra.mrb[78].mxu0 %vm506_vm15, %v6946_v43 }
 0x6b8   : > { %11491 = vmatprep.mubr.msk.f32.mxu0 %vm506_vm15, %v6629_v39 }
 0x6bb   : > { %11492 = vmatmul.mubr.msk.f32.vlgmr.msra.gmra.mrb[72].mxu0 %vm506_vm15, %v14527_v45 }
 0x6bc   : > { %11494 = vmatprep.mubr.msk.f32.mxu0 %vm506_vm15, %v14537_v54  ;;  %11832 = vmatpush3.bf16.msk.msra.mxu0 %vm14352_vm2, %v11827_v23 }
 0x6bd   : > { %11835 = vmatprep.subr.msk.bf16.mxu0 %vm14352_vm2, %v11833_v15 }
 0x6bf   : > { %11495 = vmatmul.mubr.msk.f32.gmra.mrb[74].mxu0 %vm506_vm15, %v14543_v3 }
 0x6c0   : > { %11497 = vmatprep.mubr.msk.f32.mxu0 %vm506_vm15, %v14549_v11 }
 0x6c3   : > { %11498 = vmatmul.mubr.msk.f32.gmra.mrb[76].mxu0 %vm506_vm15, %v14555_v22 }
 0x6c4   : > { %11500 = vmatprep.mubr.msk.f32.mxu0 %vm506_vm15, %v14560_v61 }
 0x6c7   : > { %11501 = vmatmul.mubr.msk.f32.gmra.mrb[78].mxu0 %vm506_vm15, %v7098_v47 }
 0x6c8   : > { %11507 = vmatprep.mubr.msk.f32.mxu0 %vm506_vm15, %v14400_v14 }
 0x6cb   : > { %11508 = vmatmul.mubr.msk.f32.vlgmr.msra.gmra.mrb[72].mxu0 %vm506_vm15, %v14390_v33  ;;  %v7239_v33 = vld [vmem:[#allocation6 + $0x60] sm:$0xff] }
 0x6cc   : > { %11510 = vmatprep.mubr.msk.f32.mxu0 %vm506_vm15, %v14415_v44  ;;  %11838 = vmatpush3.bf16.msk.msra.mxu0 %vm14352_vm2, %v11833_v15  ;;  %v7402_v14 = vrot.slane %v7239_v33, 1  ;;  %v7554_v6 = vrot.slane %v7239_v33, 2 }
 0x6cd   : > { %11841 = vmatprep.subr.msk.bf16.mxu0 %vm14352_vm2, %v11839_v0 }
 0x6cf   : > { %11511 = vmatmul.mubr.msk.f32.gmra.mrb[74].mxu0 %vm506_vm15, %v14411_v34  ;;  %v7555_v34 = vsel %vm1663_vm6, %v7097_v59, %v7554_v6 }
 0x6d0   : > { %11513 = vmatprep.mubr.msk.f32.mxu0 %vm506_vm15, %v14435_v55  ;;  %v7784_v55 = vld [vmem:[%s15114_s10] sm:$0xff] }
 0x6d3   : > { %11514 = vmatmul.mubr.msk.f32.gmra.mrb[76].mxu0 %vm506_vm15, %v14431_v51 }
 0x6d4   : > { %11516 = vmatprep.mubr.msk.f32.mxu0 %vm506_vm15, %v14438_v12  ;;  %v7785_v12 = vld [vmem:[%s15114_s10 + $0x8] sm:$0x3f] }
 0x6d7   : > { %11517 = vmatmul.mubr.msk.f32.gmra.mrb[78].mxu0 %vm506_vm15, %v6782_v13 }
 0x6d8   : > { %11523 = vmatprep.mubr.msk.f32.mxu0 %vm506_vm15, %v14409_v57  ;;  %v7403_v57 = vsel %vm1017_vm5, %v6945_v1, %v7402_v14  ;;  %v9977_v1 = vld [vmem:[%s15114_s10 + $0x28] sm:$0x3f] }
 0x6d9   : > { %v11857_v33 = vpack.c.bf16 %v9977_v1, %v9976_v29  ;;  %v10031_v1 = vld [vmem:[%s15114_s10 + $0x70] sm:$0xff] }
 0x6db   : > { %11524 = vmatmul.mubr.msk.f32.vlgmr.msra.gmra.mrb[72].mxu0 %vm506_vm15, %v14426_v17  ;;  %v9956_v17 = vld [vmem:[%s15114_s10 + $0x10] sm:$0xff] }
 0x6dc   : > { %11526 = vmatprep.mubr.msk.f32.mxu0 %vm506_vm15, %v14429_v48  ;;  %11844 = vmatpush3.bf16.msk.msra.mxu0 %vm14352_vm2, %v11839_v0  ;;  %v9957_v48 = vld [vmem:[%s15114_s10 + $0x18] sm:$0x3f] }
 0x6dd   : > { %v11845_v51 = vpack.c.bf16 %v9957_v48, %v9956_v17 }
 0x6df   : > { %11527 = vmatmul.mubr.msk.f32.gmra.mrb[74].mxu0 %vm506_vm15, %v14444_v58  ;;  %11847 = vmatprep.subr.msk.bf16.mxu0 %vm14702_vm3, %v11845_v51  ;;  %v14722_v58 = vpack.c.bf16 %v7785_v12, %v7784_v55 }
 0x6e0   : > { %11529 = vmatprep.mubr.msk.f32.mxu0 %vm506_vm15, %v14447_v52  ;;  %v7722_v52 = vpop.permute.xlu0 %7721 }
 0x6e3   : > { %11530 = vmatmul.mubr.msk.f32.gmra.mrb[76].mxu0 %vm506_vm15, %v14457_v35  ;;  %v7732_v35 = vpop.permute.xlu1 %7731 }
 0x6e4   : > { %11532 = vmatprep.mubr.msk.f32.mxu0 %vm506_vm15, %v6946_v43  ;;  %v7727_v5 = vpop.permute.xlu0 %7726 }
 0x6e7   : > { %11533 = vmatmul.mubr.msk.f32.gmra.mrb[78].mxu0 %vm506_vm15, %v7403_v57 }
 0x6e8   : > { %11539 = vmatprep.mubr.msk.f32.mxu0 %vm506_vm15, %v14527_v45 }
 0x6eb   : > { %11540 = vmatmul.mubr.msk.f32.vlgmr.msra.gmra.mrb[72].mxu0 %vm506_vm15, %v14537_v54  ;;  %v7742_v54 = vpop.permute.xlu0 %7741 }
 0x6ec   : > { %11542 = vmatprep.mubr.msk.f32.mxu0 %vm506_vm15, %v14543_v3  ;;  %11850 = vmatpush3.bf16.msk.msra.mxu0 %vm14702_vm3, %v11845_v51  ;;  %v7737_v7 = vpop.permute.xlu1 %7736  ;;  %v14733_v3 = vld [vmem:[#allocation7 + $0x7] sm:$0xff] }
 0x6ed   : > { %11853 = vmatprep.subr.msk.bf16.mxu0 %vm14702_vm3, %v14722_v58  ;;  %v7798_v62 = vrot.slane %v14733_v3, 1 }
 0x6ef   : > { %11543 = vmatmul.mubr.msk.f32.gmra.mrb[74].mxu0 %vm506_vm15, %v14549_v11  ;;  %v7752_v59 = vpop.permute.xlu0 %7751 }
 0x6f0   : > { %11545 = vmatprep.mubr.msk.f32.mxu0 %vm506_vm15, %v14555_v22  ;;  %v7747_v28 = vpop.permute.xlu1 %7746 }
 0x6f3   : > { %11546 = vmatmul.mubr.msk.f32.gmra.mrb[76].mxu0 %vm506_vm15, %v14560_v61 }
 0x6f4   : > { %11548 = vmatprep.mubr.msk.f32.mxu0 %vm506_vm15, %v7098_v47  ;;  %v7757_v43 = vpop.permute.xlu1 %7756 }
 0x6f7   : > { %11549 = vmatmul.mubr.msk.f32.gmra.mrb[78].mxu0 %vm506_vm15, %v7555_v34 }
 0x7be   : > { %v11541_v60 = vpop.f32.mrb[72].mxu0 }
 0x7bf   : > { %v7696_v2 = vadd.f32 %v11541_v60, %v9955_v10  ;;  %v7641_v30 = vpop.f32.mrb[73].mxu0 }
 0x7c0   : > { %v7695_v24 = vadd.f32 %v9955_v10, %v7641_v30 }
 0x7c1   : > { %v7704_v9 = vmax.f32 %v7696_v2, 0.0 }
 0x7c2   : > { %v7703_v19 = vmax.f32 %v7695_v24, 0.0  ;;  %v11544_v4 = vpop.f32.mrb[74].mxu0 }
 0x7c3   : > { %v7760_v16 = vmul.f32 %v7727_v5, %v7704_v9  ;;  %v7698_v20 = vadd.f32 %v11544_v4, %v9955_v10  ;;  %v7651_v21 = vpop.f32.mrb[75].mxu0  ;;  %v9987_v9 = vld [vmem:[%s15114_s10 + $0x30] sm:$0xff]  ;;  %v8066_v4 = vrot.slane %v14733_v3, 2 }
 0x7c4   : > { %v7759_v25 = vmul.f32 %v7722_v52, %v7703_v19  ;;  %v7697_v27 = vadd.f32 %v9955_v10, %v7651_v21  ;;  %v9998_v21 = vld [vmem:[%s15114_s10 + $0x40] sm:$0xff] }
 0x7c5   : > { %7768 = vst.msk [vmem:[#allocation7 + $0x18] sm:$0xff] %vm510_vm13, %v7760_v16  ;;  %v7706_v32 = vmax.f32 %v7698_v20, 0.0 }
 0x7c6   : > { %7767 = vst.msk [vmem:[#allocation7 + $0x10] sm:$0xff] %vm510_vm13, %v7759_v25  ;;  %v7705_v36 = vmax.f32 %v7697_v27, 0.0  ;;  %v11547_v38 = vpop.f32.mrb[76].mxu0  ;;  %v9999_v25 = vld [vmem:[%s15114_s10 + $0x48] sm:$0x3f] }
 0x7c7   : > { %v7762_v40 = vmul.f32 %v7737_v7, %v7706_v32  ;;  %v7700_v42 = vadd.f32 %v11547_v38, %v9955_v10  ;;  %v7661_v39 = vpop.f32.mrb[77].mxu0  ;;  %v9988_v7 = vld [vmem:[%s15114_s10 + $0x38] sm:$0x3f] }
 0x7c8   : > { %v7761_v45 = vmul.f32 %v7732_v35, %v7705_v36  ;;  %v7699_v46 = vadd.f32 %v9955_v10, %v7661_v39  ;;  %v11863_v19 = vpack.c.bf16 %v9988_v7, %v9987_v9  ;;  %v11869_v36 = vpack.c.bf16 %v9999_v25, %v9998_v21 }
 0x7c9   : > { %7770 = vst.msk [vmem:[#allocation7 + $0x28] sm:$0xff] %vm510_vm13, %v7762_v40  ;;  %v7708_v56 = vmax.f32 %v7700_v42, 0.0 }
 0x7ca   : > { %7769 = vst.msk [vmem:[#allocation7 + $0x20] sm:$0xff] %vm510_vm13, %v7761_v45  ;;  %v7707_v37 = vmax.f32 %v7699_v46, 0.0  ;;  %v11550_v11 = vpop.f32.mrb[78].mxu0 }
 0x7cb   : > { %v7764_v31 = vmul.f32 %v7747_v28, %v7708_v56  ;;  %v7702_v22 = vadd.f32 %v11550_v11, %v9955_v10  ;;  %v7671_v61 = vpop.f32.mrb[79].mxu0 }
 0x7cc   : > { %v7763_v41 = vmul.f32 %v7742_v54, %v7707_v37  ;;  %v7701_v49 = vadd.f32 %v9955_v10, %v7671_v61 }
 0x7cd   : > { %7772 = vst.msk [vmem:[#allocation7 + $0x38] sm:$0xff] %vm510_vm13, %v7764_v31  ;;  %v7710_v8 = vmax.f32 %v7702_v22, 0.0  ;;  %v14741_v23 = vld [vmem:[#allocation7 + $0xf] sm:$0xff]  ;;  %v14743_v13 = vld [vmem:[#allocation7 + $0x17] sm:$0xff] }
 0x7ce   : > { %7771 = vst.msk [vmem:[#allocation7 + $0x30] sm:$0xff] %vm510_vm13, %v7763_v41  ;;  %v7709_v18 = vmax.f32 %v7701_v49, 0.0  ;;  %v7799_v26 = vrot.slane %v14741_v23, 1  ;;  %v7801_v15 = vrot.slane %v14743_v13, 1  ;;  %v8067_v16 = vrot.slane %v14741_v23, 2  ;;  %v10009_v31 = vld [vmem:[%s15114_s10 + $0x50] sm:$0xff] }
 0x7cf   : > { %v7766_v47 = vmul.f32 %v7757_v43, %v7710_v8  ;;  %v8069_v20 = vrot.slane %v14743_v13, 2  ;;  %v10010_v22 = vld [vmem:[%s15114_s10 + $0x58] sm:$0x3f]  ;;  %v10020_v41 = vld [vmem:[%s15114_s10 + $0x60] sm:$0xff]  ;;  %v10021_v49 = vld [vmem:[%s15114_s10 + $0x68] sm:$0x3f] }
 0x7d0   : > { %v7765_v63 = vmul.f32 %v7752_v59, %v7709_v18  ;;  %v7800_v50 = vsel %vm1017_vm5, %v7798_v62, %v7799_v26  ;;  %v14753_v0 = vsel %vm1017_vm5, %v7799_v26, %v7801_v15  ;;  %v8068_v27 = vsel %vm1663_vm6, %v8066_v4, %v8067_v16  ;;  %v10032_v43 = vld [vmem:[%s15114_s10 + $0x78] sm:$0x3f]  ;;  %v10042_v59 = vld [vmem:[%s15114_s10 + $0x80] sm:$0xff] }
 0x7d1   : > { %7774 = vst.msk [vmem:[#allocation7 + $0x48] sm:$0xff] %vm510_vm13, %v7766_v47  ;;  %11555 = vmatprep.mubr.msk.f32.mxu0 %vm510_vm13, %v7800_v50  ;;  %v14757_v14 = vld [vmem:[#allocation7 + $0x1f] sm:$0xff]  ;;  %v14759_v57 = vld [vmem:[#allocation7 + $0x27] sm:$0xff]  ;;  %v8070_v38 = vsel %vm1663_vm6, %v8067_v16, %v8069_v20  ;;  %v11875_v61 = vpack.c.bf16 %v10010_v22, %v10009_v31  ;;  %v11881_v62 = vpack.c.bf16 %v10021_v49, %v10020_v41 }
 0x7d2   : > { %7773 = vst.msk [vmem:[#allocation7 + $0x40] sm:$0xff] %vm510_vm13, %v7765_v63  ;;  %11556 = vmatmul.mubr.msk.f32.vlgmr.msra.gmra.mrb[80].mxu0 %vm510_vm13, %v14753_v0  ;;  %v7803_v6 = vrot.slane %v14757_v14, 1  ;;  %v7805_v34 = vrot.slane %v14759_v57, 1  ;;  %v8071_v32 = vrot.slane %v14757_v14, 2  ;;  %v8073_v40 = vrot.slane %v14759_v57, 2 }
 0x7d3   : > { %11856 = vmatpush3.bf16.msk.msra.mxu0 %vm14702_vm3, %v14722_v58  ;;  %v11887_v18 = vpack.c.bf16 %v10032_v43, %v10031_v1  ;;  %v10043_v47 = vld [vmem:[%s15114_s10 + $0x88] sm:$0x3f] }
 0x7d4   : > { %v14770_v17 = vsel %vm1017_vm5, %v7801_v15, %v7803_v6  ;;  %v14773_v48 = vsel %vm1017_vm5, %v7803_v6, %v7805_v34  ;;  %11859 = vmatprep.subr.msk.bf16.mxu0 %vm14702_vm3, %v11857_v33  ;;  %v14857_v42 = vsel %vm1663_vm6, %v8069_v20, %v8071_v32  ;;  %v14867_v28 = vsel %vm1663_vm6, %v8071_v32, %v8073_v40 }
 0x7d5   : > { %11558 = vmatprep.mubr.msk.f32.mxu0 %vm510_vm13, %v14770_v17  ;;  %v14779_v51 = vld [vmem:[#allocation7 + $0x2f] sm:$0xff]  ;;  %v14781_v55 = vld [vmem:[#allocation7 + $0x37] sm:$0xff]  ;;  %v11893_v63 = vpack.c.bf16 %v10043_v47, %v10042_v59 }
 0x7d6   : > { %11559 = vmatmul.mubr.msk.f32.gmra.mrb[82].mxu0 %vm510_vm13, %v14773_v48  ;;  %v7807_v12 = vrot.slane %v14779_v51, 1  ;;  %v7809_v58 = vrot.slane %v14781_v55, 1  ;;  %v8075_v39 = vrot.slane %v14779_v51, 2  ;;  %v8077_v45 = vrot.slane %v14781_v55, 2 }
 0x7d8   : > { %v14788_v52 = vsel %vm1017_vm5, %v7805_v34, %v7807_v12  ;;  %v14791_v35 = vsel %vm1017_vm5, %v7807_v12, %v7809_v58  ;;  %v14873_v46 = vsel %vm1663_vm6, %v8073_v40, %v8075_v39  ;;  %v14879_v56 = vsel %vm1663_vm6, %v8075_v39, %v8077_v45  ;;  %v8223_v29 = vld [vmem:[#allocation7 + $0x4f] sm:$0xff]  ;;  %v9228_v40 = vld [vmem:[%s15116_s12 + $0x8] sm:$0xff]  ;;  %v9152_v39 = vld [vmem:[%s15118_s14] sm:$0x1] }
 0x7d9   : > { %11561 = vmatprep.mubr.msk.f32.mxu0 %vm510_vm13, %v14788_v52  ;;  %v14795_v10 = vld [vmem:[#allocation7 + $0x3f] sm:$0xff]  ;;  %v14797_v60 = vld [vmem:[#allocation7 + $0x47] sm:$0xff]  ;;  %v8386_v8 = vrot.slane %v8223_v29, 1  ;;  %v8538_v26 = vrot.slane %v8223_v29, 2 }
 0x7da   : > { %11562 = vmatmul.mubr.msk.f32.gmra.mrb[84].mxu0 %vm510_vm13, %v14791_v35  ;;  %v7811_v2 = vrot.slane %v14795_v10, 1  ;;  %v7813_v30 = vrot.slane %v14797_v60, 1  ;;  %v8079_v54 = vrot.slane %v14795_v10, 2 }
 0x7dc   : > { %v14804_v24 = vsel %vm1017_vm5, %v7809_v58, %v7811_v2  ;;  %v14809_v5 = vsel %vm1017_vm5, %v7811_v2, %v7813_v30  ;;  %v14885_v37 = vsel %vm1663_vm6, %v8077_v45, %v8079_v54  ;;  %v9229_v45 = vld [vmem:[%s15116_s12 + $0x10] sm:$0xff] }
 0x7dd   : > { %11564 = vmatprep.mubr.msk.f32.mxu0 %vm510_vm13, %v14804_v24 }
 0x7de   : > { %11565 = vmatmul.mubr.msk.f32.gmra.mrb[86].mxu0 %vm510_vm13, %v14809_v5 }
 0x7df   : > { %11571 = vmatprep.mubr.msk.f32.mxu0 %vm510_vm13, %v14733_v3  ;;  %v8081_v3 = vrot.slane %v14797_v60, 2 }
 0x7e1   : > { %v14890_v11 = vsel %vm1663_vm6, %v8079_v54, %v8081_v3  ;;  %v8539_v15 = vsel %vm1663_vm6, %v8081_v3, %v8538_v26 }
 0x7e2   : > { %11572 = vmatmul.mubr.msk.f32.vlgmr.msra.gmra.mrb[80].mxu0 %vm510_vm13, %v14741_v23 }
 0x7e3   : > { %11574 = vmatprep.mubr.msk.f32.mxu0 %vm510_vm13, %v14743_v13  ;;  %11862 = vmatpush3.bf16.msk.msra.mxu0 %vm14702_vm3, %v11857_v33 }
 0x7e4   : > { %11865 = vmatprep.subr.msk.bf16.mxu0 %vm14702_vm3, %v11863_v19 }
 0x7e6   : > { %11575 = vmatmul.mubr.msk.f32.gmra.mrb[82].mxu0 %vm510_vm13, %v14757_v14 }
 0x7e7   : > { %11577 = vmatprep.mubr.msk.f32.mxu0 %vm510_vm13, %v14759_v57 }
 0x7ea   : > { %11578 = vmatmul.mubr.msk.f32.gmra.mrb[84].mxu0 %vm510_vm13, %v14779_v51 }
 0x7eb   : > { %11580 = vmatprep.mubr.msk.f32.mxu0 %vm510_vm13, %v14781_v55 }
 0x7ee   : > { %11581 = vmatmul.mubr.msk.f32.gmra.mrb[86].mxu0 %vm510_vm13, %v14795_v10 }
 0x7ef   : > { %11587 = vmatprep.mubr.msk.f32.mxu0 %vm510_vm13, %v8068_v27 }
 0x7f2   : > { %11588 = vmatmul.mubr.msk.f32.vlgmr.msra.gmra.mrb[80].mxu0 %vm510_vm13, %v8070_v38 }
 0x7f3   : > { %11590 = vmatprep.mubr.msk.f32.mxu0 %vm510_vm13, %v14857_v42  ;;  %11868 = vmatpush3.bf16.msk.msra.mxu0 %vm14702_vm3, %v11863_v19 }
 0x7f4   : > { %11871 = vmatprep.subr.msk.bf16.mxu0 %vm14702_vm3, %v11869_v36 }
 0x7f6   : > { %11591 = vmatmul.mubr.msk.f32.gmra.mrb[82].mxu0 %vm510_vm13, %v14867_v28 }
 0x7f7   : > { %11593 = vmatprep.mubr.msk.f32.mxu0 %vm510_vm13, %v14873_v46 }
 0x7fa   : > { %11594 = vmatmul.mubr.msk.f32.gmra.mrb[84].mxu0 %vm510_vm13, %v14879_v56 }
 0x7fb   : > { %11596 = vmatprep.mubr.msk.f32.mxu0 %vm510_vm13, %v14885_v37 }
 0x7fe   : > { %11597 = vmatmul.mubr.msk.f32.gmra.mrb[86].mxu0 %vm510_vm13, %v14890_v11 }
 0x7ff   : > { %11603 = vmatprep.mubr.msk.f32.mxu0 %vm510_vm13, %v14741_v23  ;;  %v8387_v23 = vsel %vm1017_vm5, %v7813_v30, %v8386_v8 }
 0x802   : > { %11604 = vmatmul.mubr.msk.f32.vlgmr.msra.gmra.mrb[80].mxu0 %vm510_vm13, %v14743_v13 }
 0x803   : > { %11606 = vmatprep.mubr.msk.f32.mxu0 %vm510_vm13, %v14757_v14  ;;  %11874 = vmatpush3.bf16.msk.msra.mxu0 %vm14702_vm3, %v11869_v36 }
 0x804   : > { %11877 = vmatprep.subr.msk.bf16.mxu0 %vm14702_vm3, %v11875_v61 }
 0x806   : > { %11607 = vmatmul.mubr.msk.f32.gmra.mrb[82].mxu0 %vm510_vm13, %v14759_v57 }
 0x807   : > { %11609 = vmatprep.mubr.msk.f32.mxu0 %vm510_vm13, %v14779_v51 }
 0x80a   : > { %11610 = vmatmul.mubr.msk.f32.gmra.mrb[84].mxu0 %vm510_vm13, %v14781_v55 }
 0x80b   : > { %11612 = vmatprep.mubr.msk.f32.mxu0 %vm510_vm13, %v14795_v10 }
 0x80e   : > { %11613 = vmatmul.mubr.msk.f32.gmra.mrb[86].mxu0 %vm510_vm13, %v14797_v60 }
 0x80f   : > { %11619 = vmatprep.mubr.msk.f32.mxu0 %vm510_vm13, %v14753_v0 }
 0x812   : > { %11620 = vmatmul.mubr.msk.f32.vlgmr.msra.gmra.mrb[80].mxu0 %vm510_vm13, %v14770_v17 }
 0x813   : > { %11622 = vmatprep.mubr.msk.f32.mxu0 %vm510_vm13, %v14773_v48  ;;  %11880 = vmatpush3.bf16.msk.msra.mxu0 %vm14702_vm3, %v11875_v61 }
 0x814   : > { %11883 = vmatprep.subr.msk.bf16.mxu0 %vm14702_vm3, %v11881_v62 }
 0x816   : > { %11623 = vmatmul.mubr.msk.f32.gmra.mrb[82].mxu0 %vm510_vm13, %v14788_v52 }
 0x817   : > { %11625 = vmatprep.mubr.msk.f32.mxu0 %vm510_vm13, %v14791_v35 }
 0x81a   : > { %11626 = vmatmul.mubr.msk.f32.gmra.mrb[84].mxu0 %vm510_vm13, %v14804_v24 }
 0x81b   : > { %11628 = vmatprep.mubr.msk.f32.mxu0 %vm510_vm13, %v14809_v5 }
 0x81e   : > { %11629 = vmatmul.mubr.msk.f32.gmra.mrb[86].mxu0 %vm510_vm13, %v8387_v23 }
 0x81f   : > { %11635 = vmatprep.mubr.msk.f32.mxu0 %vm510_vm13, %v8070_v38  ;;  %v9227_v38 = vld [vmem:[%s15116_s12] sm:$0xff] }
 0x822   : > { %11636 = vmatmul.mubr.msk.f32.vlgmr.msra.gmra.mrb[80].mxu0 %vm510_vm13, %v14857_v42 }
 0x823   : > { %11638 = vmatprep.mubr.msk.f32.mxu0 %vm510_vm13, %v14867_v28  ;;  %11886 = vmatpush3.bf16.msk.msra.mxu0 %vm14702_vm3, %v11881_v62 }
 0x824   : > { %11889 = vmatprep.subr.msk.bf16.mxu0 %vm14702_vm3, %v11887_v18 }
 0x826   : > { %11639 = vmatmul.mubr.msk.f32.gmra.mrb[82].mxu0 %vm510_vm13, %v14873_v46 }
 0x827   : > { %11641 = vmatprep.mubr.msk.f32.mxu0 %vm510_vm13, %v14879_v56 }
 0x82a   : > { %11642 = vmatmul.mubr.msk.f32.gmra.mrb[84].mxu0 %vm510_vm13, %v14885_v37 }
 0x82b   : > { %11644 = vmatprep.mubr.msk.f32.mxu0 %vm510_vm13, %v14890_v11 }
 0x82e   : > { %11645 = vmatmul.mubr.msk.f32.gmra.mrb[86].mxu0 %vm510_vm13, %v8539_v15 }
 0x82f   : > { %11651 = vmatprep.mubr.msk.f32.mxu0 %vm510_vm13, %v14743_v13  ;;  %v8680_v13 = vld [vmem:[#allocation7 + $0x57] sm:$0xff] }
 0x830   : > { %v8843_v50 = vrot.slane %v8680_v13, 1  ;;  %v8995_v44 = vrot.slane %v8680_v13, 2 }
 0x832   : > { %11652 = vmatmul.mubr.msk.f32.vlgmr.msra.gmra.mrb[80].mxu0 %vm510_vm13, %v14757_v14  ;;  %v8844_v0 = vsel %vm1017_vm5, %v8386_v8, %v8843_v50  ;;  %v8996_v33 = vsel %vm1663_vm6, %v8538_v26, %v8995_v44  ;;  %v12483_v14 = vmov 0.0|0.0   ;;  %vm9153_vm6 = vcmask 523264  }
 0x833   : > { %11654 = vmatprep.mubr.msk.f32.mxu0 %vm510_vm13, %v14759_v57  ;;  %11892 = vmatpush3.bf16.msk.msra.mxu0 %vm14702_vm3, %v11887_v18  ;;  %v10053_v57 = vld [vmem:[%s15115_s11] ss:$0 sm:$0xff] }
 0x834   : > { %11895 = vmatprep.subr.msk.bf16.mxu0 %vm14702_vm3, %v11893_v63 }
 0x836   : > { %11655 = vmatmul.mubr.msk.f32.gmra.mrb[82].mxu0 %vm510_vm13, %v14779_v51 }
 0x837   : > { %11657 = vmatprep.mubr.msk.f32.mxu0 %vm510_vm13, %v14781_v55 }
 0x83a   : > { %11658 = vmatmul.mubr.msk.f32.gmra.mrb[84].mxu0 %vm510_vm13, %v14795_v10 }
 0x83b   : > { %11660 = vmatprep.mubr.msk.f32.mxu0 %vm510_vm13, %v14797_v60 }
 0x83e   : > { %11661 = vmatmul.mubr.msk.f32.gmra.mrb[86].mxu0 %vm510_vm13, %v8223_v29 }
 0x83f   : > { %11667 = vmatprep.mubr.msk.f32.mxu0 %vm510_vm13, %v14770_v17 }
 0x842   : > { %11668 = vmatmul.mubr.msk.f32.vlgmr.msra.gmra.mrb[80].mxu0 %vm510_vm13, %v14773_v48 }
 0x843   : > { %11670 = vmatprep.mubr.msk.f32.mxu0 %vm510_vm13, %v14788_v52  ;;  %11898 = vmatpush3.bf16.msk.msra.mxu0 %vm14702_vm3, %v11893_v63 }
 0x844   : > { %11899 = vmatprep.subr.bf16.mxu0 %v12483_v14 }
 0x846   : > { %11671 = vmatmul.mubr.msk.f32.gmra.mrb[82].mxu0 %vm510_vm13, %v14791_v35 }
 0x847   : > { %11673 = vmatprep.mubr.msk.f32.mxu0 %vm510_vm13, %v14804_v24 }
 0x84a   : > { %11674 = vmatmul.mubr.msk.f32.gmra.mrb[84].mxu0 %vm510_vm13, %v14809_v5 }
 0x84b   : > { %11676 = vmatprep.mubr.msk.f32.mxu0 %vm510_vm13, %v8387_v23 }
 0x84e   : > { %11677 = vmatmul.mubr.msk.f32.gmra.mrb[86].mxu0 %vm510_vm13, %v8844_v0 }
 0x84f   : > { %11683 = vmatprep.mubr.msk.f32.mxu0 %vm510_vm13, %v14857_v42 }
 0x852   : > { %11684 = vmatmul.mubr.msk.f32.vlgmr.msra.gmra.mrb[80].mxu0 %vm510_vm13, %v14867_v28  ;;  %v11912_v28 = vpack.c.bf16 %v9228_v40, %v9227_v38 }
 0x853   : > { %11686 = vmatprep.mubr.msk.f32.mxu0 %vm510_vm13, %v14873_v46  ;;  %v9230_v46 = vld [vmem:[%s15116_s12 + $0x18] sm:$0x7f] }
 0x854   : > { %v11915_v54 = vpack.c.bf16 %v9230_v46, %v9229_v45 }
 0x856   : > { %11687 = vmatmul.mubr.msk.f32.gmra.mrb[82].mxu0 %vm510_vm13, %v14879_v56 }
 0x857   : > { %11689 = vmatprep.mubr.msk.f32.mxu0 %vm510_vm13, %v14885_v37 }
 0x85a   : > { %11690 = vmatmul.mubr.msk.f32.gmra.mrb[84].mxu0 %vm510_vm13, %v14890_v11 }
 0x85b   : > { %11692 = vmatprep.mubr.msk.f32.mxu0 %vm510_vm13, %v8539_v15 }
 0x85e   : > { %11693 = vmatmul.mubr.msk.f32.gmra.mrb[86].mxu0 %vm510_vm13, %v8996_v33 }
 0x85f   : > { %11711 = vmatprep.mubr.msk.f32.mxu0 %vm12484_vm4, %v12481_v53 }
 0x925   : > { %v11685_v6 = vpop.f32.mrb[80].mxu0 }
 0x926   : > { %v9137_v34 = vadd.f32 %v11685_v6, %v10053_v57  ;;  %v9082_v17 = vpop.f32.mrb[81].mxu0 }
 0x927   : > { %v9136_v48 = vadd.f32 %v10053_v57, %v9082_v17 }
 0x928   : > { %v9145_v51 = vmax.f32 %v9137_v34, 0.0 }
 0x929   : > { %v9144_v55 = vmax.f32 %v9136_v48, 0.0  ;;  %v11688_v12 = vpop.f32.mrb[82].mxu0 }
 0x92a   : > { %v9139_v58 = vadd.f32 %v11688_v12, %v10053_v57  ;;  %v9092_v52 = vpop.f32.mrb[83].mxu0 }
 0x92b   : > { %v11900_v35 = vpack.c.bf16 %v9145_v51, %v9144_v55  ;;  %v9138_v10 = vadd.f32 %v10053_v57, %v9092_v52 }
 0x92c   : > { %v9147_v60 = vmax.f32 %v9139_v58, 0.0 }
 0x92d   : > { %v9146_v2 = vmax.f32 %v9138_v10, 0.0  ;;  %v11691_v30 = vpop.f32.mrb[84].mxu0  ;;  %11901 = vmatpush3.bf16.msra.mxu0 %v11900_v35 }
 0x92e   : > { %v9141_v24 = vadd.f32 %v11691_v30, %v10053_v57  ;;  %v9102_v5 = vpop.f32.mrb[85].mxu0  ;;  %11902 = vmatprep.subr.bf16.mxu0 %v12483_v14 }
 0x92f   : > { %v11903_v9 = vpack.c.bf16 %v9147_v60, %v9146_v2  ;;  %v9140_v7 = vadd.f32 %v10053_v57, %v9102_v5 }
 0x930   : > { %v9149_v19 = vmax.f32 %v9141_v24, 0.0 }
 0x931   : > { %v9148_v4 = vmax.f32 %v9140_v7, 0.0  ;;  %v11694_v16 = vpop.f32.mrb[86].mxu0  ;;  %11904 = vmatpush3.bf16.msra.mxu0 %v11903_v9 }
 0x932   : > { %v9143_v20 = vadd.f32 %v11694_v16, %v10053_v57  ;;  %v9112_v21 = vpop.f32.mrb[87].mxu0  ;;  %11905 = vmatprep.subr.bf16.mxu0 %v12483_v14 }
 0x933   : > { %v11906_v25 = vpack.c.bf16 %v9149_v19, %v9148_v4  ;;  %v9142_v27 = vadd.f32 %v10053_v57, %v9112_v21 }
 0x934   : > { %v9151_v32 = vmax.f32 %v9143_v20, 0.0 }
 0x935   : > { %v9150_v36 = vmax.f32 %v9142_v27, 0.0  ;;  %11907 = vmatpush3.bf16.msra.mxu0 %v11906_v25 }
 0x936   : > { %11908 = vmatprep.subr.bf16.mxu0 %v12483_v14 }
 0x937   : > { %v11909_v42 = vpack.c.bf16 %v9151_v32, %v9150_v36 }
 0x939   : > { %11910 = vmatpush3.bf16.msra.mxu0 %v11909_v42 }
 0x93a   : > { %11911 = vmatprep.subr.bf16.mxu0 %v12483_v14 }
 0x93c   : > { %11712 = vmatmul.mubr.msk.f32.vlgmr.msra.gmra.mrb[88].mxu0 %vm9153_vm6, %v9152_v39 }
 0x93d   : > { %11913 = vmatpush3.bf16.msra.mxu0 %v11912_v28  ;;  %11722 = vmatprep.mubr.msk.f32.mxu0 %vm12484_vm4, %v12481_v53 }
 0x93e   : > { %11914 = vmatprep.subr.bf16.mxu0 %v12483_v14 }
 0x941   : > { %11917 = vmatpush3.bf16.msk.msra.mxu0 %vm11916_vm7, %v11915_v54 }
 0xa0f   : > { %v9223_v56 = vpop.f32.mrb[88].mxu0 }
 0xa10   : > { %v11713_v3 = vpop.f32.mrb[89].mxu0  ;;  %11723 = vmatmul.mubr.msk.f32.vlgmr.msra.gmra.mrb[90].mxu0 %vm9231_vm8, %v9223_v56 }
 0xae3   : > { %v9304_v37 = vpop.f32.mrb[90].mxu0 }
 0xae4   : > { %v11724_v11 = vpop.f32.mrb[91].mxu0  ;;  %v9309_v31 = vsel %vm9308_vm9, %v9304_v37, -inf }
 0xae5   : > { %9310 = vmax.xlane.f32.xlu0 %v9309_v31 }
 0xb72   : > { %v9311_v22 = vpop.xlane.xlu0 %9310 }
 0xb73   : > { %v9312_v61 = vsub.f32 %v9304_v37, %v9311_v22 }
 0xb75   : > { %v9313_v53 = vmul.f32 1.442695, %v9312_v61 }
 0xb77   : > { %12412 = vpow2.f32 %v9313_v53 }
 0xb81   : > { %v12413_v41 = vpop.eup %12412 }
 0xb82   : > { %v9315_v49 = vsel %vm9308_vm9, %v12413_v41, 0.0 }
 0xb83   : > { %9316 = vadd.xlane.f32.xlu1 %v9315_v49 }
 0xc10   : > { %v9317_v62 = vpop.xlane.xlu1 %9316 }
 0xc11   : > { %12414 = vlog2.f32 %v9317_v62 }
 0xc1b   : > { %v12415_v29 = vpop.eup %12414 }
 0xc1c   : > { %v9319_v8 = vmul.f32 0.6931472, %v12415_v29 }
 0xc1e   : > { %v9320_v23 = vsub.f32 %v9312_v61, %v9319_v8 }
 0xc20   : > { %9321 = vst.msk [vmem:[%s487_s16] sm:$0x1] %vm9308_vm9, %v9320_v23 }
 0xc21   : > { %12429 = shalt.err (!%p12426_p3)
}
 0xc22   : > { %s12430_s1 = scalar_lea.hbm %s15061_s23, 16  ;;  %s12434_s0 = scalar_lea.hbm %s15119_s15, 32 }
 0xc23   : > { %p12431_p4 = scmp.ne.s32.totalorder %s15061_s23, %s12430_s1  ;;  %p12435_p9 = scmp.lt.u32.totalorder %s15061_s23, %s15119_s15 }
 0xc24   : > { %p12436_p10 = scmp.lt.u32.totalorder %s12434_s0, %s12430_s1  ;;  %p12438_p12 = scmp.lt.u32.totalorder %s12430_s1, %s15061_s23 }
 0xc25   : > { %p12432_p7 = pnand %p12431_p4, %p12604_p5 }
 0xc26   : > { %p12437_p11 = por %p12436_p10, %p12435_p9 }
 0xc27   : > { %p12433_p8 = pneg %p12432_p7 }
 0xc28   : > { %p12439_p13 = por %p12438_p12, %p12437_p11 }
 0xc2a   : > { %p12440_p0 = pnand %p12439_p13, %p12433_p8 }
 0xc2c   : > { %12443 = shalt.err (!%p12440_p0)
}
 0xc2d   : > { %12366 = dma.vmem_to_hbm [thread:$0]  (%p12604_p5), %s15063_s27, 16, %s15061_s23, %s9323_s25  }
 0xc2e PF: > { %p12372_p1 = scmp.ge.s32.totalorder %s12478_s21, 2  ;;  %s9347_s3 = sand.u32 1, %s12466_s18  }
 0xc2f   : > { %s9348_s26 = scalar_lea.sflag [#allocation9], %s9347_s3 }
 0xc30   : > { %p12369_p2 = pnand %p12372_p1, %p12608_p6 }
 0xc32   : > { %12461 = dma.done.wait (!%p12369_p2), %s9348_s26, 16  }
 0xc33   : > { %12463 = vsyncadd (!%p12369_p2), %s9348_s26, 4294967280  ;;  %s15235_s22 = sld [smem:[#allocation11_spill]]  ;;  %p25_p3 = scmp.ge.s32.totalorder %s12591_s24, 4  }
 0xc34   : > { %s15236_s18 = smov %s12470_s19  ;;  %s15237_s19 = smov %s12474_s20 }
 0xc35   : > { %s15239_s21 = smov %s12591_s24  ;;  %27 = sbr.rel (!%p25_p3) target bundleno = 8 (0x8), region = 170 }
 0xc39   : > { %s15238_s20 = smov %s15235_s22 }
 0xc3c   :  { %9352 = vsyncpa [#allocation9], 1 }
 0xc3d   :  { %9354 = vsyncpa [#allocation9 + $0x1], 1 }

</bundles_post_ra>
